<compile_context>
chip_gen: v7x
topology: tpu7x:2x2x1
jax: 0.10.0
libtpu: 0.0.40
codegen_flags: <defaults>
</compile_context>

<pallas_src>
import functools

import jax
import jax.numpy as jnp
from jax.experimental import pallas as pl
from jax.experimental.pallas import tpu as pltpu


def _rk4_block_kernel(t_ref, x_ref, w_ref, m_ref, b_ref, msk_ref, out_ref,
                      *, CP, W, BHW):
    """One torchdiffeq fixed-grid RK4 (3/8 rule) step for one batch block.

    t_ref   : SMEM (2,)            -- [t0, t1]
    x_ref   : VMEM (1, CP, BHW)    -- y0, padded channels x (bb images * HW)
    w_ref   : VMEM (9, CP, CP)     -- bf16 per-tap conv weights [tap, cout, cin]
    m_ref   : VMEM (CP, BHW)       -- time-plane map M (conv of padded ones), tiled
    b_ref   : VMEM (CP, 1)         -- bias
    msk_ref : VMEM (16, BHW)       -- 9 border-validity mask rows (tiled, padded)
    out_ref : VMEM (1, CP, BHW)    -- y at t1 (aliased with x in HBM)
    """
    t0 = t_ref[0]
    t1 = t_ref[1]
    dt = t1 - t0

    y0 = x_ref[0]                                      # (CP, BHW) f32
    m = m_ref[...]                                     # (CP, BHW) f32
    bias = jnp.broadcast_to(b_ref[...], m.shape)       # hoisted: broadcast once

    def odefunc(t, y):
        # Affine part (time channel + bias), exact in f32.
        z = t * m + bias
        # 9 conv taps -> 9 accumulated small MXU dots; no scratch slab.
        for tap in range(9):
            dy, dx = tap // 3, tap % 3
            off = (dy - 1) * W + (dx - 1)
            shifted = y if off == 0 else pltpu.roll(y, shift=(-off) % BHW, axis=1)
            if dy == 1 and dx == 1:                    # center tap: mask is all-ones
                col = shifted
            else:
                col = shifted * msk_ref[tap:tap + 1, :]
            z = z + jnp.dot(w_ref[tap], col.astype(jnp.bfloat16),
                            preferred_element_type=jnp.float32)
        return z

    # torchdiffeq fixed-grid 'rk4' uses the 3/8-rule step (rk4_alt_step_func).
    third = 1.0 / 3.0
    k1 = odefunc(t0, y0)
    k2 = odefunc(t0 + dt * third, y0 + dt * third * k1)
    k3 = odefunc(t0 + dt * 2.0 * third, y0 + dt * (k2 - third * k1))
    k4 = odefunc(t1, y0 + dt * (k1 - k2 + k3))
    out_ref[0] = y0 + (k1 + 3.0 * (k2 + k3) + k4) * (dt * 0.125)


def _pick_block_batch(N, CP, HW):
    """Images per grid block: big lane-dense blocks, but keep >=2 grid steps."""
    x_block_budget = 2 << 20                       # ~2 MiB of f32 activations / block
    per_img = CP * HW * 4
    bb = max(1, min(N, x_block_budget // max(per_img, 1)))
    if N >= 2:
        bb = min(bb, (N + 1) // 2)                 # >=2 grid steps (v7x: 2 TensorCores)
    return bb


@functools.partial(jax.jit, static_argnames=("block_batch",))
def _ode_rk4_first_step(x_nchw, t01, w_oihw, bias, *, block_batch):
    N, C, H, W = x_nchw.shape
    HW = H * W
    CP = ((C + 7) // 8) * 8                        # channels -> full sublane tile
    bb = block_batch
    NB = -(-N // bb)                               # number of grid blocks
    Np = NB * bb
    BHW = bb * HW

    w = w_oihw.astype(jnp.float32)
    b = bias.astype(jnp.float32)

    # --- activations: (NB, CP, bb*HW), spatial dense on lanes, period HW/image.
    x_flat = x_nchw.astype(jnp.float32).reshape(N, C, HW)
    x_flat = jnp.pad(x_flat, ((0, Np - N), (0, CP - C), (0, 0)))
    x_p = x_flat.reshape(NB, bb, CP, HW).transpose(0, 2, 1, 3).reshape(NB, CP, BHW)

    # --- per-tap zero-padding validity masks, (9, HW) tiled to (16, BHW).
    hh = jnp.arange(HW, dtype=jnp.int32) // W
    ww = jnp.arange(HW, dtype=jnp.int32) % W
    rows = []
    for dy in range(3):
        for dx in range(3):
            mh = (hh + (dy - 1) >= 0) & (hh + (dy - 1) < H)
            mw = (ww + (dx - 1) >= 0) & (ww + (dx - 1) < W)
            rows.append((mh & mw).astype(jnp.float32))
    mask9 = jnp.stack(rows, axis=0)                                   # (9, HW)
    mask_t = jnp.pad(jnp.tile(mask9, (1, bb)), ((0, 16 - 9), (0, 0)))  # (16, BHW)

    # --- per-tap y-channel weights: w_taps[tap, c_out, c_in] = w[c_out, c_in+1, dy, dx]
    w_y = jnp.transpose(w[:, 1:, :, :], (2, 3, 0, 1)).reshape(9, C, C)
    w_taps = jnp.pad(w_y, ((0, 0), (0, CP - C), (0, CP - C))).astype(jnp.bfloat16)

    # --- time-plane map: conv of a ZERO-PADDED ones plane with w[:, 0].
    w_t = w[:, 0, :, :].reshape(C, 9)
    m_map = jnp.pad(w_t @ mask9, ((0, CP - C), (0, 0)))               # (CP, HW)
    m_t = jnp.tile(m_map, (1, bb))                                    # (CP, BHW)

    b_p = jnp.pad(b.reshape(C, 1), ((0, CP - C), (0, 0)))             # (CP, 1)

    # --- advisory cost estimate (4 RK stages, 9 taps/stage).
    mxu_flops = 4 * 2 * 9 * CP * CP * BHW * NB
    vpu_flops = 4 * 40 * CP * BHW * NB
    bytes_acc = (2 * NB * CP * BHW + CP * BHW + 16 * BHW + 9 * CP * CP + CP) * 4

    kernel = functools.partial(_rk4_block_kernel, CP=CP, W=W, BHW=BHW)
    out_p = pl.pallas_call(
        kernel,
        out_shape=jax.ShapeDtypeStruct((NB, CP, BHW), jnp.float32),
        grid=(NB,),
        in_specs=[
            pl.BlockSpec(memory_space=pltpu.MemorySpace.SMEM),        # t01
            pl.BlockSpec((1, CP, BHW), lambda n: (n, 0, 0)),          # x block
            pl.BlockSpec((9, CP, CP), lambda n: (0, 0, 0)),           # per-tap weights
            pl.BlockSpec((CP, BHW), lambda n: (0, 0)),                # M (time plane)
            pl.BlockSpec((CP, 1), lambda n: (0, 0)),                  # bias
            pl.BlockSpec((16, BHW), lambda n: (0, 0)),                # border masks
        ],
        out_specs=pl.BlockSpec((1, CP, BHW), lambda n: (n, 0, 0)),
        input_output_aliases={1: 0},                                  # x block -> out block
        compiler_params=pltpu.CompilerParams(
            dimension_semantics=("parallel",),
            vmem_limit_bytes=32 * 1024 * 1024),
        cost_estimate=pl.CostEstimate(flops=mxu_flops + vpu_flops,
                                      transcendentals=0,
                                      bytes_accessed=bytes_acc),
    )(t01, x_p, w_taps, m_t, b_p, mask_t)

    out_flat = out_p.reshape(NB, CP, bb, HW).transpose(0, 2, 1, 3).reshape(Np, CP, HW)
    return out_flat[:N, :C, :].reshape(N, C, H, W)


def ode_block_time_last(x_nchw, t_list, w_oihw, b, final_time=4.0, block_batch=None):
    """Pallas implementation of ODEBlockTimeLast.forward(x, t)."""
    x_nchw = jnp.asarray(x_nchw, jnp.float32)
    odetime = jnp.concatenate([jnp.asarray(t, jnp.float32) for t in t_list], axis=0)
    one = jnp.asarray([final_time], dtype=x_nchw.dtype)
    all_time = jnp.concatenate([odetime, one], axis=0).astype(x_nchw.dtype)
    t01 = all_time[:2].astype(jnp.float32)          # only out[1] is returned

    N, C, H, W = x_nchw.shape
    CP = ((C + 7) // 8) * 8
    if block_batch is None:
        block_batch = _pick_block_batch(N, CP, H * W)

    out = _ode_rk4_first_step(x_nchw, t01, jnp.asarray(w_oihw, jnp.float32),
                              jnp.asarray(b, jnp.float32), block_batch=block_batch)
    return out.astype(x_nchw.dtype)


def _reference_forward(x_nchw, t_list, w_oihw, b, final_time=4.0):
    """Pure-JAX reference (same math, NCHW, lax conv) for validation."""
    x = x_nchw.astype(jnp.float32)
    all_time = jnp.concatenate(list(t_list) + [jnp.asarray([final_time], jnp.float32)], 0)
    t0, t1 = all_time[0], all_time[1]
    dt = t1 - t0

    def f(t, y):
        tt = jnp.full((y.shape[0], 1, y.shape[2], y.shape[3]), t, y.dtype)
        inp = jnp.concatenate([tt, y], axis=1)
        out = jax.lax.conv_general_dilated(
            inp, w_oihw.astype(jnp.float32), (1, 1), 'SAME',
            dimension_numbers=('NCHW', 'OIHW', 'NCHW'),
            precision=jax.lax.Precision.HIGHEST)
        return out + b.reshape(1, -1, 1, 1)

    third = 1.0 / 3.0
    k1 = f(t0, x)
    k2 = f(t0 + dt * third, x + dt * third * k1)
    k3 = f(t0 + dt * 2.0 * third, x + dt * (k2 - third * k1))
    k4 = f(t1, x + dt * (k1 - k2 + k3))
    return x + (k1 + 3.0 * (k2 + k3) + k4) * (dt * 0.125)


if __name__ == "__main__":
    # N=4 exercises batch folding onto lanes (2 images / block) and a 2-step grid.
    N, C, H, W = 4, 4, 16, 16
    key = jax.random.PRNGKey(0)
    kx, kw, kb = jax.random.split(key, 3)

    # Deterministic ConcatConv2d params (Conv2d(C+1 -> C, 3, padding=1)).
    fan_in = (C + 1) * 3 * 3
    bound = 1.0 / float(fan_in) ** 0.5
    w_oihw = jax.random.uniform(kw, (C, C + 1, 3, 3), jnp.float32, -bound, bound)
    bias = jax.random.uniform(kb, (C,), jnp.float32, -bound, bound)

    x = jax.random.normal(kx, (N, C, H, W), jnp.float32)
    # `t` in forward() is a list of time tensors; final_time=4.0 is appended.
    t_list = [jnp.asarray([0.0], jnp.float32),
              jnp.asarray([1.0], jnp.float32),
              jnp.asarray([2.5], jnp.float32)]

    out = ode_block_time_last(x, t_list, w_oihw, bias, final_time=4.0)
    out = jax.block_until_ready(out)

    ref = jax.block_until_ready(_reference_forward(x, t_list, w_oihw, bias, 4.0))
    assert out.shape == (N, C, H, W)
    assert jnp.allclose(out, ref, rtol=2e-2, atol=2e-2), "mismatch vs pure-JAX reference"

    print("KERNEL_OK")
</pallas_src>

<mosaic_0001>
module attributes {stable_mosaic.version = 11 : i64} {
  func.func @_rk4_block_kernel(%arg0: i32, %arg1: memref<2xf32, #tpu.memory_space<smem>>, %arg2: memref<1x8x512xf32, #tpu.memory_space<vmem>>, %arg3: memref<9x8x8xbf16, #tpu.memory_space<vmem>>, %arg4: memref<8x512xf32, #tpu.memory_space<vmem>>, %arg5: memref<8x1xf32, #tpu.memory_space<vmem>>, %arg6: memref<16x512xf32, #tpu.memory_space<vmem>>, %arg7: memref<1x8x512xf32, #tpu.memory_space<vmem>>) attributes {dimension_semantics = [#tpu.dimension_semantics<parallel>], iteration_bounds = array<i64: 2>, scalar_prefetch = 0 : i64, scratch_operands = 0 : i64, tpu.core_type = #tpu.core_type<tc>, window_params = [{transform_indices = @transform_0, window_bounds = array<i64: 2>}, {transform_indices = @transform_1, window_bounds = array<i64: 1, 8, 512>}, {pipeline_mode = #tpu.pipeline_mode<synchronous>, transform_indices = @transform_2, window_bounds = array<i64: 9, 8, 8>}, {pipeline_mode = #tpu.pipeline_mode<synchronous>, transform_indices = @transform_3, window_bounds = array<i64: 8, 512>}, {pipeline_mode = #tpu.pipeline_mode<synchronous>, transform_indices = @transform_4, window_bounds = array<i64: 8, 1>}, {pipeline_mode = #tpu.pipeline_mode<synchronous>, transform_indices = @transform_5, window_bounds = array<i64: 16, 512>}, {transform_indices = @transform_6, window_bounds = array<i64: 1, 8, 512>}]} {
    %c0 = arith.constant 0 : index
    %0 = memref.load %arg1[%c0] : memref<2xf32, #tpu.memory_space<smem>>
    %c1 = arith.constant 1 : index
    %1 = memref.load %arg1[%c1] : memref<2xf32, #tpu.memory_space<smem>>
    %2 = arith.subf %1, %0 : f32
    %c0_0 = arith.constant 0 : index
    %c0_1 = arith.constant 0 : index
    %c0_2 = arith.constant 0 : index
    %3 = vector.load %arg2[%c0_0, %c0_1, %c0_2] : memref<1x8x512xf32, #tpu.memory_space<vmem>>, vector<1x8x512xf32>
    %4 = vector.shape_cast %3 : vector<1x8x512xf32> to vector<8x512xf32>
    %c0_3 = arith.constant 0 : index
    %c0_4 = arith.constant 0 : index
    %5 = vector.load %arg4[%c0_3, %c0_4] : memref<8x512xf32, #tpu.memory_space<vmem>>, vector<8x512xf32>
    %c0_5 = arith.constant 0 : index
    %c0_6 = arith.constant 0 : index
    %6 = vector.load %arg5[%c0_5, %c0_6] : memref<8x1xf32, #tpu.memory_space<vmem>>, vector<8x1xf32>
    %7 = vector.shape_cast %6 : vector<8x1xf32> to vector<8x1xf32>
    %8 = vector.broadcast %7 : vector<8x1xf32> to vector<8x512xf32>
    %9 = vector.broadcast %0 : f32 to vector<8x512xf32>
    %10 = arith.mulf %9, %5 : vector<8x512xf32>
    %11 = arith.addf %10, %8 : vector<8x512xf32>
    %c17_i32 = arith.constant 17 : i32
    %12 = tpu.dynamic_rotate %4 by %c17_i32 dim 1 : vector<8x512xf32>, i32 -> vector<8x512xf32>
    %c0_7 = arith.constant 0 : index
    %c0_8 = arith.constant 0 : index
    %13 = vector.load %arg6[%c0_7, %c0_8] : memref<16x512xf32, #tpu.memory_space<vmem>>, vector<1x512xf32>
    %14 = vector.broadcast %13 : vector<1x512xf32> to vector<8x512xf32>
    %15 = arith.mulf %12, %14 : vector<8x512xf32>
    %c0_9 = arith.constant 0 : index
    %c0_10 = arith.constant 0 : index
    %c0_11 = arith.constant 0 : index
    %16 = vector.load %arg3[%c0_9, %c0_10, %c0_11] : memref<9x8x8xbf16, #tpu.memory_space<vmem>>, vector<1x8x8xbf16>
    %17 = vector.shape_cast %16 : vector<1x8x8xbf16> to vector<8x8xbf16>
    %18 = arith.truncf %15 : vector<8x512xf32> to vector<8x512xbf16>
    %cst = arith.constant dense<0.000000e+00> : vector<8x512xf32>
    %19 = tpu.matmul %17, %18, %cst {dimension_numbers = #tpu.dot_dimension_numbers<[1], [0], [0], [1], [0, 0, 1, 1], [], []>} : vector<8x8xbf16>, vector<8x512xbf16>, vector<8x512xf32> -> vector<8x512xf32>
    %20 = arith.addf %11, %19 : vector<8x512xf32>
    %c16_i32 = arith.constant 16 : i32
    %21 = tpu.dynamic_rotate %4 by %c16_i32 dim 1 : vector<8x512xf32>, i32 -> vector<8x512xf32>
    %c1_12 = arith.constant 1 : index
    %c0_13 = arith.constant 0 : index
    %22 = vector.load %arg6[%c1_12, %c0_13] : memref<16x512xf32, #tpu.memory_space<vmem>>, vector<1x512xf32>
    %23 = vector.broadcast %22 : vector<1x512xf32> to vector<8x512xf32>
    %24 = arith.mulf %21, %23 : vector<8x512xf32>
    %c1_14 = arith.constant 1 : index
    %c0_15 = arith.constant 0 : index
    %c0_16 = arith.constant 0 : index
    %25 = vector.load %arg3[%c1_14, %c0_15, %c0_16] : memref<9x8x8xbf16, #tpu.memory_space<vmem>>, vector<1x8x8xbf16>
    %26 = vector.shape_cast %25 : vector<1x8x8xbf16> to vector<8x8xbf16>
    %27 = arith.truncf %24 : vector<8x512xf32> to vector<8x512xbf16>
    %cst_17 = arith.constant dense<0.000000e+00> : vector<8x512xf32>
    %28 = tpu.matmul %26, %27, %cst_17 {dimension_numbers = #tpu.dot_dimension_numbers<[1], [0], [0], [1], [0, 0, 1, 1], [], []>} : vector<8x8xbf16>, vector<8x512xbf16>, vector<8x512xf32> -> vector<8x512xf32>
    %29 = arith.addf %20, %28 : vector<8x512xf32>
    %c15_i32 = arith.constant 15 : i32
    %30 = tpu.dynamic_rotate %4 by %c15_i32 dim 1 : vector<8x512xf32>, i32 -> vector<8x512xf32>
    %c2 = arith.constant 2 : index
    %c0_18 = arith.constant 0 : index
    %31 = vector.load %arg6[%c2, %c0_18] : memref<16x512xf32, #tpu.memory_space<vmem>>, vector<1x512xf32>
    %32 = vector.broadcast %31 : vector<1x512xf32> to vector<8x512xf32>
    %33 = arith.mulf %30, %32 : vector<8x512xf32>
    %c2_19 = arith.constant 2 : index
    %c0_20 = arith.constant 0 : index
    %c0_21 = arith.constant 0 : index
    %34 = vector.load %arg3[%c2_19, %c0_20, %c0_21] : memref<9x8x8xbf16, #tpu.memory_space<vmem>>, vector<1x8x8xbf16>
    %35 = vector.shape_cast %34 : vector<1x8x8xbf16> to vector<8x8xbf16>
    %36 = arith.truncf %33 : vector<8x512xf32> to vector<8x512xbf16>
    %cst_22 = arith.constant dense<0.000000e+00> : vector<8x512xf32>
    %37 = tpu.matmul %35, %36, %cst_22 {dimension_numbers = #tpu.dot_dimension_numbers<[1], [0], [0], [1], [0, 0, 1, 1], [], []>} : vector<8x8xbf16>, vector<8x512xbf16>, vector<8x512xf32> -> vector<8x512xf32>
    %38 = arith.addf %29, %37 : vector<8x512xf32>
    %c1_i32 = arith.constant 1 : i32
    %39 = tpu.dynamic_rotate %4 by %c1_i32 dim 1 : vector<8x512xf32>, i32 -> vector<8x512xf32>
    %c3 = arith.constant 3 : index
    %c0_23 = arith.constant 0 : index
    %40 = vector.load %arg6[%c3, %c0_23] : memref<16x512xf32, #tpu.memory_space<vmem>>, vector<1x512xf32>
    %41 = vector.broadcast %40 : vector<1x512xf32> to vector<8x512xf32>
    %42 = arith.mulf %39, %41 : vector<8x512xf32>
    %c3_24 = arith.constant 3 : index
    %c0_25 = arith.constant 0 : index
    %c0_26 = arith.constant 0 : index
    %43 = vector.load %arg3[%c3_24, %c0_25, %c0_26] : memref<9x8x8xbf16, #tpu.memory_space<vmem>>, vector<1x8x8xbf16>
    %44 = vector.shape_cast %43 : vector<1x8x8xbf16> to vector<8x8xbf16>
    %45 = arith.truncf %42 : vector<8x512xf32> to vector<8x512xbf16>
    %cst_27 = arith.constant dense<0.000000e+00> : vector<8x512xf32>
    %46 = tpu.matmul %44, %45, %cst_27 {dimension_numbers = #tpu.dot_dimension_numbers<[1], [0], [0], [1], [0, 0, 1, 1], [], []>} : vector<8x8xbf16>, vector<8x512xbf16>, vector<8x512xf32> -> vector<8x512xf32>
    %47 = arith.addf %38, %46 : vector<8x512xf32>
    %c4 = arith.constant 4 : index
    %c0_28 = arith.constant 0 : index
    %c0_29 = arith.constant 0 : index
    %48 = vector.load %arg3[%c4, %c0_28, %c0_29] : memref<9x8x8xbf16, #tpu.memory_space<vmem>>, vector<1x8x8xbf16>
    %49 = vector.shape_cast %48 : vector<1x8x8xbf16> to vector<8x8xbf16>
    %50 = arith.truncf %4 : vector<8x512xf32> to vector<8x512xbf16>
    %cst_30 = arith.constant dense<0.000000e+00> : vector<8x512xf32>
    %51 = tpu.matmul %49, %50, %cst_30 {dimension_numbers = #tpu.dot_dimension_numbers<[1], [0], [0], [1], [0, 0, 1, 1], [], []>} : vector<8x8xbf16>, vector<8x512xbf16>, vector<8x512xf32> -> vector<8x512xf32>
    %52 = arith.addf %47, %51 : vector<8x512xf32>
    %c511_i32 = arith.constant 511 : i32
    %53 = tpu.dynamic_rotate %4 by %c511_i32 dim 1 : vector<8x512xf32>, i32 -> vector<8x512xf32>
    %c5 = arith.constant 5 : index
    %c0_31 = arith.constant 0 : index
    %54 = vector.load %arg6[%c5, %c0_31] : memref<16x512xf32, #tpu.memory_space<vmem>>, vector<1x512xf32>
    %55 = vector.broadcast %54 : vector<1x512xf32> to vector<8x512xf32>
    %56 = arith.mulf %53, %55 : vector<8x512xf32>
    %c5_32 = arith.constant 5 : index
    %c0_33 = arith.constant 0 : index
    %c0_34 = arith.constant 0 : index
    %57 = vector.load %arg3[%c5_32, %c0_33, %c0_34] : memref<9x8x8xbf16, #tpu.memory_space<vmem>>, vector<1x8x8xbf16>
    %58 = vector.shape_cast %57 : vector<1x8x8xbf16> to vector<8x8xbf16>
    %59 = arith.truncf %56 : vector<8x512xf32> to vector<8x512xbf16>
    %cst_35 = arith.constant dense<0.000000e+00> : vector<8x512xf32>
    %60 = tpu.matmul %58, %59, %cst_35 {dimension_numbers = #tpu.dot_dimension_numbers<[1], [0], [0], [1], [0, 0, 1, 1], [], []>} : vector<8x8xbf16>, vector<8x512xbf16>, vector<8x512xf32> -> vector<8x512xf32>
    %61 = arith.addf %52, %60 : vector<8x512xf32>
    %c497_i32 = arith.constant 497 : i32
    %62 = tpu.dynamic_rotate %4 by %c497_i32 dim 1 : vector<8x512xf32>, i32 -> vector<8x512xf32>
    %c6 = arith.constant 6 : index
    %c0_36 = arith.constant 0 : index
    %63 = vector.load %arg6[%c6, %c0_36] : memref<16x512xf32, #tpu.memory_space<vmem>>, vector<1x512xf32>
    %64 = vector.broadcast %63 : vector<1x512xf32> to vector<8x512xf32>
    %65 = arith.mulf %62, %64 : vector<8x512xf32>
    %c6_37 = arith.constant 6 : index
    %c0_38 = arith.constant 0 : index
    %c0_39 = arith.constant 0 : index
    %66 = vector.load %arg3[%c6_37, %c0_38, %c0_39] : memref<9x8x8xbf16, #tpu.memory_space<vmem>>, vector<1x8x8xbf16>
    %67 = vector.shape_cast %66 : vector<1x8x8xbf16> to vector<8x8xbf16>
    %68 = arith.truncf %65 : vector<8x512xf32> to vector<8x512xbf16>
    %cst_40 = arith.constant dense<0.000000e+00> : vector<8x512xf32>
    %69 = tpu.matmul %67, %68, %cst_40 {dimension_numbers = #tpu.dot_dimension_numbers<[1], [0], [0], [1], [0, 0, 1, 1], [], []>} : vector<8x8xbf16>, vector<8x512xbf16>, vector<8x512xf32> -> vector<8x512xf32>
    %70 = arith.addf %61, %69 : vector<8x512xf32>
    %c496_i32 = arith.constant 496 : i32
    %71 = tpu.dynamic_rotate %4 by %c496_i32 dim 1 : vector<8x512xf32>, i32 -> vector<8x512xf32>
    %c7 = arith.constant 7 : index
    %c0_41 = arith.constant 0 : index
    %72 = vector.load %arg6[%c7, %c0_41] : memref<16x512xf32, #tpu.memory_space<vmem>>, vector<1x512xf32>
    %73 = vector.broadcast %72 : vector<1x512xf32> to vector<8x512xf32>
    %74 = arith.mulf %71, %73 : vector<8x512xf32>
    %c7_42 = arith.constant 7 : index
    %c0_43 = arith.constant 0 : index
    %c0_44 = arith.constant 0 : index
    %75 = vector.load %arg3[%c7_42, %c0_43, %c0_44] : memref<9x8x8xbf16, #tpu.memory_space<vmem>>, vector<1x8x8xbf16>
    %76 = vector.shape_cast %75 : vector<1x8x8xbf16> to vector<8x8xbf16>
    %77 = arith.truncf %74 : vector<8x512xf32> to vector<8x512xbf16>
    %cst_45 = arith.constant dense<0.000000e+00> : vector<8x512xf32>
    %78 = tpu.matmul %76, %77, %cst_45 {dimension_numbers = #tpu.dot_dimension_numbers<[1], [0], [0], [1], [0, 0, 1, 1], [], []>} : vector<8x8xbf16>, vector<8x512xbf16>, vector<8x512xf32> -> vector<8x512xf32>
    %79 = arith.addf %70, %78 : vector<8x512xf32>
    %c495_i32 = arith.constant 495 : i32
    %80 = tpu.dynamic_rotate %4 by %c495_i32 dim 1 : vector<8x512xf32>, i32 -> vector<8x512xf32>
    %c8 = arith.constant 8 : index
    %c0_46 = arith.constant 0 : index
    %81 = vector.load %arg6[%c8, %c0_46] : memref<16x512xf32, #tpu.memory_space<vmem>>, vector<1x512xf32>
    %82 = vector.broadcast %81 : vector<1x512xf32> to vector<8x512xf32>
    %83 = arith.mulf %80, %82 : vector<8x512xf32>
    %c8_47 = arith.constant 8 : index
    %c0_48 = arith.constant 0 : index
    %c0_49 = arith.constant 0 : index
    %84 = vector.load %arg3[%c8_47, %c0_48, %c0_49] : memref<9x8x8xbf16, #tpu.memory_space<vmem>>, vector<1x8x8xbf16>
    %85 = vector.shape_cast %84 : vector<1x8x8xbf16> to vector<8x8xbf16>
    %86 = arith.truncf %83 : vector<8x512xf32> to vector<8x512xbf16>
    %cst_50 = arith.constant dense<0.000000e+00> : vector<8x512xf32>
    %87 = tpu.matmul %85, %86, %cst_50 {dimension_numbers = #tpu.dot_dimension_numbers<[1], [0], [0], [1], [0, 0, 1, 1], [], []>} : vector<8x8xbf16>, vector<8x512xbf16>, vector<8x512xf32> -> vector<8x512xf32>
    %88 = arith.addf %79, %87 : vector<8x512xf32>
    %cst_51 = arith.constant 0.333333343 : f32
    %89 = arith.mulf %2, %cst_51 : f32
    %90 = arith.addf %0, %89 : f32
    %cst_52 = arith.constant 0.333333343 : f32
    %91 = arith.mulf %2, %cst_52 : f32
    %92 = vector.broadcast %91 : f32 to vector<8x512xf32>
    %93 = arith.mulf %92, %88 : vector<8x512xf32>
    %94 = arith.addf %4, %93 : vector<8x512xf32>
    %95 = vector.broadcast %90 : f32 to vector<8x512xf32>
    %96 = arith.mulf %95, %5 : vector<8x512xf32>
    %97 = arith.addf %96, %8 : vector<8x512xf32>
    %c17_i32_53 = arith.constant 17 : i32
    %98 = tpu.dynamic_rotate %94 by %c17_i32_53 dim 1 : vector<8x512xf32>, i32 -> vector<8x512xf32>
    %c0_54 = arith.constant 0 : index
    %c0_55 = arith.constant 0 : index
    %99 = vector.load %arg6[%c0_54, %c0_55] : memref<16x512xf32, #tpu.memory_space<vmem>>, vector<1x512xf32>
    %100 = vector.broadcast %99 : vector<1x512xf32> to vector<8x512xf32>
    %101 = arith.mulf %98, %100 : vector<8x512xf32>
    %c0_56 = arith.constant 0 : index
    %c0_57 = arith.constant 0 : index
    %c0_58 = arith.constant 0 : index
    %102 = vector.load %arg3[%c0_56, %c0_57, %c0_58] : memref<9x8x8xbf16, #tpu.memory_space<vmem>>, vector<1x8x8xbf16>
    %103 = vector.shape_cast %102 : vector<1x8x8xbf16> to vector<8x8xbf16>
    %104 = arith.truncf %101 : vector<8x512xf32> to vector<8x512xbf16>
    %cst_59 = arith.constant dense<0.000000e+00> : vector<8x512xf32>
    %105 = tpu.matmul %103, %104, %cst_59 {dimension_numbers = #tpu.dot_dimension_numbers<[1], [0], [0], [1], [0, 0, 1, 1], [], []>} : vector<8x8xbf16>, vector<8x512xbf16>, vector<8x512xf32> -> vector<8x512xf32>
    %106 = arith.addf %97, %105 : vector<8x512xf32>
    %c16_i32_60 = arith.constant 16 : i32
    %107 = tpu.dynamic_rotate %94 by %c16_i32_60 dim 1 : vector<8x512xf32>, i32 -> vector<8x512xf32>
    %c1_61 = arith.constant 1 : index
    %c0_62 = arith.constant 0 : index
    %108 = vector.load %arg6[%c1_61, %c0_62] : memref<16x512xf32, #tpu.memory_space<vmem>>, vector<1x512xf32>
    %109 = vector.broadcast %108 : vector<1x512xf32> to vector<8x512xf32>
    %110 = arith.mulf %107, %109 : vector<8x512xf32>
    %c1_63 = arith.constant 1 : index
    %c0_64 = arith.constant 0 : index
    %c0_65 = arith.constant 0 : index
    %111 = vector.load %arg3[%c1_63, %c0_64, %c0_65] : memref<9x8x8xbf16, #tpu.memory_space<vmem>>, vector<1x8x8xbf16>
    %112 = vector.shape_cast %111 : vector<1x8x8xbf16> to vector<8x8xbf16>
    %113 = arith.truncf %110 : vector<8x512xf32> to vector<8x512xbf16>
    %cst_66 = arith.constant dense<0.000000e+00> : vector<8x512xf32>
    %114 = tpu.matmul %112, %113, %cst_66 {dimension_numbers = #tpu.dot_dimension_numbers<[1], [0], [0], [1], [0, 0, 1, 1], [], []>} : vector<8x8xbf16>, vector<8x512xbf16>, vector<8x512xf32> -> vector<8x512xf32>
    %115 = arith.addf %106, %114 : vector<8x512xf32>
    %c15_i32_67 = arith.constant 15 : i32
    %116 = tpu.dynamic_rotate %94 by %c15_i32_67 dim 1 : vector<8x512xf32>, i32 -> vector<8x512xf32>
    %c2_68 = arith.constant 2 : index
    %c0_69 = arith.constant 0 : index
    %117 = vector.load %arg6[%c2_68, %c0_69] : memref<16x512xf32, #tpu.memory_space<vmem>>, vector<1x512xf32>
    %118 = vector.broadcast %117 : vector<1x512xf32> to vector<8x512xf32>
    %119 = arith.mulf %116, %118 : vector<8x512xf32>
    %c2_70 = arith.constant 2 : index
    %c0_71 = arith.constant 0 : index
    %c0_72 = arith.constant 0 : index
    %120 = vector.load %arg3[%c2_70, %c0_71, %c0_72] : memref<9x8x8xbf16, #tpu.memory_space<vmem>>, vector<1x8x8xbf16>
    %121 = vector.shape_cast %120 : vector<1x8x8xbf16> to vector<8x8xbf16>
    %122 = arith.truncf %119 : vector<8x512xf32> to vector<8x512xbf16>
    %cst_73 = arith.constant dense<0.000000e+00> : vector<8x512xf32>
    %123 = tpu.matmul %121, %122, %cst_73 {dimension_numbers = #tpu.dot_dimension_numbers<[1], [0], [0], [1], [0, 0, 1, 1], [], []>} : vector<8x8xbf16>, vector<8x512xbf16>, vector<8x512xf32> -> vector<8x512xf32>
    %124 = arith.addf %115, %123 : vector<8x512xf32>
    %c1_i32_74 = arith.constant 1 : i32
    %125 = tpu.dynamic_rotate %94 by %c1_i32_74 dim 1 : vector<8x512xf32>, i32 -> vector<8x512xf32>
    %c3_75 = arith.constant 3 : index
    %c0_76 = arith.constant 0 : index
    %126 = vector.load %arg6[%c3_75, %c0_76] : memref<16x512xf32, #tpu.memory_space<vmem>>, vector<1x512xf32>
    %127 = vector.broadcast %126 : vector<1x512xf32> to vector<8x512xf32>
    %128 = arith.mulf %125, %127 : vector<8x512xf32>
    %c3_77 = arith.constant 3 : index
    %c0_78 = arith.constant 0 : index
    %c0_79 = arith.constant 0 : index
    %129 = vector.load %arg3[%c3_77, %c0_78, %c0_79] : memref<9x8x8xbf16, #tpu.memory_space<vmem>>, vector<1x8x8xbf16>
    %130 = vector.shape_cast %129 : vector<1x8x8xbf16> to vector<8x8xbf16>
    %131 = arith.truncf %128 : vector<8x512xf32> to vector<8x512xbf16>
    %cst_80 = arith.constant dense<0.000000e+00> : vector<8x512xf32>
    %132 = tpu.matmul %130, %131, %cst_80 {dimension_numbers = #tpu.dot_dimension_numbers<[1], [0], [0], [1], [0, 0, 1, 1], [], []>} : vector<8x8xbf16>, vector<8x512xbf16>, vector<8x512xf32> -> vector<8x512xf32>
    %133 = arith.addf %124, %132 : vector<8x512xf32>
    %c4_81 = arith.constant 4 : index
    %c0_82 = arith.constant 0 : index
    %c0_83 = arith.constant 0 : index
    %134 = vector.load %arg3[%c4_81, %c0_82, %c0_83] : memref<9x8x8xbf16, #tpu.memory_space<vmem>>, vector<1x8x8xbf16>
    %135 = vector.shape_cast %134 : vector<1x8x8xbf16> to vector<8x8xbf16>
    %136 = arith.truncf %94 : vector<8x512xf32> to vector<8x512xbf16>
    %cst_84 = arith.constant dense<0.000000e+00> : vector<8x512xf32>
    %137 = tpu.matmul %135, %136, %cst_84 {dimension_numbers = #tpu.dot_dimension_numbers<[1], [0], [0], [1], [0, 0, 1, 1], [], []>} : vector<8x8xbf16>, vector<8x512xbf16>, vector<8x512xf32> -> vector<8x512xf32>
    %138 = arith.addf %133, %137 : vector<8x512xf32>
    %c511_i32_85 = arith.constant 511 : i32
    %139 = tpu.dynamic_rotate %94 by %c511_i32_85 dim 1 : vector<8x512xf32>, i32 -> vector<8x512xf32>
    %c5_86 = arith.constant 5 : index
    %c0_87 = arith.constant 0 : index
    %140 = vector.load %arg6[%c5_86, %c0_87] : memref<16x512xf32, #tpu.memory_space<vmem>>, vector<1x512xf32>
    %141 = vector.broadcast %140 : vector<1x512xf32> to vector<8x512xf32>
    %142 = arith.mulf %139, %141 : vector<8x512xf32>
    %c5_88 = arith.constant 5 : index
    %c0_89 = arith.constant 0 : index
    %c0_90 = arith.constant 0 : index
    %143 = vector.load %arg3[%c5_88, %c0_89, %c0_90] : memref<9x8x8xbf16, #tpu.memory_space<vmem>>, vector<1x8x8xbf16>
    %144 = vector.shape_cast %143 : vector<1x8x8xbf16> to vector<8x8xbf16>
    %145 = arith.truncf %142 : vector<8x512xf32> to vector<8x512xbf16>
    %cst_91 = arith.constant dense<0.000000e+00> : vector<8x512xf32>
    %146 = tpu.matmul %144, %145, %cst_91 {dimension_numbers = #tpu.dot_dimension_numbers<[1], [0], [0], [1], [0, 0, 1, 1], [], []>} : vector<8x8xbf16>, vector<8x512xbf16>, vector<8x512xf32> -> vector<8x512xf32>
    %147 = arith.addf %138, %146 : vector<8x512xf32>
    %c497_i32_92 = arith.constant 497 : i32
    %148 = tpu.dynamic_rotate %94 by %c497_i32_92 dim 1 : vector<8x512xf32>, i32 -> vector<8x512xf32>
    %c6_93 = arith.constant 6 : index
    %c0_94 = arith.constant 0 : index
    %149 = vector.load %arg6[%c6_93, %c0_94] : memref<16x512xf32, #tpu.memory_space<vmem>>, vector<1x512xf32>
    %150 = vector.broadcast %149 : vector<1x512xf32> to vector<8x512xf32>
    %151 = arith.mulf %148, %150 : vector<8x512xf32>
    %c6_95 = arith.constant 6 : index
    %c0_96 = arith.constant 0 : index
    %c0_97 = arith.constant 0 : index
    %152 = vector.load %arg3[%c6_95, %c0_96, %c0_97] : memref<9x8x8xbf16, #tpu.memory_space<vmem>>, vector<1x8x8xbf16>
    %153 = vector.shape_cast %152 : vector<1x8x8xbf16> to vector<8x8xbf16>
    %154 = arith.truncf %151 : vector<8x512xf32> to vector<8x512xbf16>
    %cst_98 = arith.constant dense<0.000000e+00> : vector<8x512xf32>
    %155 = tpu.matmul %153, %154, %cst_98 {dimension_numbers = #tpu.dot_dimension_numbers<[1], [0], [0], [1], [0, 0, 1, 1], [], []>} : vector<8x8xbf16>, vector<8x512xbf16>, vector<8x512xf32> -> vector<8x512xf32>
    %156 = arith.addf %147, %155 : vector<8x512xf32>
    %c496_i32_99 = arith.constant 496 : i32
    %157 = tpu.dynamic_rotate %94 by %c496_i32_99 dim 1 : vector<8x512xf32>, i32 -> vector<8x512xf32>
    %c7_100 = arith.constant 7 : index
    %c0_101 = arith.constant 0 : index
    %158 = vector.load %arg6[%c7_100, %c0_101] : memref<16x512xf32, #tpu.memory_space<vmem>>, vector<1x512xf32>
    %159 = vector.broadcast %158 : vector<1x512xf32> to vector<8x512xf32>
    %160 = arith.mulf %157, %159 : vector<8x512xf32>
    %c7_102 = arith.constant 7 : index
    %c0_103 = arith.constant 0 : index
    %c0_104 = arith.constant 0 : index
    %161 = vector.load %arg3[%c7_102, %c0_103, %c0_104] : memref<9x8x8xbf16, #tpu.memory_space<vmem>>, vector<1x8x8xbf16>
    %162 = vector.shape_cast %161 : vector<1x8x8xbf16> to vector<8x8xbf16>
    %163 = arith.truncf %160 : vector<8x512xf32> to vector<8x512xbf16>
    %cst_105 = arith.constant dense<0.000000e+00> : vector<8x512xf32>
    %164 = tpu.matmul %162, %163, %cst_105 {dimension_numbers = #tpu.dot_dimension_numbers<[1], [0], [0], [1], [0, 0, 1, 1], [], []>} : vector<8x8xbf16>, vector<8x512xbf16>, vector<8x512xf32> -> vector<8x512xf32>
    %165 = arith.addf %156, %164 : vector<8x512xf32>
    %c495_i32_106 = arith.constant 495 : i32
    %166 = tpu.dynamic_rotate %94 by %c495_i32_106 dim 1 : vector<8x512xf32>, i32 -> vector<8x512xf32>
    %c8_107 = arith.constant 8 : index
    %c0_108 = arith.constant 0 : index
    %167 = vector.load %arg6[%c8_107, %c0_108] : memref<16x512xf32, #tpu.memory_space<vmem>>, vector<1x512xf32>
    %168 = vector.broadcast %167 : vector<1x512xf32> to vector<8x512xf32>
    %169 = arith.mulf %166, %168 : vector<8x512xf32>
    %c8_109 = arith.constant 8 : index
    %c0_110 = arith.constant 0 : index
    %c0_111 = arith.constant 0 : index
    %170 = vector.load %arg3[%c8_109, %c0_110, %c0_111] : memref<9x8x8xbf16, #tpu.memory_space<vmem>>, vector<1x8x8xbf16>
    %171 = vector.shape_cast %170 : vector<1x8x8xbf16> to vector<8x8xbf16>
    %172 = arith.truncf %169 : vector<8x512xf32> to vector<8x512xbf16>
    %cst_112 = arith.constant dense<0.000000e+00> : vector<8x512xf32>
    %173 = tpu.matmul %171, %172, %cst_112 {dimension_numbers = #tpu.dot_dimension_numbers<[1], [0], [0], [1], [0, 0, 1, 1], [], []>} : vector<8x8xbf16>, vector<8x512xbf16>, vector<8x512xf32> -> vector<8x512xf32>
    %174 = arith.addf %165, %173 : vector<8x512xf32>
    %cst_113 = arith.constant 2.000000e+00 : f32
    %175 = arith.mulf %2, %cst_113 : f32
    %cst_114 = arith.constant 0.333333343 : f32
    %176 = arith.mulf %175, %cst_114 : f32
    %177 = arith.addf %0, %176 : f32
    %cst_115 = arith.constant 0.333333343 : f32
    %178 = vector.broadcast %cst_115 : f32 to vector<8x512xf32>
    %179 = arith.mulf %178, %88 : vector<8x512xf32>
    %180 = arith.subf %174, %179 : vector<8x512xf32>
    %181 = vector.broadcast %2 : f32 to vector<8x512xf32>
    %182 = arith.mulf %181, %180 : vector<8x512xf32>
    %183 = arith.addf %4, %182 : vector<8x512xf32>
    %184 = vector.broadcast %177 : f32 to vector<8x512xf32>
    %185 = arith.mulf %184, %5 : vector<8x512xf32>
    %186 = arith.addf %185, %8 : vector<8x512xf32>
    %c17_i32_116 = arith.constant 17 : i32
    %187 = tpu.dynamic_rotate %183 by %c17_i32_116 dim 1 : vector<8x512xf32>, i32 -> vector<8x512xf32>
    %c0_117 = arith.constant 0 : index
    %c0_118 = arith.constant 0 : index
    %188 = vector.load %arg6[%c0_117, %c0_118] : memref<16x512xf32, #tpu.memory_space<vmem>>, vector<1x512xf32>
    %189 = vector.broadcast %188 : vector<1x512xf32> to vector<8x512xf32>
    %190 = arith.mulf %187, %189 : vector<8x512xf32>
    %c0_119 = arith.constant 0 : index
    %c0_120 = arith.constant 0 : index
    %c0_121 = arith.constant 0 : index
    %191 = vector.load %arg3[%c0_119, %c0_120, %c0_121] : memref<9x8x8xbf16, #tpu.memory_space<vmem>>, vector<1x8x8xbf16>
    %192 = vector.shape_cast %191 : vector<1x8x8xbf16> to vector<8x8xbf16>
    %193 = arith.truncf %190 : vector<8x512xf32> to vector<8x512xbf16>
    %cst_122 = arith.constant dense<0.000000e+00> : vector<8x512xf32>
    %194 = tpu.matmul %192, %193, %cst_122 {dimension_numbers = #tpu.dot_dimension_numbers<[1], [0], [0], [1], [0, 0, 1, 1], [], []>} : vector<8x8xbf16>, vector<8x512xbf16>, vector<8x512xf32> -> vector<8x512xf32>
    %195 = arith.addf %186, %194 : vector<8x512xf32>
    %c16_i32_123 = arith.constant 16 : i32
    %196 = tpu.dynamic_rotate %183 by %c16_i32_123 dim 1 : vector<8x512xf32>, i32 -> vector<8x512xf32>
    %c1_124 = arith.constant 1 : index
    %c0_125 = arith.constant 0 : index
    %197 = vector.load %arg6[%c1_124, %c0_125] : memref<16x512xf32, #tpu.memory_space<vmem>>, vector<1x512xf32>
    %198 = vector.broadcast %197 : vector<1x512xf32> to vector<8x512xf32>
    %199 = arith.mulf %196, %198 : vector<8x512xf32>
    %c1_126 = arith.constant 1 : index
    %c0_127 = arith.constant 0 : index
    %c0_128 = arith.constant 0 : index
    %200 = vector.load %arg3[%c1_126, %c0_127, %c0_128] : memref<9x8x8xbf16, #tpu.memory_space<vmem>>, vector<1x8x8xbf16>
    %201 = vector.shape_cast %200 : vector<1x8x8xbf16> to vector<8x8xbf16>
    %202 = arith.truncf %199 : vector<8x512xf32> to vector<8x512xbf16>
    %cst_129 = arith.constant dense<0.000000e+00> : vector<8x512xf32>
    %203 = tpu.matmul %201, %202, %cst_129 {dimension_numbers = #tpu.dot_dimension_numbers<[1], [0], [0], [1], [0, 0, 1, 1], [], []>} : vector<8x8xbf16>, vector<8x512xbf16>, vector<8x512xf32> -> vector<8x512xf32>
    %204 = arith.addf %195, %203 : vector<8x512xf32>
    %c15_i32_130 = arith.constant 15 : i32
    %205 = tpu.dynamic_rotate %183 by %c15_i32_130 dim 1 : vector<8x512xf32>, i32 -> vector<8x512xf32>
    %c2_131 = arith.constant 2 : index
    %c0_132 = arith.constant 0 : index
    %206 = vector.load %arg6[%c2_131, %c0_132] : memref<16x512xf32, #tpu.memory_space<vmem>>, vector<1x512xf32>
    %207 = vector.broadcast %206 : vector<1x512xf32> to vector<8x512xf32>
    %208 = arith.mulf %205, %207 : vector<8x512xf32>
    %c2_133 = arith.constant 2 : index
    %c0_134 = arith.constant 0 : index
    %c0_135 = arith.constant 0 : index
    %209 = vector.load %arg3[%c2_133, %c0_134, %c0_135] : memref<9x8x8xbf16, #tpu.memory_space<vmem>>, vector<1x8x8xbf16>
    %210 = vector.shape_cast %209 : vector<1x8x8xbf16> to vector<8x8xbf16>
    %211 = arith.truncf %208 : vector<8x512xf32> to vector<8x512xbf16>
    %cst_136 = arith.constant dense<0.000000e+00> : vector<8x512xf32>
    %212 = tpu.matmul %210, %211, %cst_136 {dimension_numbers = #tpu.dot_dimension_numbers<[1], [0], [0], [1], [0, 0, 1, 1], [], []>} : vector<8x8xbf16>, vector<8x512xbf16>, vector<8x512xf32> -> vector<8x512xf32>
    %213 = arith.addf %204, %212 : vector<8x512xf32>
    %c1_i32_137 = arith.constant 1 : i32
    %214 = tpu.dynamic_rotate %183 by %c1_i32_137 dim 1 : vector<8x512xf32>, i32 -> vector<8x512xf32>
    %c3_138 = arith.constant 3 : index
    %c0_139 = arith.constant 0 : index
    %215 = vector.load %arg6[%c3_138, %c0_139] : memref<16x512xf32, #tpu.memory_space<vmem>>, vector<1x512xf32>
    %216 = vector.broadcast %215 : vector<1x512xf32> to vector<8x512xf32>
    %217 = arith.mulf %214, %216 : vector<8x512xf32>
    %c3_140 = arith.constant 3 : index
    %c0_141 = arith.constant 0 : index
    %c0_142 = arith.constant 0 : index
    %218 = vector.load %arg3[%c3_140, %c0_141, %c0_142] : memref<9x8x8xbf16, #tpu.memory_space<vmem>>, vector<1x8x8xbf16>
    %219 = vector.shape_cast %218 : vector<1x8x8xbf16> to vector<8x8xbf16>
    %220 = arith.truncf %217 : vector<8x512xf32> to vector<8x512xbf16>
    %cst_143 = arith.constant dense<0.000000e+00> : vector<8x512xf32>
    %221 = tpu.matmul %219, %220, %cst_143 {dimension_numbers = #tpu.dot_dimension_numbers<[1], [0], [0], [1], [0, 0, 1, 1], [], []>} : vector<8x8xbf16>, vector<8x512xbf16>, vector<8x512xf32> -> vector<8x512xf32>
    %222 = arith.addf %213, %221 : vector<8x512xf32>
    %c4_144 = arith.constant 4 : index
    %c0_145 = arith.constant 0 : index
    %c0_146 = arith.constant 0 : index
    %223 = vector.load %arg3[%c4_144, %c0_145, %c0_146] : memref<9x8x8xbf16, #tpu.memory_space<vmem>>, vector<1x8x8xbf16>
    %224 = vector.shape_cast %223 : vector<1x8x8xbf16> to vector<8x8xbf16>
    %225 = arith.truncf %183 : vector<8x512xf32> to vector<8x512xbf16>
    %cst_147 = arith.constant dense<0.000000e+00> : vector<8x512xf32>
    %226 = tpu.matmul %224, %225, %cst_147 {dimension_numbers = #tpu.dot_dimension_numbers<[1], [0], [0], [1], [0, 0, 1, 1], [], []>} : vector<8x8xbf16>, vector<8x512xbf16>, vector<8x512xf32> -> vector<8x512xf32>
    %227 = arith.addf %222, %226 : vector<8x512xf32>
    %c511_i32_148 = arith.constant 511 : i32
    %228 = tpu.dynamic_rotate %183 by %c511_i32_148 dim 1 : vector<8x512xf32>, i32 -> vector<8x512xf32>
    %c5_149 = arith.constant 5 : index
    %c0_150 = arith.constant 0 : index
    %229 = vector.load %arg6[%c5_149, %c0_150] : memref<16x512xf32, #tpu.memory_space<vmem>>, vector<1x512xf32>
    %230 = vector.broadcast %229 : vector<1x512xf32> to vector<8x512xf32>
    %231 = arith.mulf %228, %230 : vector<8x512xf32>
    %c5_151 = arith.constant 5 : index
    %c0_152 = arith.constant 0 : index
    %c0_153 = arith.constant 0 : index
    %232 = vector.load %arg3[%c5_151, %c0_152, %c0_153] : memref<9x8x8xbf16, #tpu.memory_space<vmem>>, vector<1x8x8xbf16>
    %233 = vector.shape_cast %232 : vector<1x8x8xbf16> to vector<8x8xbf16>
    %234 = arith.truncf %231 : vector<8x512xf32> to vector<8x512xbf16>
    %cst_154 = arith.constant dense<0.000000e+00> : vector<8x512xf32>
    %235 = tpu.matmul %233, %234, %cst_154 {dimension_numbers = #tpu.dot_dimension_numbers<[1], [0], [0], [1], [0, 0, 1, 1], [], []>} : vector<8x8xbf16>, vector<8x512xbf16>, vector<8x512xf32> -> vector<8x512xf32>
    %236 = arith.addf %227, %235 : vector<8x512xf32>
    %c497_i32_155 = arith.constant 497 : i32
    %237 = tpu.dynamic_rotate %183 by %c497_i32_155 dim 1 : vector<8x512xf32>, i32 -> vector<8x512xf32>
    %c6_156 = arith.constant 6 : index
    %c0_157 = arith.constant 0 : index
    %238 = vector.load %arg6[%c6_156, %c0_157] : memref<16x512xf32, #tpu.memory_space<vmem>>, vector<1x512xf32>
    %239 = vector.broadcast %238 : vector<1x512xf32> to vector<8x512xf32>
    %240 = arith.mulf %237, %239 : vector<8x512xf32>
    %c6_158 = arith.constant 6 : index
    %c0_159 = arith.constant 0 : index
    %c0_160 = arith.constant 0 : index
    %241 = vector.load %arg3[%c6_158, %c0_159, %c0_160] : memref<9x8x8xbf16, #tpu.memory_space<vmem>>, vector<1x8x8xbf16>
    %242 = vector.shape_cast %241 : vector<1x8x8xbf16> to vector<8x8xbf16>
    %243 = arith.truncf %240 : vector<8x512xf32> to vector<8x512xbf16>
    %cst_161 = arith.constant dense<0.000000e+00> : vector<8x512xf32>
    %244 = tpu.matmul %242, %243, %cst_161 {dimension_numbers = #tpu.dot_dimension_numbers<[1], [0], [0], [1], [0, 0, 1, 1], [], []>} : vector<8x8xbf16>, vector<8x512xbf16>, vector<8x512xf32> -> vector<8x512xf32>
    %245 = arith.addf %236, %244 : vector<8x512xf32>
    %c496_i32_162 = arith.constant 496 : i32
    %246 = tpu.dynamic_rotate %183 by %c496_i32_162 dim 1 : vector<8x512xf32>, i32 -> vector<8x512xf32>
    %c7_163 = arith.constant 7 : index
    %c0_164 = arith.constant 0 : index
    %247 = vector.load %arg6[%c7_163, %c0_164] : memref<16x512xf32, #tpu.memory_space<vmem>>, vector<1x512xf32>
    %248 = vector.broadcast %247 : vector<1x512xf32> to vector<8x512xf32>
    %249 = arith.mulf %246, %248 : vector<8x512xf32>
    %c7_165 = arith.constant 7 : index
    %c0_166 = arith.constant 0 : index
    %c0_167 = arith.constant 0 : index
    %250 = vector.load %arg3[%c7_165, %c0_166, %c0_167] : memref<9x8x8xbf16, #tpu.memory_space<vmem>>, vector<1x8x8xbf16>
    %251 = vector.shape_cast %250 : vector<1x8x8xbf16> to vector<8x8xbf16>
    %252 = arith.truncf %249 : vector<8x512xf32> to vector<8x512xbf16>
    %cst_168 = arith.constant dense<0.000000e+00> : vector<8x512xf32>
    %253 = tpu.matmul %251, %252, %cst_168 {dimension_numbers = #tpu.dot_dimension_numbers<[1], [0], [0], [1], [0, 0, 1, 1], [], []>} : vector<8x8xbf16>, vector<8x512xbf16>, vector<8x512xf32> -> vector<8x512xf32>
    %254 = arith.addf %245, %253 : vector<8x512xf32>
    %c495_i32_169 = arith.constant 495 : i32
    %255 = tpu.dynamic_rotate %183 by %c495_i32_169 dim 1 : vector<8x512xf32>, i32 -> vector<8x512xf32>
    %c8_170 = arith.constant 8 : index
    %c0_171 = arith.constant 0 : index
    %256 = vector.load %arg6[%c8_170, %c0_171] : memref<16x512xf32, #tpu.memory_space<vmem>>, vector<1x512xf32>
    %257 = vector.broadcast %256 : vector<1x512xf32> to vector<8x512xf32>
    %258 = arith.mulf %255, %257 : vector<8x512xf32>
    %c8_172 = arith.constant 8 : index
    %c0_173 = arith.constant 0 : index
    %c0_174 = arith.constant 0 : index
    %259 = vector.load %arg3[%c8_172, %c0_173, %c0_174] : memref<9x8x8xbf16, #tpu.memory_space<vmem>>, vector<1x8x8xbf16>
    %260 = vector.shape_cast %259 : vector<1x8x8xbf16> to vector<8x8xbf16>
    %261 = arith.truncf %258 : vector<8x512xf32> to vector<8x512xbf16>
    %cst_175 = arith.constant dense<0.000000e+00> : vector<8x512xf32>
    %262 = tpu.matmul %260, %261, %cst_175 {dimension_numbers = #tpu.dot_dimension_numbers<[1], [0], [0], [1], [0, 0, 1, 1], [], []>} : vector<8x8xbf16>, vector<8x512xbf16>, vector<8x512xf32> -> vector<8x512xf32>
    %263 = arith.addf %254, %262 : vector<8x512xf32>
    %264 = arith.subf %88, %174 : vector<8x512xf32>
    %265 = arith.addf %264, %263 : vector<8x512xf32>
    %266 = vector.broadcast %2 : f32 to vector<8x512xf32>
    %267 = arith.mulf %266, %265 : vector<8x512xf32>
    %268 = arith.addf %4, %267 : vector<8x512xf32>
    %269 = vector.broadcast %1 : f32 to vector<8x512xf32>
    %270 = arith.mulf %269, %5 : vector<8x512xf32>
    %271 = arith.addf %270, %8 : vector<8x512xf32>
    %c17_i32_176 = arith.constant 17 : i32
    %272 = tpu.dynamic_rotate %268 by %c17_i32_176 dim 1 : vector<8x512xf32>, i32 -> vector<8x512xf32>
    %c0_177 = arith.constant 0 : index
    %c0_178 = arith.constant 0 : index
    %273 = vector.load %arg6[%c0_177, %c0_178] : memref<16x512xf32, #tpu.memory_space<vmem>>, vector<1x512xf32>
    %274 = vector.broadcast %273 : vector<1x512xf32> to vector<8x512xf32>
    %275 = arith.mulf %272, %274 : vector<8x512xf32>
    %c0_179 = arith.constant 0 : index
    %c0_180 = arith.constant 0 : index
    %c0_181 = arith.constant 0 : index
    %276 = vector.load %arg3[%c0_179, %c0_180, %c0_181] : memref<9x8x8xbf16, #tpu.memory_space<vmem>>, vector<1x8x8xbf16>
    %277 = vector.shape_cast %276 : vector<1x8x8xbf16> to vector<8x8xbf16>
    %278 = arith.truncf %275 : vector<8x512xf32> to vector<8x512xbf16>
    %cst_182 = arith.constant dense<0.000000e+00> : vector<8x512xf32>
    %279 = tpu.matmul %277, %278, %cst_182 {dimension_numbers = #tpu.dot_dimension_numbers<[1], [0], [0], [1], [0, 0, 1, 1], [], []>} : vector<8x8xbf16>, vector<8x512xbf16>, vector<8x512xf32> -> vector<8x512xf32>
    %280 = arith.addf %271, %279 : vector<8x512xf32>
    %c16_i32_183 = arith.constant 16 : i32
    %281 = tpu.dynamic_rotate %268 by %c16_i32_183 dim 1 : vector<8x512xf32>, i32 -> vector<8x512xf32>
    %c1_184 = arith.constant 1 : index
    %c0_185 = arith.constant 0 : index
    %282 = vector.load %arg6[%c1_184, %c0_185] : memref<16x512xf32, #tpu.memory_space<vmem>>, vector<1x512xf32>
    %283 = vector.broadcast %282 : vector<1x512xf32> to vector<8x512xf32>
    %284 = arith.mulf %281, %283 : vector<8x512xf32>
    %c1_186 = arith.constant 1 : index
    %c0_187 = arith.constant 0 : index
    %c0_188 = arith.constant 0 : index
    %285 = vector.load %arg3[%c1_186, %c0_187, %c0_188] : memref<9x8x8xbf16, #tpu.memory_space<vmem>>, vector<1x8x8xbf16>
    %286 = vector.shape_cast %285 : vector<1x8x8xbf16> to vector<8x8xbf16>
    %287 = arith.truncf %284 : vector<8x512xf32> to vector<8x512xbf16>
    %cst_189 = arith.constant dense<0.000000e+00> : vector<8x512xf32>
    %288 = tpu.matmul %286, %287, %cst_189 {dimension_numbers = #tpu.dot_dimension_numbers<[1], [0], [0], [1], [0, 0, 1, 1], [], []>} : vector<8x8xbf16>, vector<8x512xbf16>, vector<8x512xf32> -> vector<8x512xf32>
    %289 = arith.addf %280, %288 : vector<8x512xf32>
    %c15_i32_190 = arith.constant 15 : i32
    %290 = tpu.dynamic_rotate %268 by %c15_i32_190 dim 1 : vector<8x512xf32>, i32 -> vector<8x512xf32>
    %c2_191 = arith.constant 2 : index
    %c0_192 = arith.constant 0 : index
    %291 = vector.load %arg6[%c2_191, %c0_192] : memref<16x512xf32, #tpu.memory_space<vmem>>, vector<1x512xf32>
    %292 = vector.broadcast %291 : vector<1x512xf32> to vector<8x512xf32>
    %293 = arith.mulf %290, %292 : vector<8x512xf32>
    %c2_193 = arith.constant 2 : index
    %c0_194 = arith.constant 0 : index
    %c0_195 = arith.constant 0 : index
    %294 = vector.load %arg3[%c2_193, %c0_194, %c0_195] : memref<9x8x8xbf16, #tpu.memory_space<vmem>>, vector<1x8x8xbf16>
    %295 = vector.shape_cast %294 : vector<1x8x8xbf16> to vector<8x8xbf16>
    %296 = arith.truncf %293 : vector<8x512xf32> to vector<8x512xbf16>
    %cst_196 = arith.constant dense<0.000000e+00> : vector<8x512xf32>
    %297 = tpu.matmul %295, %296, %cst_196 {dimension_numbers = #tpu.dot_dimension_numbers<[1], [0], [0], [1], [0, 0, 1, 1], [], []>} : vector<8x8xbf16>, vector<8x512xbf16>, vector<8x512xf32> -> vector<8x512xf32>
    %298 = arith.addf %289, %297 : vector<8x512xf32>
    %c1_i32_197 = arith.constant 1 : i32
    %299 = tpu.dynamic_rotate %268 by %c1_i32_197 dim 1 : vector<8x512xf32>, i32 -> vector<8x512xf32>
    %c3_198 = arith.constant 3 : index
    %c0_199 = arith.constant 0 : index
    %300 = vector.load %arg6[%c3_198, %c0_199] : memref<16x512xf32, #tpu.memory_space<vmem>>, vector<1x512xf32>
    %301 = vector.broadcast %300 : vector<1x512xf32> to vector<8x512xf32>
    %302 = arith.mulf %299, %301 : vector<8x512xf32>
    %c3_200 = arith.constant 3 : index
    %c0_201 = arith.constant 0 : index
    %c0_202 = arith.constant 0 : index
    %303 = vector.load %arg3[%c3_200, %c0_201, %c0_202] : memref<9x8x8xbf16, #tpu.memory_space<vmem>>, vector<1x8x8xbf16>
    %304 = vector.shape_cast %303 : vector<1x8x8xbf16> to vector<8x8xbf16>
    %305 = arith.truncf %302 : vector<8x512xf32> to vector<8x512xbf16>
    %cst_203 = arith.constant dense<0.000000e+00> : vector<8x512xf32>
    %306 = tpu.matmul %304, %305, %cst_203 {dimension_numbers = #tpu.dot_dimension_numbers<[1], [0], [0], [1], [0, 0, 1, 1], [], []>} : vector<8x8xbf16>, vector<8x512xbf16>, vector<8x512xf32> -> vector<8x512xf32>
    %307 = arith.addf %298, %306 : vector<8x512xf32>
    %c4_204 = arith.constant 4 : index
    %c0_205 = arith.constant 0 : index
    %c0_206 = arith.constant 0 : index
    %308 = vector.load %arg3[%c4_204, %c0_205, %c0_206] : memref<9x8x8xbf16, #tpu.memory_space<vmem>>, vector<1x8x8xbf16>
    %309 = vector.shape_cast %308 : vector<1x8x8xbf16> to vector<8x8xbf16>
    %310 = arith.truncf %268 : vector<8x512xf32> to vector<8x512xbf16>
    %cst_207 = arith.constant dense<0.000000e+00> : vector<8x512xf32>
    %311 = tpu.matmul %309, %310, %cst_207 {dimension_numbers = #tpu.dot_dimension_numbers<[1], [0], [0], [1], [0, 0, 1, 1], [], []>} : vector<8x8xbf16>, vector<8x512xbf16>, vector<8x512xf32> -> vector<8x512xf32>
    %312 = arith.addf %307, %311 : vector<8x512xf32>
    %c511_i32_208 = arith.constant 511 : i32
    %313 = tpu.dynamic_rotate %268 by %c511_i32_208 dim 1 : vector<8x512xf32>, i32 -> vector<8x512xf32>
    %c5_209 = arith.constant 5 : index
    %c0_210 = arith.constant 0 : index
    %314 = vector.load %arg6[%c5_209, %c0_210] : memref<16x512xf32, #tpu.memory_space<vmem>>, vector<1x512xf32>
    %315 = vector.broadcast %314 : vector<1x512xf32> to vector<8x512xf32>
    %316 = arith.mulf %313, %315 : vector<8x512xf32>
    %c5_211 = arith.constant 5 : index
    %c0_212 = arith.constant 0 : index
    %c0_213 = arith.constant 0 : index
    %317 = vector.load %arg3[%c5_211, %c0_212, %c0_213] : memref<9x8x8xbf16, #tpu.memory_space<vmem>>, vector<1x8x8xbf16>
    %318 = vector.shape_cast %317 : vector<1x8x8xbf16> to vector<8x8xbf16>
    %319 = arith.truncf %316 : vector<8x512xf32> to vector<8x512xbf16>
    %cst_214 = arith.constant dense<0.000000e+00> : vector<8x512xf32>
    %320 = tpu.matmul %318, %319, %cst_214 {dimension_numbers = #tpu.dot_dimension_numbers<[1], [0], [0], [1], [0, 0, 1, 1], [], []>} : vector<8x8xbf16>, vector<8x512xbf16>, vector<8x512xf32> -> vector<8x512xf32>
    %321 = arith.addf %312, %320 : vector<8x512xf32>
    %c497_i32_215 = arith.constant 497 : i32
    %322 = tpu.dynamic_rotate %268 by %c497_i32_215 dim 1 : vector<8x512xf32>, i32 -> vector<8x512xf32>
    %c6_216 = arith.constant 6 : index
    %c0_217 = arith.constant 0 : index
    %323 = vector.load %arg6[%c6_216, %c0_217] : memref<16x512xf32, #tpu.memory_space<vmem>>, vector<1x512xf32>
    %324 = vector.broadcast %323 : vector<1x512xf32> to vector<8x512xf32>
    %325 = arith.mulf %322, %324 : vector<8x512xf32>
    %c6_218 = arith.constant 6 : index
    %c0_219 = arith.constant 0 : index
    %c0_220 = arith.constant 0 : index
    %326 = vector.load %arg3[%c6_218, %c0_219, %c0_220] : memref<9x8x8xbf16, #tpu.memory_space<vmem>>, vector<1x8x8xbf16>
    %327 = vector.shape_cast %326 : vector<1x8x8xbf16> to vector<8x8xbf16>
    %328 = arith.truncf %325 : vector<8x512xf32> to vector<8x512xbf16>
    %cst_221 = arith.constant dense<0.000000e+00> : vector<8x512xf32>
    %329 = tpu.matmul %327, %328, %cst_221 {dimension_numbers = #tpu.dot_dimension_numbers<[1], [0], [0], [1], [0, 0, 1, 1], [], []>} : vector<8x8xbf16>, vector<8x512xbf16>, vector<8x512xf32> -> vector<8x512xf32>
    %330 = arith.addf %321, %329 : vector<8x512xf32>
    %c496_i32_222 = arith.constant 496 : i32
    %331 = tpu.dynamic_rotate %268 by %c496_i32_222 dim 1 : vector<8x512xf32>, i32 -> vector<8x512xf32>
    %c7_223 = arith.constant 7 : index
    %c0_224 = arith.constant 0 : index
    %332 = vector.load %arg6[%c7_223, %c0_224] : memref<16x512xf32, #tpu.memory_space<vmem>>, vector<1x512xf32>
    %333 = vector.broadcast %332 : vector<1x512xf32> to vector<8x512xf32>
    %334 = arith.mulf %331, %333 : vector<8x512xf32>
    %c7_225 = arith.constant 7 : index
    %c0_226 = arith.constant 0 : index
    %c0_227 = arith.constant 0 : index
    %335 = vector.load %arg3[%c7_225, %c0_226, %c0_227] : memref<9x8x8xbf16, #tpu.memory_space<vmem>>, vector<1x8x8xbf16>
    %336 = vector.shape_cast %335 : vector<1x8x8xbf16> to vector<8x8xbf16>
    %337 = arith.truncf %334 : vector<8x512xf32> to vector<8x512xbf16>
    %cst_228 = arith.constant dense<0.000000e+00> : vector<8x512xf32>
    %338 = tpu.matmul %336, %337, %cst_228 {dimension_numbers = #tpu.dot_dimension_numbers<[1], [0], [0], [1], [0, 0, 1, 1], [], []>} : vector<8x8xbf16>, vector<8x512xbf16>, vector<8x512xf32> -> vector<8x512xf32>
    %339 = arith.addf %330, %338 : vector<8x512xf32>
    %c495_i32_229 = arith.constant 495 : i32
    %340 = tpu.dynamic_rotate %268 by %c495_i32_229 dim 1 : vector<8x512xf32>, i32 -> vector<8x512xf32>
    %c8_230 = arith.constant 8 : index
    %c0_231 = arith.constant 0 : index
    %341 = vector.load %arg6[%c8_230, %c0_231] : memref<16x512xf32, #tpu.memory_space<vmem>>, vector<1x512xf32>
    %342 = vector.broadcast %341 : vector<1x512xf32> to vector<8x512xf32>
    %343 = arith.mulf %340, %342 : vector<8x512xf32>
    %c8_232 = arith.constant 8 : index
    %c0_233 = arith.constant 0 : index
    %c0_234 = arith.constant 0 : index
    %344 = vector.load %arg3[%c8_232, %c0_233, %c0_234] : memref<9x8x8xbf16, #tpu.memory_space<vmem>>, vector<1x8x8xbf16>
    %345 = vector.shape_cast %344 : vector<1x8x8xbf16> to vector<8x8xbf16>
    %346 = arith.truncf %343 : vector<8x512xf32> to vector<8x512xbf16>
    %cst_235 = arith.constant dense<0.000000e+00> : vector<8x512xf32>
    %347 = tpu.matmul %345, %346, %cst_235 {dimension_numbers = #tpu.dot_dimension_numbers<[1], [0], [0], [1], [0, 0, 1, 1], [], []>} : vector<8x8xbf16>, vector<8x512xbf16>, vector<8x512xf32> -> vector<8x512xf32>
    %348 = arith.addf %339, %347 : vector<8x512xf32>
    %349 = arith.addf %174, %263 : vector<8x512xf32>
    %cst_236 = arith.constant 3.000000e+00 : f32
    %350 = vector.broadcast %cst_236 : f32 to vector<8x512xf32>
    %351 = arith.mulf %350, %349 : vector<8x512xf32>
    %352 = arith.addf %88, %351 : vector<8x512xf32>
    %353 = arith.addf %352, %348 : vector<8x512xf32>
    %cst_237 = arith.constant 1.250000e-01 : f32
    %354 = arith.mulf %2, %cst_237 : f32
    %355 = vector.broadcast %354 : f32 to vector<8x512xf32>
    %356 = arith.mulf %353, %355 : vector<8x512xf32>
    %357 = arith.addf %4, %356 : vector<8x512xf32>
    %c0_238 = arith.constant 0 : index
    %c0_239 = arith.constant 0 : index
    %c0_240 = arith.constant 0 : index
    %358 = vector.load %arg7[%c0_238, %c0_239, %c0_240] : memref<1x8x512xf32, #tpu.memory_space<vmem>>, vector<1x8x512xf32>
    %359 = vector.shape_cast %358 : vector<1x8x512xf32> to vector<8x512xf32>
    %360 = vector.shape_cast %357 : vector<8x512xf32> to vector<1x8x512xf32>
    tpu.vector_store %arg7[%c0_238, %c0_239, %c0_240], %360 {strides = array<i32>} : memref<1x8x512xf32, #tpu.memory_space<vmem>>, vector<1x8x512xf32>,
    return
  }
  func.func @transform_0(%arg0: i32) -> i32 {
    %c0_i32 = arith.constant 0 : i32
    %c0_i32_0 = arith.constant 0 : i32
    return %c0_i32 : i32
  }
  func.func @transform_1(%arg0: i32) -> (i32, i32, i32) {
    %c0_i32 = arith.constant 0 : i32
    %c0_i32_0 = arith.constant 0 : i32
    %c0_i32_1 = arith.constant 0 : i32
    return %arg0, %c0_i32, %c0_i32_0 : i32, i32, i32
  }
  func.func @transform_2(%arg0: i32) -> (i32, i32, i32) {
    %c0_i32 = arith.constant 0 : i32
    %c0_i32_0 = arith.constant 0 : i32
    %c0_i32_1 = arith.constant 0 : i32
    %c0_i32_2 = arith.constant 0 : i32
    return %c0_i32, %c0_i32_0, %c0_i32_1 : i32, i32, i32
  }
  func.func @transform_3(%arg0: i32) -> (i32, i32) {
    %c0_i32 = arith.constant 0 : i32
    %c0_i32_0 = arith.constant 0 : i32
    %c0_i32_1 = arith.constant 0 : i32
    return %c0_i32, %c0_i32_0 : i32, i32
  }
  func.func @transform_4(%arg0: i32) -> (i32, i32) {
    %c0_i32 = arith.constant 0 : i32
    %c0_i32_0 = arith.constant 0 : i32
    %c0_i32_1 = arith.constant 0 : i32
    return %c0_i32, %c0_i32_0 : i32, i32
  }
  func.func @transform_5(%arg0: i32) -> (i32, i32) {
    %c0_i32 = arith.constant 0 : i32
    %c0_i32_0 = arith.constant 0 : i32
    %c0_i32_1 = arith.constant 0 : i32
    return %c0_i32, %c0_i32_0 : i32, i32
  }
  func.func @transform_6(%arg0: i32) -> (i32, i32, i32) {
    %c0_i32 = arith.constant 0 : i32
    %c0_i32_0 = arith.constant 0 : i32
    %c0_i32_1 = arith.constant 0 : i32
    return %arg0, %c0_i32, %c0_i32_0 : i32, i32, i32
  }
}

</mosaic_0001>

<bundles_post_ra>
// kernel: _ode_rk4_first_step.1
= control target key start
LH: loop header
LB: loop body
LE: loop exit
PB: predicated region body
PF: predicated region fallthrough
CT: control target
= control target key end

     0   :  { %11 = vsyncpa [#allocation3], 0  ;;  %s5388_s21 = smov 0   ;;  %s6919_s0 = inlined_call_operand.vmem [shape: f32[2], index: 0, kind: input, shape index: {}]   ;;  %s6920_s1 = inlined_call_operand.vmem [shape: f32[2,8,512], index: 1, kind: input, shape index: {}, may-alias: {1,6}]   ;;  %s6921_s2 = inlined_call_operand.vmem [shape: bf16[9,8,8], index: 2, kind: input, shape index: {}]   ;;  %s6922_s3 = inlined_call_operand.vmem [shape: f32[8,512], index: 3, kind: input, shape index: {}]   ;;  %s6923_s4 = inlined_call_operand.vmem [shape: f32[8,1], index: 4, kind: input, shape index: {}]   ;;  %s6924_s5 = inlined_call_operand.vmem [shape: f32[16,512], index: 5, kind: input, shape index: {}]   ;;  %s6925_s6 = inlined_call_operand.vmem [shape: f32[2,8,512], index: 6, kind: output, shape index: {}, may-alias: {1,6}]  }
   0x1 LB: > { %s4887_s22 = sadd.s32 4294967295, %s5341_s21   ;;  %p4889_p0 = scmp.ge.s32.totalorder %s5341_s21, 1  ;;  %s5341_s21 = sphi %s5388_s21, %s17_s21  }
   0x2   : > { %p179_p1 = scmp.lt.s32.totalorder %s5341_s21, 3  ;;  %s192_s25 = sshll.u32 %s6919_s0, 4  ;;  %s193_s25 = int_to_ptr.vmem [resolvable:$true] %s192_s25 }
   0x3   : > { %p5274_p3 = scmp.eq.s32.totalorder %s4887_s22, 0  ;;  %s5316_s27 = scalar_lea.vmem %s193_s25, 16 }
   0x4   : > { %p5399_p2 = pnand %p4889_p0, %p179_p1  ;;  %p5317_p6 = scmp.ne.s32.totalorder %s193_s25, %s5316_s27 }
   0x5   : > { %p5324_p10 = scmp.lt.s32.totalorder %s193_s25, %s193_s25  ;;  %p5325_p11 = scmp.lt.s32.totalorder %s5316_s27, %s5316_s27 }
   0x6   : > { %p5270_p4 = pneg %p5399_p2 }
   0x7   : > { %p5326_p12 = por %p5325_p11, %p5324_p10 }
   0x8   : > { %p5271_p5 = pnand %p5274_p3, %p5270_p4 }
   0xa   : > { %p5318_p7 = pneg %p5271_p5 }
   0xc   : > { %p5319_p8 = pnand %p5318_p7, %p5317_p6 }
   0xe   : > { %p5320_p9 = pneg %p5319_p8 }
  0x10   : > { %p5327_p13 = pnand %p5326_p12, %p5320_p9 }
  0x12   : > { %5330 = shalt.err (!%p5327_p13)
}
  0x13   : > { %s5343_s28 = smov [#allocation2]   ;;  %225 = sbr.rel (%p5399_p2) target bundleno = 1785 (0x6f9), region = 44 }
  0x14   : > { %5273 = dma.vmem_to_smem (!%p5271_p5), %s193_s25, 16, %s5343_s28, [#allocation3]  }
  0x1a   : > { %5336 = dma.done.wait (%p5274_p3), [#allocation3], 16  }
  0x1b   : > { %5338 = vsyncadd (%p5274_p3), [#allocation3], 4294967280 }
  0x1c   : > { %231 = sfence }
  0x1d   : > { %p256_p0 = scmp.lt.s32.totalorder %s4887_s22, 1  ;;  %v6926_v2 = vmov 0   ;;  %s5345_s9 = smov 17   ;;  %v278_v5 = vld [vmem:[%s6923_s4] sm:$0xff]  ;;  %v301_v6 = vlaneseq  ;;  %vm343_vm2 = vcmask 1043456   ;;  %vm339_vm3 = vcmask 64512  }
  0x1e   : > { %388 = vmatprep.mubr.bf16.mxu0 %v6926_v2  ;;  %429 = vmatprep.mubr.bf16.mxu1 %v6926_v2  ;;  %s5346_s10 = smov 16   ;;  %s5347_s11 = smov 15   ;;  %v308_v13 = vld [vmem:[%s6924_s5] ss:$8 sm:$0xf] }
  0x1f   : > { %s7017_s22 = smov (!%p256_p0, %s4887_s22), 1  ;;  %5294 = vset.pattern.permute.xlu0 %v6926_v2  ;;  %s5348_s12 = smov 1   ;;  %v311_v7 = vshrl.u32 %v301_v6, 7  ;;  %v5502_v8 = vand.u32 127, %v301_v6  ;;  %v5569_v46 = vld [vmem:[%s6921_s2] sm:$0xf] }
  0x20   : > { %s5060_s29 = sshll.u32 %s7017_s22, 5  ;;  %s5349_s13 = smov 127   ;;  %v4903_v16 = vld [vmem:[%s6924_s5 + $0x1] ss:$8 sm:$0xf] }
  0x21   : > { %s5418_s8 = scalar_lea.vmem %s6920_s1, %s5060_s29  ;;  %s5350_s14 = smov 113   ;;  %v5504_v9 = vsub.s32 1, %v311_v7  ;;  %v5506_v10 = vsub.s32 3, %v311_v7  ;;  %v5508_v11 = vsub.s32 0, %v311_v7  ;;  %v5510_v12 = vsub.s32 2, %v311_v7 }
  0x22   : > { %v5421_v0 = vld [vmem:[%s5418_s8 + $0x10] sm:$0xff]  ;;  %v5424_v1 = vld [vmem:[%s5418_s8] sm:$0xff]  ;;  %v5432_v3 = vld [vmem:[%s5418_s8 + $0x18] sm:$0xff]  ;;  %s5351_s15 = smov 112   ;;  %s5352_s16 = smov 111   ;;  %vm303_vm0 = vcmp.lt.s32.totalorder %v5502_v8, 17 }
  0x23   : > { %297 = vrot.lane.b32.xlu1 %v5421_v0, %s5345_s9  ;;  %293 = vrot.lane.b32.xlu0 %v5424_v1, %s5345_s9  ;;  %v5435_v4 = vld [vmem:[%s5418_s8 + $0x8] sm:$0xff]  ;;  %v5520_v17 = vrot.slane %v308_v13, %v5504_v9  ;;  %v5523_v18 = vrot.slane %v308_v13, %v5506_v10  ;;  %v5526_v19 = vrot.slane %v308_v13, %v5508_v11  ;;  %vm450_vm1 = vcmp.lt.s32.totalorder %v5502_v8, 16  ;;  %s5879_s17 = sld [smem:[#allocation2]]  ;;  %s5881_s18 = sld [smem:[#allocation2 + $0x1]] }
  0x24   : > { %v5529_v20 = vrot.slane %v308_v13, %v5510_v12  ;;  %v5533_v23 = vrot.slane %v4903_v16, %v5504_v9  ;;  %v5550_v39 = vrot.slane %v4903_v16, %v5508_v11  ;;  %v5553_v40 = vrot.slane %v4903_v16, %v5506_v10  ;;  %v4909_v45 = vld [vmem:[%s6924_s5 + $0x2] ss:$8 sm:$0xf] }
  0x25   : > { %6961 = vst [vmem:[#allocation5_spill] sm:$0xff] %v5520_v17  ;;  %v5561_v44 = vrot.slane %v4903_v16, %v5510_v12  ;;  %v5578_v53 = vrot.slane %v4909_v45, %v5504_v9  ;;  %vm597_vm4 = vcmp.lt.s32.totalorder %v5502_v8, 15  ;;  %v5594_v63 = vrot.slane %v4909_v45, %v5508_v11 }
  0x26   : > { %6962 = vst [vmem:[#allocation6_spill] sm:$0xff] %v5529_v20  ;;  %vm744_vm5 = vcmp.lt.s32.totalorder %v5502_v8, 1  ;;  %vm998_vm6 = vcmp.lt.s32.totalorder %v5502_v8, 127  ;;  %vm1145_vm7 = vcmp.lt.s32.totalorder %v5502_v8, 113  ;;  %vm1292_vm8 = vcmp.lt.s32.totalorder %v5502_v8, 112 }
  0x27   : > { %299 = vrot.lane.b32.xlu1 %v5432_v3, %s5345_s9  ;;  %295 = vrot.lane.b32.xlu0 %v5435_v4, %s5345_s9  ;;  %vm1439_vm9 = vcmp.lt.s32.totalorder %v5502_v8, 111 }
  0x29   : > { %s5885_s19 = ssub.f32 %s5881_s18, %s5879_s17 }
  0x2b   : > { %444 = vrot.lane.b32.xlu1 %v5435_v4, %s5346_s10  ;;  %442 = vrot.lane.b32.xlu0 %v5424_v1, %s5346_s10  ;;  %s1578_s20 = smul.f32 0.33333334, %s5885_s19 }
  0x2d   : > { %s1579_s23 = sadd.f32 %s1578_s20, %s5879_s17 }
  0x2f   : > { %448 = vrot.lane.b32.xlu1 %v5432_v3, %s5346_s10  ;;  %446 = vrot.lane.b32.xlu0 %v5421_v0, %s5346_s10 }
  0x33   : > { %591 = vrot.lane.b32.xlu1 %v5435_v4, %s5347_s11  ;;  %589 = vrot.lane.b32.xlu0 %v5424_v1, %s5347_s11 }
  0x37   : > { %595 = vrot.lane.b32.xlu1 %v5432_v3, %s5347_s11  ;;  %593 = vrot.lane.b32.xlu0 %v5421_v0, %s5347_s11 }
  0x3b   : > { %738 = vrot.lane.b32.xlu1 %v5435_v4, %s5348_s12  ;;  %736 = vrot.lane.b32.xlu0 %v5424_v1, %s5348_s12 }
  0x3f   : > { %742 = vrot.lane.b32.xlu1 %v5432_v3, %s5348_s12  ;;  %740 = vrot.lane.b32.xlu0 %v5421_v0, %s5348_s12 }
  0x43   : > { %992 = vrot.lane.b32.xlu1 %v5435_v4, %s5349_s13  ;;  %990 = vrot.lane.b32.xlu0 %v5424_v1, %s5349_s13 }
  0x47   : > { %996 = vrot.lane.b32.xlu1 %v5432_v3, %s5349_s13  ;;  %994 = vrot.lane.b32.xlu0 %v5421_v0, %s5349_s13 }
  0x4b   : > { %1139 = vrot.lane.b32.xlu1 %v5435_v4, %s5350_s14  ;;  %1137 = vrot.lane.b32.xlu0 %v5424_v1, %s5350_s14 }
  0x4f   : > { %1143 = vrot.lane.b32.xlu1 %v5432_v3, %s5350_s14  ;;  %1141 = vrot.lane.b32.xlu0 %v5421_v0, %s5350_s14 }
  0x53   : > { %1286 = vrot.lane.b32.xlu1 %v5435_v4, %s5351_s15  ;;  %1284 = vrot.lane.b32.xlu0 %v5424_v1, %s5351_s15 }
  0x57   : > { %1290 = vrot.lane.b32.xlu1 %v5432_v3, %s5351_s15  ;;  %1288 = vrot.lane.b32.xlu0 %v5421_v0, %s5351_s15 }
  0x5b   : > { %1433 = vrot.lane.b32.xlu1 %v5435_v4, %s5352_s16  ;;  %1431 = vrot.lane.b32.xlu0 %v5424_v1, %s5352_s16 }
  0x5f   : > { %1437 = vrot.lane.b32.xlu1 %v5432_v3, %s5352_s16  ;;  %1435 = vrot.lane.b32.xlu0 %v5421_v0, %s5352_s16 }
  0x63   : > { %281 = vperm.xlu0 %5294, %v278_v5   ;;  %v5597_v5 = vrot.slane %v4909_v45, %v5510_v12 }
  0x65   : > { %6963 = vst [vmem:[#allocation7_spill] sm:$0xff] %v5597_v5 }
  0x95   : > { %v298_v14 = vpop.permute.xlu1 %297  ;;  %v294_v15 = vpop.permute.xlu0 %293 }
  0x99   : > { %v300_v21 = vpop.permute.xlu1 %299  ;;  %v296_v22 = vpop.permute.xlu0 %295 }
  0x9a   : > { %v307_v24 = vsel %vm303_vm0, %v300_v21, %v294_v15  ;;  %v305_v25 = vsel %vm303_vm0, %v296_v22, %v298_v14  ;;  %v306_v26 = vsel %vm303_vm0, %v294_v15, %v296_v22  ;;  %v304_v27 = vsel %vm303_vm0, %v298_v14, %v300_v21  ;;  %v4915_v15 = vld [vmem:[%s6924_s5 + $0x3] ss:$8 sm:$0xf] }
  0x9b   : > { %v331_v28 = vmul.f32 %v5520_v17, %v306_v26  ;;  %v333_v29 = vmul.f32 %v5523_v18, %v304_v27  ;;  %v330_v30 = vmul.f32 %v5526_v19, %v307_v24  ;;  %v332_v31 = vmul.f32 %v5529_v20, %v305_v25 }
  0x9c   : > { %v5604_v14 = vrot.slane %v4909_v45, %v5506_v10 }
  0x9d   : > { %v445_v32 = vpop.permute.xlu1 %444  ;;  %v443_v33 = vpop.permute.xlu0 %442  ;;  %v336_v34 = vpack.c.bf16 %v331_v28, %v331_v28  ;;  %v338_v35 = vpack.c.bf16 %v333_v29, %v333_v29  ;;  %v335_v36 = vpack.c.bf16 %v330_v30, %v330_v30  ;;  %v337_v37 = vpack.c.bf16 %v332_v31, %v332_v31  ;;  %v5626_v31 = vld [vmem:[%s6921_s2 + $0x4] sm:$0xf] }
  0x9e   : > { %v453_v38 = vsel %vm450_vm1, %v443_v33, %v445_v32  ;;  %v5621_v30 = vrot.slane %v4915_v15, %v5504_v9 }
  0x9f   : > { %v479_v41 = vmul.f32 %v5533_v23, %v453_v38  ;;  %4899 = vmatprep.subr.msk.bf16.mxu0 %vm343_vm2, %v336_v34  ;;  %4901 = vmatprep.subr.msk.bf16.mxu1 %vm343_vm2, %v338_v35  ;;  %v345_v42 = vsel %vm343_vm2, %v335_v36, 0  ;;  %v351_v43 = vsel %vm343_vm2, %v337_v37, 0  ;;  %v5631_v38 = vrot.slane %v4915_v15, %v5508_v11 }
  0xa0   : > { %357 = vmatpush1.bf16.msra.mxu0 %v345_v42  ;;  %398 = vmatpush1.bf16.msra.mxu1 %v351_v43 }
  0xa1   : > { %v485_v47 = vpack.c.bf16 %v479_v41, %v479_v41  ;;  %v449_v48 = vpop.permute.xlu1 %448  ;;  %v447_v49 = vpop.permute.xlu0 %446  ;;  %v5634_v41 = vrot.slane %v4915_v15, %v5510_v12 }
  0xa2   : > { %v454_v50 = vsel %vm450_vm1, %v449_v48, %v443_v33  ;;  %v451_v51 = vsel %vm450_vm1, %v447_v49, %v449_v48  ;;  %v452_v52 = vsel %vm450_vm1, %v445_v32, %v447_v49 }
  0xa3   : > { %v478_v54 = vmul.f32 %v5550_v39, %v454_v50  ;;  %v480_v55 = vmul.f32 %v5561_v44, %v452_v52  ;;  %v481_v56 = vmul.f32 %v5553_v40, %v451_v51  ;;  %4900 = vmatmul.mubr.msk.bf16.vlgmr.msra.gmra.mrb[0].mxu0 %vm339_vm3, %v5569_v46  ;;  %4902 = vmatmul.mubr.msk.bf16.vlgmr.msra.gmra.mrb[0].mxu1 %vm339_vm3, %v5569_v46 }
  0xa4   : > { %4905 = vmatprep.subr.msk.bf16.mxu0 %vm343_vm2, %v485_v47  ;;  %535 = vmatprep.mubr.bf16.mxu0 %v6926_v2  ;;  %v5644_v47 = vrot.slane %v4915_v15, %v5506_v10  ;;  %v886_v15 = vpack.c.bf16 %v5435_v4, %v5435_v4 }
  0xa5   : > { %v484_v57 = vpack.c.bf16 %v478_v54, %v478_v54  ;;  %v486_v58 = vpack.c.bf16 %v480_v55, %v480_v55  ;;  %v487_v59 = vpack.c.bf16 %v481_v56, %v481_v56  ;;  %v592_v60 = vpop.permute.xlu1 %591  ;;  %v590_v61 = vpop.permute.xlu0 %589  ;;  %576 = vmatprep.mubr.bf16.mxu1 %v6926_v2 }
  0xa6   : > { %v600_v62 = vsel %vm597_vm4, %v590_v61, %v592_v60 }
  0xa7   : > { %v626_v6 = vmul.f32 %v5578_v53, %v600_v62  ;;  %4907 = vmatprep.subr.msk.bf16.mxu1 %vm343_vm2, %v487_v59  ;;  %v492_v7 = vsel %vm343_vm2, %v484_v57, 0  ;;  %v498_v13 = vsel %vm343_vm2, %v486_v58, 0 }
  0xa8   : > { %504 = vmatpush1.bf16.msra.mxu0 %v492_v7  ;;  %545 = vmatpush1.bf16.msra.mxu1 %v498_v13 }
  0xa9   : > { %v632_v16 = vpack.c.bf16 %v626_v6, %v626_v6  ;;  %v596_v21 = vpop.permute.xlu1 %595  ;;  %v594_v22 = vpop.permute.xlu0 %593  ;;  %v5663_v6 = vld [vmem:[%s6921_s2 + $0x8] sm:$0xf] }
  0xaa   : > { %v601_v24 = vsel %vm597_vm4, %v596_v21, %v590_v61  ;;  %v598_v25 = vsel %vm597_vm4, %v594_v22, %v596_v21  ;;  %v599_v26 = vsel %vm597_vm4, %v592_v60, %v594_v22  ;;  %v4926_v21 = vld [vmem:[%s6924_s5 + $0x5] ss:$8 sm:$0xf] }
  0xab   : > { %v625_v27 = vmul.f32 %v5594_v63, %v601_v24  ;;  %v627_v28 = vmul.f32 %v5597_v5, %v599_v26  ;;  %v628_v29 = vmul.f32 %v5604_v14, %v598_v25  ;;  %4911 = vmatprep.subr.msk.bf16.mxu0 %vm343_vm2, %v632_v16  ;;  %v888_v16 = vpack.c.bf16 %v5432_v3, %v5432_v3 }
  0xac   : > { %v5683_v25 = vrot.slane %v4926_v21, %v5506_v10  ;;  %v5686_v26 = vrot.slane %v4926_v21, %v5504_v9 }
  0xad   : > { %v631_v32 = vpack.c.bf16 %v625_v27, %v625_v27  ;;  %v633_v33 = vpack.c.bf16 %v627_v28, %v627_v28  ;;  %v634_v34 = vpack.c.bf16 %v628_v29, %v628_v29  ;;  %v739_v35 = vpop.permute.xlu1 %738  ;;  %v737_v36 = vpop.permute.xlu0 %736  ;;  %v885_v29 = vpack.c.bf16 %v5424_v1, %v5424_v1 }
  0xae   : > { %v747_v37 = vsel %vm744_vm5, %v737_v36, %v739_v35 }
  0xaf   : > { %4906 = vmatmul.mubr.msk.bf16.vlgmr.msra.gmra.mrb[0].mxu0 %vm339_vm3, %v5626_v31  ;;  %4908 = vmatmul.mubr.msk.bf16.vlgmr.msra.gmra.mrb[0].mxu1 %vm339_vm3, %v5626_v31  ;;  %v645_v42 = vsel %vm343_vm2, %v633_v33, 0  ;;  %v773_v43 = vmul.f32 %v5621_v30, %v747_v37  ;;  %v639_v45 = vsel %vm343_vm2, %v631_v32, 0  ;;  %v887_v32 = vpack.c.bf16 %v5421_v0, %v5421_v0  ;;  %v5702_v37 = vld [vmem:[%s6921_s2 + $0xc] sm:$0xf] }
  0xb0   : > { %4913 = vmatprep.subr.msk.bf16.mxu1 %vm343_vm2, %v634_v34  ;;  %651 = vmatpush1.bf16.msra.mxu0 %v639_v45  ;;  %v5709_v45 = vrot.slane %v4926_v21, %v5510_v12 }
  0xb1   : > { %692 = vmatpush1.bf16.msra.mxu1 %v645_v42  ;;  %v779_v48 = vpack.c.bf16 %v773_v43, %v773_v43  ;;  %v743_v49 = vpop.permute.xlu1 %742  ;;  %v741_v50 = vpop.permute.xlu0 %740  ;;  %682 = vmatprep.mubr.bf16.mxu0 %v6926_v2  ;;  %v5705_v42 = vrot.slane %v4926_v21, %v5508_v11  ;;  %v893_v43 = vsel %vm343_vm2, %v885_v29, 0 }
  0xb2   : > { %v748_v51 = vsel %vm744_vm5, %v743_v49, %v737_v36  ;;  %v745_v52 = vsel %vm744_vm5, %v741_v50, %v743_v49  ;;  %v746_v54 = vsel %vm744_vm5, %v739_v35, %v741_v50  ;;  %723 = vmatprep.mubr.bf16.mxu1 %v6926_v2 }
  0xb3   : > { %v772_v55 = vmul.f32 %v5631_v38, %v748_v51  ;;  %v774_v56 = vmul.f32 %v5634_v41, %v746_v54  ;;  %v775_v57 = vmul.f32 %v5644_v47, %v745_v52  ;;  %4917 = vmatprep.subr.msk.bf16.mxu0 %vm343_vm2, %v779_v48  ;;  %v899_v48 = vsel %vm343_vm2, %v887_v32, 0  ;;  %v4932_v54 = vld [vmem:[%s6924_s5 + $0x6] ss:$8 sm:$0xf] }
  0xb4   : > { %v5753_v32 = vrot.slane %v4932_v54, %v5510_v12 }
  0xb5   : > { %v778_v58 = vpack.c.bf16 %v772_v55, %v772_v55  ;;  %v780_v59 = vpack.c.bf16 %v774_v56, %v774_v56  ;;  %v781_v60 = vpack.c.bf16 %v775_v57, %v775_v57  ;;  %v993_v61 = vpop.permute.xlu1 %992  ;;  %v991_v62 = vpop.permute.xlu0 %990 }
  0xb6   : > { %v1001_v49 = vsel %vm998_vm6, %v991_v62, %v993_v61 }
  0xb7   : > { %4919 = vmatprep.subr.msk.bf16.mxu1 %vm343_vm2, %v781_v60  ;;  %v792_v7 = vsel %vm343_vm2, %v780_v59, 0  ;;  %v786_v13 = vsel %vm343_vm2, %v778_v58, 0  ;;  %v1026_v57 = vmul.f32 %v5705_v42, %v1001_v49  ;;  %v5731_v59 = vrot.slane %v4932_v54, %v5506_v10  ;;  %v4938_v49 = vld [vmem:[%s6924_s5 + $0x7] ss:$8 sm:$0xf] }
  0xb8   : > { %v5734_v60 = vrot.slane %v4932_v54, %v5504_v9 }
  0xb9   : > { %v997_v22 = vpop.permute.xlu1 %996  ;;  %v995_v24 = vpop.permute.xlu0 %994 }
  0xba   : > { %v1002_v27 = vsel %vm998_vm6, %v997_v22, %v991_v62  ;;  %v1000_v28 = vsel %vm998_vm6, %v993_v61, %v995_v24  ;;  %v999_v51 = vsel %vm998_vm6, %v995_v24, %v997_v22  ;;  %v5745_v24 = vld [vmem:[%s6921_s2 + $0x10] sm:$0xf] }
  0xbb   : > { %4912 = vmatmul.mubr.msk.bf16.vlgmr.msra.gmra.mrb[0].mxu0 %vm339_vm3, %v5663_v6  ;;  %4914 = vmatmul.mubr.msk.bf16.vlgmr.msra.gmra.mrb[0].mxu1 %vm339_vm3, %v5663_v6  ;;  %v1029_v33 = vmul.f32 %v5683_v25, %v1002_v27  ;;  %v1027_v34 = vmul.f32 %v5686_v26, %v1000_v28  ;;  %v1028_v58 = vmul.f32 %v5709_v45, %v999_v51 }
  0xbc   : > { %839 = vmatpush1.bf16.msra.mxu1 %v792_v7  ;;  %798 = vmatpush1.bf16.msra.mxu0 %v786_v13  ;;  %v1032_v7 = vpack.c.bf16 %v1026_v57, %v1026_v57  ;;  %v5749_v28 = vrot.slane %v4932_v54, %v5508_v11  ;;  %v5777_v54 = vrot.slane %v4938_v49, %v5504_v9 }
  0xbd   : > { %829 = vmatprep.mubr.bf16.mxu0 %v6926_v2  ;;  %870 = vmatprep.mubr.bf16.mxu1 %v6926_v2  ;;  %v1140_v35 = vpop.permute.xlu1 %1139  ;;  %v1138_v36 = vpop.permute.xlu0 %1137  ;;  %v1035_v50 = vpack.c.bf16 %v1029_v33, %v1029_v33  ;;  %v1033_v52 = vpack.c.bf16 %v1027_v34, %v1027_v34  ;;  %v1034_v13 = vpack.c.bf16 %v1028_v58, %v1028_v58 }
  0xbe   : > { %4922 = vmatprep.subr.msk.bf16.mxu0 %vm343_vm2, %v886_v15  ;;  %4924 = vmatprep.subr.msk.bf16.mxu1 %vm343_vm2, %v888_v16  ;;  %v1040_v27 = vsel %vm343_vm2, %v1032_v7, 0  ;;  %v1148_v33 = vsel %vm1145_vm7, %v1138_v36, %v1140_v35 }
  0xbf   : > { %v1046_v29 = vsel %vm343_vm2, %v1034_v13, 0 }
  0xc1   : > { %v1144_v55 = vpop.permute.xlu1 %1143  ;;  %v1142_v56 = vpop.permute.xlu0 %1141 }
  0xc2   : > { %v1149_v61 = vsel %vm1145_vm7, %v1144_v55, %v1138_v36  ;;  %v1147_v62 = vsel %vm1145_vm7, %v1140_v35, %v1142_v56 }
  0xc3   : > { %v1176_v15 = vmul.f32 %v5731_v59, %v1149_v61  ;;  %v1174_v16 = vmul.f32 %v5734_v60, %v1147_v62 }
  0xc5   : > { %v1287_v21 = vpop.permute.xlu1 %1286  ;;  %v1285_v22 = vpop.permute.xlu0 %1284  ;;  %v1182_v34 = vpack.c.bf16 %v1176_v15, %v1176_v15  ;;  %v5788_v15 = vld [vmem:[%s6921_s2 + $0x14] sm:$0xf] }
  0xc7   : > { %4918 = vmatmul.mubr.msk.bf16.vlgmr.msra.gmra.mrb[0].mxu0 %vm339_vm3, %v5702_v37  ;;  %4920 = vmatmul.mubr.msk.bf16.vlgmr.msra.gmra.mrb[0].mxu1 %vm339_vm3, %v5702_v37 }
  0xc8   : > { %905 = vmatpush1.bf16.msra.mxu0 %v893_v43  ;;  %946 = vmatpush1.bf16.msra.mxu1 %v899_v48  ;;  %v1146_v43 = vsel %vm1145_vm7, %v1142_v56, %v1144_v55  ;;  %v1180_v48 = vpack.c.bf16 %v1174_v16, %v1174_v16 }
  0xc9   : > { %936 = vmatprep.mubr.bf16.mxu0 %v6926_v2  ;;  %977 = vmatprep.mubr.bf16.mxu1 %v6926_v2  ;;  %v1291_v35 = vpop.permute.xlu1 %1290  ;;  %v1289_v36 = vpop.permute.xlu0 %1288  ;;  %v1175_v51 = vmul.f32 %v5753_v32, %v1146_v43 }
  0xca   : > { %4928 = vmatprep.subr.msk.bf16.mxu0 %vm343_vm2, %v1033_v52  ;;  %4930 = vmatprep.subr.msk.bf16.mxu1 %vm343_vm2, %v1035_v50  ;;  %v1173_v50 = vmul.f32 %v5749_v28, %v1148_v33  ;;  %v5774_v52 = vrot.slane %v4938_v49, %v5506_v10  ;;  %v1296_v55 = vsel %vm1292_vm8, %v1291_v35, %v1285_v22 }
  0xcb   : > { %v1294_v56 = vsel %vm1292_vm8, %v1287_v21, %v1289_v36  ;;  %v1181_v58 = vpack.c.bf16 %v1175_v51, %v1175_v51  ;;  %v5796_v33 = vrot.slane %v4938_v49, %v5510_v12  ;;  %v4944_v51 = vld [vmem:[%s6924_s5 + $0x20] ss:$8 sm:$0xf] }
  0xcc   : > { %v1179_v57 = vpack.c.bf16 %v1173_v50, %v1173_v50  ;;  %v1323_v61 = vmul.f32 %v5774_v52, %v1296_v55  ;;  %v1321_v62 = vmul.f32 %v5777_v54, %v1294_v56  ;;  %v5820_v55 = vrot.slane %v4944_v51, %v5504_v9 }
  0xcd   : > { %v1434_v7 = vpop.permute.xlu1 %1433  ;;  %v1432_v13 = vpop.permute.xlu0 %1431 }
  0xce   : > { %v1187_v16 = vsel %vm343_vm2, %v1179_v57, 0  ;;  %v1329_v43 = vpack.c.bf16 %v1323_v61, %v1323_v61  ;;  %v1327_v50 = vpack.c.bf16 %v1321_v62, %v1321_v62 }
  0xd3   : > { %4923 = vmatmul.mubr.msk.bf16.vlgmr.msra.gmra.mrb[0].mxu0 %vm339_vm3, %v5745_v24  ;;  %4925 = vmatmul.mubr.msk.bf16.vlgmr.msra.gmra.mrb[0].mxu1 %vm339_vm3, %v5745_v24 }
  0xd4   : > { %1052 = vmatpush1.bf16.msra.mxu0 %v1040_v27  ;;  %1093 = vmatpush1.bf16.msra.mxu1 %v1046_v29  ;;  %v5792_v27 = vrot.slane %v4938_v49, %v5508_v11  ;;  %v1193_v29 = vsel %vm343_vm2, %v1181_v58, 0 }
  0xd5   : > { %1083 = vmatprep.mubr.bf16.mxu0 %v6926_v2  ;;  %1124 = vmatprep.mubr.bf16.mxu1 %v6926_v2 }
  0xd6   : > { %4934 = vmatprep.subr.msk.bf16.mxu0 %vm343_vm2, %v1180_v48  ;;  %4936 = vmatprep.subr.msk.bf16.mxu1 %vm343_vm2, %v1182_v34  ;;  %v1295_v34 = vsel %vm1292_vm8, %v1285_v22, %v1287_v21  ;;  %v1293_v48 = vsel %vm1292_vm8, %v1289_v36, %v1291_v35  ;;  %v1438_v21 = vpop.permute.xlu1 %1437  ;;  %v1436_v22 = vpop.permute.xlu0 %1435  ;;  %v5817_v36 = vrot.slane %v4944_v51, %v5506_v10  ;;  %v5831_v10 = vld [vmem:[%s6921_s2 + $0x18] sm:$0xf] }
  0xd7   : > { %v1320_v49 = vmul.f32 %v5792_v27, %v1295_v34  ;;  %v1322_v35 = vmul.f32 %v5796_v33, %v1293_v48  ;;  %v1443_v56 = vsel %vm1439_vm9, %v1438_v21, %v1432_v13  ;;  %v1441_v57 = vsel %vm1439_vm9, %v1434_v7, %v1436_v22 }
  0xd8   : > { %v1470_v62 = vmul.f32 %v5817_v36, %v1443_v56  ;;  %v1442_v48 = vsel %vm1439_vm9, %v1432_v13, %v1434_v7  ;;  %v5871_v56 = vld [vmem:[%s6921_s2 + $0x20] sm:$0xf] }
  0xd9   : > { %v1326_v58 = vpack.c.bf16 %v1320_v49, %v1320_v49  ;;  %v1328_v61 = vpack.c.bf16 %v1322_v35, %v1322_v35  ;;  %v1440_v49 = vsel %vm1439_vm9, %v1436_v22, %v1438_v21  ;;  %6966 = vst [vmem:[#allocation10_spill] sm:$0xff] %v5871_v56 }
  0xdb   : > { %v1334_v9 = vsel %vm343_vm2, %v1326_v58, 0  ;;  %v1340_v34 = vsel %vm343_vm2, %v1328_v61, 0  ;;  %v275_v58 = vld [vmem:[%s6922_s3 + $0x8] sm:$0xff]  ;;  %v277_v61 = vld [vmem:[%s6922_s3 + $0x18] sm:$0xff] }
  0xdf   : > { %4929 = vmatmul.mubr.msk.bf16.vlgmr.msra.gmra.mrb[0].mxu0 %vm339_vm3, %v5788_v15  ;;  %4931 = vmatmul.mubr.msk.bf16.vlgmr.msra.gmra.mrb[0].mxu1 %vm339_vm3, %v5788_v15 }
  0xe0   : > { %1199 = vmatpush1.bf16.msra.mxu0 %v1187_v16  ;;  %1240 = vmatpush1.bf16.msra.mxu1 %v1193_v29  ;;  %v1468_v16 = vmul.f32 %v5820_v55, %v1441_v57  ;;  %v5835_v29 = vrot.slane %v4944_v51, %v5508_v11  ;;  %v276_v57 = vld [vmem:[%s6922_s3 + $0x10] sm:$0xff] }
  0xe1   : > { %1230 = vmatprep.mubr.bf16.mxu0 %v6926_v2  ;;  %1271 = vmatprep.mubr.bf16.mxu1 %v6926_v2 }
  0xe2   : > { %4940 = vmatprep.subr.msk.bf16.mxu0 %vm343_vm2, %v1327_v50  ;;  %4942 = vmatprep.subr.msk.bf16.mxu1 %vm343_vm2, %v1329_v43  ;;  %v5839_v43 = vrot.slane %v4944_v51, %v5510_v12  ;;  %v1476_v50 = vpack.c.bf16 %v1470_v62, %v1470_v62  ;;  %v1474_v35 = vpack.c.bf16 %v1468_v16, %v1468_v16  ;;  %v5858_v51 = vld [vmem:[%s6921_s2 + $0x1c] sm:$0xf]  ;;  %v5898_v62 = vstv %s1579_s23 }
  0xe3   : > { %v1467_v11 = vmul.f32 %v5835_v29, %v1442_v48  ;;  %6965 = vst [vmem:[#allocation9_spill] sm:$0xff] %v5858_v51  ;;  %6967 = vst [vmem:[#allocation11_spill] sm:$0xff] %v5898_v62  ;;  %v5901_v16 = vmul.f32 %v5898_v62, %v276_v57  ;;  %v5912_v48 = vld [vmem:[%s6922_s3] sm:$0xff] }
  0xe4   : > { %6964 = vst [vmem:[#allocation8_spill] sm:$0xff] %v5839_v43  ;;  %v1469_v12 = vmul.f32 %v5839_v43, %v1440_v49  ;;  %6971 = vst [vmem:[#allocation15_spill] sm:$0xff] %v5912_v48 }
  0xe5   : > { %v1473_v7 = vpack.c.bf16 %v1467_v11, %v1467_v11  ;;  %6968 = vst [vmem:[#allocation12_spill] sm:$0xff] %v5901_v16  ;;  %v5916_v11 = vpop.permute.xlu0 %281 }
  0xe6   : > { %v1475_v13 = vpack.c.bf16 %v1469_v12, %v1469_v12 }
  0xe7   : > { %v1481_v21 = vsel %vm343_vm2, %v1473_v7, 0 }
  0xe8   : > { %v1487_v22 = vsel %vm343_vm2, %v1475_v13, 0 }
  0xeb   : > { %4935 = vmatmul.mubr.msk.bf16.vlgmr.msra.gmra.mrb[0].mxu0 %vm339_vm3, %v5831_v10  ;;  %4937 = vmatmul.mubr.msk.bf16.vlgmr.msra.gmra.mrb[0].mxu1 %vm339_vm3, %v5831_v10 }
  0xec   : > { %1346 = vmatpush1.bf16.msra.mxu0 %v1334_v9  ;;  %1387 = vmatpush1.bf16.msra.mxu1 %v1340_v34  ;;  %v5904_v9 = vmul.f32 %v5898_v62, %v275_v58  ;;  %v5907_v34 = vmul.f32 %v5898_v62, %v277_v61 }
  0xed   : > { %1377 = vmatprep.mubr.bf16.mxu0 %v6926_v2  ;;  %1418 = vmatprep.mubr.bf16.mxu1 %v6926_v2 }
  0xee   : > { %4946 = vmatprep.subr.msk.bf16.mxu0 %vm343_vm2, %v1474_v35  ;;  %4948 = vmatprep.subr.msk.bf16.mxu1 %vm343_vm2, %v1476_v50  ;;  %6969 = vst [vmem:[#allocation13_spill] sm:$0xff] %v5904_v9  ;;  %6970 = vst [vmem:[#allocation14_spill] sm:$0xff] %v5907_v34  ;;  %v284_v50 = vstv %s5879_s17  ;;  %v1580_v34 = vstv %s1578_s20  ;;  %s2644_s20 = smul.f32 2.0, %s5885_s19 }
  0xef   : > { %v285_v49 = vmul.f32 %v284_v50, %v5912_v48  ;;  %v287_v35 = vmul.f32 %v284_v50, %v276_v57  ;;  %v286_v12 = vmul.f32 %v284_v50, %v275_v58 }
  0xf0   : > { %s2645_s23 = smul.f32 0.33333334, %s2644_s20 }
  0xf1   : > { %v289_v7 = vadd.f32 %v285_v49, %v5916_v11  ;;  %v291_v13 = vadd.f32 %v287_v35, %v5916_v11 }
  0xf2   : > { %s2646_s25 = sadd.f32 %s2645_s23, %s5879_s17 }
  0xf7   : > { %4941 = vmatmul.mubr.msk.bf16.vlgmr.msra.gmra.mrb[0].mxu0 %vm339_vm3, %v5858_v51  ;;  %4943 = vmatmul.mubr.msk.bf16.vlgmr.msra.gmra.mrb[0].mxu1 %vm339_vm3, %v5858_v51 }
  0xf8   : > { %1493 = vmatpush1.bf16.msra.mxu0 %v1481_v21  ;;  %1534 = vmatpush1.bf16.msra.mxu1 %v1487_v22  ;;  %v288_v21 = vmul.f32 %v284_v50, %v277_v61  ;;  %v290_v22 = vadd.f32 %v286_v12, %v5916_v11 }
  0xf9   : > { %1524 = vmatprep.mubr.bf16.mxu0 %v6926_v2  ;;  %1565 = vmatprep.mubr.bf16.mxu1 %v6926_v2 }
  0xfa   : > { %v292_v57 = vadd.f32 %v288_v21, %v5916_v11 }
 0x103   : > { %4947 = vmatmul.mubr.msk.bf16.vlgmr.msra.gmra.mrb[0].mxu0 %vm339_vm3, %v5871_v56  ;;  %4949 = vmatmul.mubr.msk.bf16.vlgmr.msra.gmra.mrb[0].mxu1 %vm339_vm3, %v5871_v56 }
 0x104   : > { %1662 = vmatprep.mubr.bf16.mxu0 %v6926_v2  ;;  %1703 = vmatprep.mubr.bf16.mxu1 %v6926_v2 }
 0x1d6   : > { %v1526_v2 = vpop.f32.mrb[0].mxu0  ;;  %v1567_v9 = vpop.f32.mrb[0].mxu1 }
 0x1d7   : > { %v5921_v16 = vadd.f32 %v1526_v2, %v289_v7  ;;  %v5923_v62 = vadd.f32 %v1567_v9, %v291_v13  ;;  %v1528_v56 = vpop.f32.mrb[1].mxu0  ;;  %v1569_v48 = vpop.f32.mrb[1].mxu1 }
 0x1d8   : > { %v5926_v51 = vadd.f32 %v1528_v56, %v290_v22  ;;  %v1530_v58 = vpop.f32.mrb[2].mxu0  ;;  %v1571_v49 = vpop.f32.mrb[2].mxu1  ;;  %v5937_v7 = vadd.f32 %v1569_v48, %v292_v57 }
 0x1d9   : > { %6972 = vst [vmem:[#allocation16_spill] sm:$0xff] %v5921_v16  ;;  %6973 = vst [vmem:[#allocation17_spill] sm:$0xff] %v5923_v62  ;;  %v1581_v35 = vmul.f32 %v5921_v16, %v1580_v34  ;;  %v1583_v61 = vmul.f32 %v5923_v62, %v1580_v34  ;;  %v1531_v50 = vpop.f32.mrb[3].mxu0  ;;  %v1572_v12 = vpop.f32.mrb[3].mxu1 }
 0x1da   : > { %6974 = vst [vmem:[#allocation18_spill] sm:$0xff] %v5926_v51  ;;  %v1582_v9 = vmul.f32 %v5926_v51, %v1580_v34  ;;  %6975 = vst [vmem:[#allocation19_spill] sm:$0xff] %v5937_v7  ;;  %v1584_v13 = vmul.f32 %v5937_v7, %v1580_v34 }
 0x1db   : > { %v5931_v43 = vadd.f32 %v1581_v35, %v5424_v1  ;;  %v5934_v2 = vadd.f32 %v1583_v61, %v5421_v0 }
 0x1dc   : > { %v5944_v56 = vadd.f32 %v1582_v9, %v5435_v4  ;;  %v5952_v0 = vadd.f32 %v1584_v13, %v5432_v3 }
 0x1dd   : > { %1602 = vrot.lane.b32.xlu0 %v5934_v2, %s5345_s9  ;;  %1598 = vrot.lane.b32.xlu1 %v5931_v43, %s5345_s9 }
 0x1e1   : > { %1716 = vrot.lane.b32.xlu0 %v5931_v43, %s5346_s10  ;;  %1600 = vrot.lane.b32.xlu1 %v5944_v56, %s5345_s9 }
 0x1e5   : > { %1720 = vrot.lane.b32.xlu0 %v5934_v2, %s5346_s10  ;;  %1604 = vrot.lane.b32.xlu1 %v5952_v0, %s5345_s9 }
 0x1e9   : > { %1834 = vrot.lane.b32.xlu0 %v5931_v43, %s5347_s11  ;;  %1718 = vrot.lane.b32.xlu1 %v5944_v56, %s5346_s10 }
 0x1ed   : > { %1838 = vrot.lane.b32.xlu0 %v5934_v2, %s5347_s11  ;;  %1722 = vrot.lane.b32.xlu1 %v5952_v0, %s5346_s10 }
 0x1f1   : > { %1952 = vrot.lane.b32.xlu0 %v5931_v43, %s5348_s12  ;;  %1836 = vrot.lane.b32.xlu1 %v5944_v56, %s5347_s11 }
 0x1f5   : > { %1956 = vrot.lane.b32.xlu0 %v5934_v2, %s5348_s12  ;;  %1840 = vrot.lane.b32.xlu1 %v5952_v0, %s5347_s11 }
 0x1f9   : > { %2172 = vrot.lane.b32.xlu0 %v5931_v43, %s5349_s13  ;;  %1954 = vrot.lane.b32.xlu1 %v5944_v56, %s5348_s12 }
 0x1fd   : > { %2176 = vrot.lane.b32.xlu0 %v5934_v2, %s5349_s13  ;;  %1958 = vrot.lane.b32.xlu1 %v5952_v0, %s5348_s12 }
 0x201   : > { %2290 = vrot.lane.b32.xlu0 %v5931_v43, %s5350_s14  ;;  %2174 = vrot.lane.b32.xlu1 %v5944_v56, %s5349_s13 }
 0x205   : > { %2294 = vrot.lane.b32.xlu0 %v5934_v2, %s5350_s14  ;;  %2178 = vrot.lane.b32.xlu1 %v5952_v0, %s5349_s13 }
 0x209   : > { %2408 = vrot.lane.b32.xlu0 %v5931_v43, %s5351_s15  ;;  %2292 = vrot.lane.b32.xlu1 %v5944_v56, %s5350_s14 }
 0x20d   : > { %2412 = vrot.lane.b32.xlu0 %v5934_v2, %s5351_s15  ;;  %2296 = vrot.lane.b32.xlu1 %v5952_v0, %s5350_s14 }
 0x211   : > { %2526 = vrot.lane.b32.xlu0 %v5931_v43, %s5352_s16  ;;  %2410 = vrot.lane.b32.xlu1 %v5944_v56, %s5351_s15 }
 0x215   : > { %2530 = vrot.lane.b32.xlu0 %v5934_v2, %s5352_s16  ;;  %2414 = vrot.lane.b32.xlu1 %v5952_v0, %s5351_s15 }
 0x219   : > { %2528 = vrot.lane.b32.xlu1 %v5944_v56, %s5352_s16 }
 0x21d   : > { %2532 = vrot.lane.b32.xlu1 %v5952_v0, %s5352_s16 }
 0x24f   : > { %v1603_v1 = vpop.permute.xlu0 %1602  ;;  %v1599_v3 = vpop.permute.xlu1 %1598 }
 0x253   : > { %v1717_v4 = vpop.permute.xlu0 %1716  ;;  %v1601_v34 = vpop.permute.xlu1 %1600 }
 0x254   : > { %v1607_v48 = vsel %vm303_vm0, %v1601_v34, %v1603_v1  ;;  %v1608_v21 = vsel %vm303_vm0, %v1599_v3, %v1601_v34 }
 0x255   : > { %v1611_v22 = vmul.f32 %v1608_v21, %v5520_v17  ;;  %v1612_v57 = vmul.f32 %v1607_v48, %v5529_v20 }
 0x257   : > { %v1615_v58 = vpack.c.bf16 %v1611_v22, %v1611_v22  ;;  %v1721_v49 = vpop.permute.xlu0 %1720  ;;  %v1605_v35 = vpop.permute.xlu1 %1604  ;;  %v1616_v12 = vpack.c.bf16 %v1612_v57, %v1612_v57 }
 0x258   : > { %v1606_v61 = vsel %vm303_vm0, %v1603_v1, %v1605_v35  ;;  %v1609_v50 = vsel %vm303_vm0, %v1605_v35, %v1599_v3 }
 0x259   : > { %v1610_v9 = vmul.f32 %v1609_v50, %v5526_v19  ;;  %v1613_v13 = vmul.f32 %v1606_v61, %v5523_v18  ;;  %4950 = vmatprep.subr.msk.bf16.mxu0 %vm343_vm2, %v1615_v58  ;;  %v1625_v58 = vsel %vm343_vm2, %v1616_v12, 0 }
 0x25b   : > { %v1614_v34 = vpack.c.bf16 %v1610_v9, %v1610_v9  ;;  %v1617_v21 = vpack.c.bf16 %v1613_v13, %v1613_v13  ;;  %v1835_v17 = vpop.permute.xlu0 %1834  ;;  %v1719_v48 = vpop.permute.xlu1 %1718 }
 0x25c   : > { %v1725_v22 = vsel %vm450_vm1, %v1719_v48, %v1721_v49  ;;  %v1726_v1 = vsel %vm450_vm1, %v1717_v4, %v1719_v48 }
 0x25d   : > { %v1729_v20 = vmul.f32 %v1726_v1, %v5533_v23  ;;  %v1730_v3 = vmul.f32 %v1725_v22, %v5561_v44  ;;  %4952 = vmatprep.subr.msk.bf16.mxu1 %vm343_vm2, %v1617_v21  ;;  %v1619_v57 = vsel %vm343_vm2, %v1614_v34, 0 }
 0x25e   : > { %1631 = vmatpush1.bf16.msra.mxu0 %v1619_v57  ;;  %1672 = vmatpush1.bf16.msra.mxu1 %v1625_v58 }
 0x25f   : > { %v1733_v35 = vpack.c.bf16 %v1729_v20, %v1729_v20  ;;  %v1723_v61 = vpop.permute.xlu1 %1722  ;;  %v1734_v13 = vpack.c.bf16 %v1730_v3, %v1730_v3  ;;  %v1839_v48 = vpop.permute.xlu0 %1838  ;;  %v6976_v20 = vmov 0  }
 0x260   : > { %v1724_v50 = vsel %vm450_vm1, %v1721_v49, %v1723_v61  ;;  %v1727_v9 = vsel %vm450_vm1, %v1723_v61, %v1717_v4 }
 0x261   : > { %v1728_v22 = vmul.f32 %v1727_v9, %v5550_v39  ;;  %v1731_v21 = vmul.f32 %v1724_v50, %v5553_v40  ;;  %4951 = vmatmul.mubr.msk.bf16.vlgmr.msra.gmra.mrb[4].mxu0 %vm339_vm3, %v5569_v46  ;;  %4953 = vmatmul.mubr.msk.bf16.vlgmr.msra.gmra.mrb[4].mxu1 %vm339_vm3, %v5569_v46  ;;  %v1743_v57 = vsel %vm343_vm2, %v1734_v13, 0 }
 0x262   : > { %4954 = vmatprep.subr.msk.bf16.mxu0 %vm343_vm2, %v1733_v35  ;;  %1780 = vmatprep.mubr.bf16.mxu0 %v6976_v20 }
 0x263   : > { %v1732_v49 = vpack.c.bf16 %v1728_v22, %v1728_v22  ;;  %v1735_v12 = vpack.c.bf16 %v1731_v21, %v1731_v21  ;;  %v1837_v34 = vpop.permute.xlu1 %1836  ;;  %1821 = vmatprep.mubr.bf16.mxu1 %v6976_v20  ;;  %v1953_v35 = vpop.permute.xlu0 %1952 }
 0x264   : > { %v1843_v4 = vsel %vm597_vm4, %v1837_v34, %v1839_v48  ;;  %v1844_v1 = vsel %vm597_vm4, %v1835_v17, %v1837_v34 }
 0x265   : > { %v1847_v3 = vmul.f32 %v1844_v1, %v5578_v53  ;;  %4956 = vmatprep.subr.msk.bf16.mxu1 %vm343_vm2, %v1735_v12  ;;  %v1737_v46 = vsel %vm343_vm2, %v1732_v49, 0  ;;  %v1848_v58 = vmul.f32 %v1843_v4, %v5597_v5 }
 0x266   : > { %1749 = vmatpush1.bf16.msra.mxu0 %v1737_v46  ;;  %1790 = vmatpush1.bf16.msra.mxu1 %v1743_v57 }
 0x267   : > { %v1851_v61 = vpack.c.bf16 %v1847_v3, %v1847_v3  ;;  %v1841_v50 = vpop.permute.xlu1 %1840  ;;  %v1852_v13 = vpack.c.bf16 %v1848_v58, %v1848_v58  ;;  %v1957_v3 = vpop.permute.xlu0 %1956 }
 0x268   : > { %v1842_v9 = vsel %vm597_vm4, %v1839_v48, %v1841_v50  ;;  %v1845_v22 = vsel %vm597_vm4, %v1841_v50, %v1835_v17 }
 0x269   : > { %v1846_v21 = vmul.f32 %v1845_v22, %v5594_v63  ;;  %v1849_v12 = vmul.f32 %v1842_v9, %v5604_v14  ;;  %4958 = vmatprep.subr.msk.bf16.mxu0 %vm343_vm2, %v1851_v61  ;;  %v1861_v57 = vsel %vm343_vm2, %v1852_v13, 0 }
 0x26b   : > { %v1850_v49 = vpack.c.bf16 %v1846_v21, %v1846_v21  ;;  %v1853_v34 = vpack.c.bf16 %v1849_v12, %v1849_v12  ;;  %v1955_v4 = vpop.permute.xlu1 %1954 }
 0x26c   : > { %v1962_v1 = vsel %vm744_vm5, %v1953_v35, %v1955_v4  ;;  %v1961_v48 = vsel %vm744_vm5, %v1955_v4, %v1957_v3  ;;  %v2173_v4 = vpop.permute.xlu0 %2172 }
 0x26d   : > { %v1965_v46 = vmul.f32 %v1962_v1, %v5621_v30  ;;  %4955 = vmatmul.mubr.msk.bf16.vlgmr.msra.gmra.mrb[4].mxu0 %vm339_vm3, %v5626_v31  ;;  %4957 = vmatmul.mubr.msk.bf16.vlgmr.msra.gmra.mrb[4].mxu1 %vm339_vm3, %v5626_v31  ;;  %v1855_v17 = vsel %vm343_vm2, %v1850_v49, 0  ;;  %v1966_v9 = vmul.f32 %v1961_v48, %v5634_v41 }
 0x26e   : > { %4960 = vmatprep.subr.msk.bf16.mxu1 %vm343_vm2, %v1853_v34  ;;  %1867 = vmatpush1.bf16.msra.mxu0 %v1855_v17 }
 0x26f   : > { %v1969_v58 = vpack.c.bf16 %v1965_v46, %v1965_v46  ;;  %1908 = vmatpush1.bf16.msra.mxu1 %v1861_v57  ;;  %v1959_v61 = vpop.permute.xlu1 %1958  ;;  %1898 = vmatprep.mubr.bf16.mxu0 %v6976_v20  ;;  %v1970_v13 = vpack.c.bf16 %v1966_v9, %v1966_v9  ;;  %v2073_v46 = vpack.c.bf16 %v5952_v0, %v5952_v0 }
 0x270   : > { %v1960_v50 = vsel %vm744_vm5, %v1957_v3, %v1959_v61  ;;  %v1963_v31 = vsel %vm744_vm5, %v1959_v61, %v1953_v35  ;;  %1939 = vmatprep.mubr.bf16.mxu1 %v6976_v20  ;;  %v2071_v3 = vpack.c.bf16 %v5944_v56, %v5944_v56  ;;  %v2070_v61 = vpack.c.bf16 %v5931_v43, %v5931_v43 }
 0x271   : > { %v1964_v22 = vmul.f32 %v1963_v31, %v5631_v38  ;;  %v1967_v21 = vmul.f32 %v1960_v50, %v5644_v47  ;;  %4962 = vmatprep.subr.msk.bf16.mxu0 %vm343_vm2, %v1969_v58  ;;  %v1979_v1 = vsel %vm343_vm2, %v1970_v13, 0  ;;  %v2072_v50 = vpack.c.bf16 %v5934_v2, %v5934_v2 }
 0x273   : > { %v1971_v12 = vpack.c.bf16 %v1967_v21, %v1967_v21  ;;  %v1968_v49 = vpack.c.bf16 %v1964_v22, %v1964_v22  ;;  %v2175_v34 = vpop.permute.xlu1 %2174  ;;  %v2075_v21 = vsel %vm343_vm2, %v2070_v61, 0 }
 0x274   : > { %v2182_v13 = vsel %vm998_vm6, %v2173_v4, %v2175_v34 }
 0x275   : > { %4964 = vmatprep.subr.msk.bf16.mxu1 %vm343_vm2, %v1971_v12  ;;  %v1973_v35 = vsel %vm343_vm2, %v1968_v49, 0  ;;  %v2081_v12 = vsel %vm343_vm2, %v2072_v50, 0 }
 0x277   : > { %v2179_v17 = vpop.permute.xlu1 %2178 }
 0x278   : > { %v2183_v56 = vsel %vm998_vm6, %v2179_v17, %v2173_v4 }
 0x279   : > { %4959 = vmatmul.mubr.msk.bf16.vlgmr.msra.gmra.mrb[4].mxu0 %vm339_vm3, %v5663_v6  ;;  %4961 = vmatmul.mubr.msk.bf16.vlgmr.msra.gmra.mrb[4].mxu1 %vm339_vm3, %v5663_v6  ;;  %v2177_v6 = vpop.permute.xlu0 %2176  ;;  %v2187_v57 = vmul.f32 %v2183_v56, %v5683_v25 }
 0x27a   : > { %1985 = vmatpush1.bf16.msra.mxu0 %v1973_v35  ;;  %2026 = vmatpush1.bf16.msra.mxu1 %v1979_v1  ;;  %v2181_v48 = vsel %vm998_vm6, %v2175_v34, %v2177_v6  ;;  %v2180_v43 = vsel %vm998_vm6, %v2177_v6, %v2179_v17 }
 0x27b   : > { %4966 = vmatprep.subr.msk.bf16.mxu0 %vm343_vm2, %v2071_v3  ;;  %4968 = vmatprep.subr.msk.bf16.mxu1 %vm343_vm2, %v2073_v46  ;;  %v2185_v0 = vmul.f32 %v2181_v48, %v5686_v26  ;;  %v2293_v58 = vpop.permute.xlu1 %2292  ;;  %v2191_v22 = vpack.c.bf16 %v2187_v57, %v2187_v57  ;;  %v2186_v35 = vmul.f32 %v2180_v43, %v5709_v45 }
 0x27c   : > { %2016 = vmatprep.mubr.bf16.mxu0 %v6976_v20  ;;  %2057 = vmatprep.mubr.bf16.mxu1 %v6976_v20 }
 0x27d   : > { %v2291_v31 = vpop.permute.xlu0 %2290  ;;  %v2189_v9 = vpack.c.bf16 %v2185_v0, %v2185_v0  ;;  %v2190_v3 = vpack.c.bf16 %v2186_v35, %v2186_v35 }
 0x27e   : > { %v2300_v50 = vsel %vm1145_vm7, %v2291_v31, %v2293_v58 }
 0x27f   : > { %v2297_v2 = vpop.permute.xlu1 %2296  ;;  %v2199_v61 = vsel %vm343_vm2, %v2190_v3, 0 }
 0x280   : > { %v2301_v4 = vsel %vm1145_vm7, %v2297_v2, %v2291_v31 }
 0x281   : > { %v2295_v49 = vpop.permute.xlu0 %2294  ;;  %v2305_v17 = vmul.f32 %v2301_v4, %v5731_v59 }
 0x282   : > { %v2299_v34 = vsel %vm1145_vm7, %v2293_v58, %v2295_v49 }
 0x283   : > { %v2303_v46 = vmul.f32 %v2299_v34, %v5734_v60  ;;  %v2411_v6 = vpop.permute.xlu1 %2410  ;;  %v2309_v0 = vpack.c.bf16 %v2305_v17, %v2305_v17 }
 0x285   : > { %4963 = vmatmul.mubr.msk.bf16.vlgmr.msra.gmra.mrb[4].mxu0 %vm339_vm3, %v5702_v37  ;;  %4965 = vmatmul.mubr.msk.bf16.vlgmr.msra.gmra.mrb[4].mxu1 %vm339_vm3, %v5702_v37  ;;  %v2184_v37 = vmul.f32 %v2182_v13, %v5705_v42  ;;  %v2409_v48 = vpop.permute.xlu0 %2408  ;;  %v2307_v56 = vpack.c.bf16 %v2303_v46, %v2303_v46 }
 0x286   : > { %2087 = vmatpush1.bf16.msra.mxu0 %v2075_v21  ;;  %2128 = vmatpush1.bf16.msra.mxu1 %v2081_v12  ;;  %v2418_v46 = vsel %vm1292_vm8, %v2409_v48, %v2411_v6 }
 0x287   : > { %4970 = vmatprep.subr.msk.bf16.mxu0 %vm343_vm2, %v2189_v9  ;;  %4972 = vmatprep.subr.msk.bf16.mxu1 %vm343_vm2, %v2191_v22  ;;  %v2188_v1 = vpack.c.bf16 %v2184_v37, %v2184_v37  ;;  %v2298_v9 = vsel %vm1145_vm7, %v2295_v49, %v2297_v2  ;;  %v2415_v22 = vpop.permute.xlu1 %2414 }
 0x288   : > { %2118 = vmatprep.mubr.bf16.mxu0 %v6976_v20  ;;  %2159 = vmatprep.mubr.bf16.mxu1 %v6976_v20  ;;  %v2304_v12 = vmul.f32 %v2298_v9, %v5753_v32  ;;  %v2419_v31 = vsel %vm1292_vm8, %v2415_v22, %v2409_v48 }
 0x289   : > { %v2193_v57 = vsel %vm343_vm2, %v2188_v1, 0  ;;  %v2413_v21 = vpop.permute.xlu0 %2412  ;;  %v2423_v37 = vmul.f32 %v2419_v31, %v5774_v52 }
 0x28a   : > { %v2417_v58 = vsel %vm1292_vm8, %v2411_v6, %v2413_v21  ;;  %v2308_v43 = vpack.c.bf16 %v2304_v12, %v2304_v12  ;;  %v2416_v17 = vsel %vm1292_vm8, %v2413_v21, %v2415_v22 }
 0x28b   : > { %v2421_v2 = vmul.f32 %v2417_v58, %v5777_v54  ;;  %v2529_v49 = vpop.permute.xlu1 %2528  ;;  %v2427_v4 = vpack.c.bf16 %v2423_v37, %v2423_v37 }
 0x28c   : > { %v2317_v3 = vsel %vm343_vm2, %v2308_v43, 0  ;;  %v6977_v43 = vld [vmem:[#allocation8_spill] sm:$0xff] }
 0x28d   : > { %v2527_v35 = vpop.permute.xlu0 %2526  ;;  %v2425_v34 = vpack.c.bf16 %v2421_v2, %v2421_v2 }
 0x28e   : > { %v2536_v31 = vsel %vm1439_vm9, %v2527_v35, %v2529_v49 }
 0x291   : > { %4967 = vmatmul.mubr.msk.bf16.vlgmr.msra.gmra.mrb[4].mxu0 %vm339_vm3, %v5745_v24  ;;  %4969 = vmatmul.mubr.msk.bf16.vlgmr.msra.gmra.mrb[4].mxu1 %vm339_vm3, %v5745_v24  ;;  %v2302_v24 = vmul.f32 %v2300_v50, %v5749_v28 }
 0x292   : > { %2205 = vmatpush1.bf16.msra.mxu0 %v2193_v57  ;;  %2246 = vmatpush1.bf16.msra.mxu1 %v2199_v61  ;;  %v2422_v57 = vmul.f32 %v2416_v17, %v5796_v33 }
 0x293   : > { %4974 = vmatprep.subr.msk.bf16.mxu0 %vm343_vm2, %v2307_v56  ;;  %4976 = vmatprep.subr.msk.bf16.mxu1 %vm343_vm2, %v2309_v0  ;;  %v2306_v13 = vpack.c.bf16 %v2302_v24, %v2302_v24  ;;  %v2533_v56 = vpop.permute.xlu1 %2532  ;;  %v2531_v0 = vpop.permute.xlu0 %2530 }
 0x294   : > { %2236 = vmatprep.mubr.bf16.mxu0 %v6976_v20  ;;  %2277 = vmatprep.mubr.bf16.mxu1 %v6976_v20  ;;  %v2535_v6 = vsel %vm1439_vm9, %v2529_v49, %v2531_v0  ;;  %v2537_v48 = vsel %vm1439_vm9, %v2533_v56, %v2527_v35  ;;  %v2426_v50 = vpack.c.bf16 %v2422_v57, %v2422_v57  ;;  %v6978_v49 = vld [vmem:[#allocation9_spill] sm:$0xff] }
 0x295   : > { %v2311_v1 = vsel %vm343_vm2, %v2306_v13, 0  ;;  %v2539_v9 = vmul.f32 %v2535_v6, %v5820_v55  ;;  %v2541_v22 = vmul.f32 %v2537_v48, %v5817_v36  ;;  %v2534_v13 = vsel %vm1439_vm9, %v2531_v0, %v2533_v56 }
 0x296   : > { %v2435_v58 = vsel %vm343_vm2, %v2426_v50, 0  ;;  %v2540_v2 = vmul.f32 %v2534_v13, %v6977_v43  ;;  %v2647_v6 = vmul.f32 0.33333334, %v5921_v16 }
 0x297   : > { %v2543_v24 = vpack.c.bf16 %v2539_v9, %v2539_v9  ;;  %v2545_v21 = vpack.c.bf16 %v2541_v22, %v2541_v22  ;;  %v6984_v9 = vld [vmem:[#allocation14_spill] sm:$0xff] }
 0x298   : > { %v1597_v22 = vadd.f32 %v6984_v9, %v5916_v11 }
 0x29d   : > { %4971 = vmatmul.mubr.msk.bf16.vlgmr.msra.gmra.mrb[4].mxu0 %vm339_vm3, %v5788_v15  ;;  %4973 = vmatmul.mubr.msk.bf16.vlgmr.msra.gmra.mrb[4].mxu1 %vm339_vm3, %v5788_v15  ;;  %v2420_v15 = vmul.f32 %v2418_v46, %v5792_v27  ;;  %v6981_v46 = vld [vmem:[#allocation11_spill] sm:$0xff] }
 0x29e   : > { %2323 = vmatpush1.bf16.msra.mxu0 %v2311_v1  ;;  %2364 = vmatpush1.bf16.msra.mxu1 %v2317_v3  ;;  %v6979_v1 = vld [vmem:[#allocation10_spill] sm:$0xff]  ;;  %v6980_v3 = vld [vmem:[#allocation15_spill] sm:$0xff] }
 0x29f   : > { %4978 = vmatprep.subr.msk.bf16.mxu0 %vm343_vm2, %v2425_v34  ;;  %4980 = vmatprep.subr.msk.bf16.mxu1 %vm343_vm2, %v2427_v4  ;;  %v2424_v61 = vpack.c.bf16 %v2420_v15, %v2420_v15  ;;  %v2544_v34 = vpack.c.bf16 %v2540_v2, %v2540_v2  ;;  %v1590_v17 = vmul.f32 %v6981_v46, %v6980_v3  ;;  %v6982_v15 = vld [vmem:[#allocation12_spill] sm:$0xff] }
 0x2a0   : > { %2354 = vmatprep.mubr.bf16.mxu0 %v6976_v20  ;;  %2395 = vmatprep.mubr.bf16.mxu1 %v6976_v20  ;;  %v1596_v0 = vadd.f32 %v6982_v15, %v5916_v11 }
 0x2a1   : > { %v2429_v12 = vsel %vm343_vm2, %v2424_v61, 0  ;;  %v2553_v4 = vsel %vm343_vm2, %v2544_v34, 0  ;;  %v1594_v56 = vadd.f32 %v1590_v17, %v5916_v11  ;;  %v6983_v61 = vld [vmem:[#allocation13_spill] sm:$0xff]  ;;  %v2650_v34 = vmul.f32 0.33333334, %v5937_v7 }
 0x2a2   : > { %v1595_v50 = vadd.f32 %v6983_v61, %v5916_v11  ;;  %v6242_v61 = vld [vmem:[%s5418_s8 + $0x8] sm:$0xff] }
 0x2a9   : > { %4975 = vmatmul.mubr.msk.bf16.vlgmr.msra.gmra.mrb[4].mxu0 %vm339_vm3, %v5831_v10  ;;  %4977 = vmatmul.mubr.msk.bf16.vlgmr.msra.gmra.mrb[4].mxu1 %vm339_vm3, %v5831_v10  ;;  %v2538_v10 = vmul.f32 %v2536_v31, %v5835_v29  ;;  %v2648_v31 = vmul.f32 0.33333334, %v5926_v51 }
 0x2aa   : > { %2441 = vmatpush1.bf16.msra.mxu0 %v2429_v12  ;;  %2482 = vmatpush1.bf16.msra.mxu1 %v2435_v58  ;;  %v2649_v12 = vmul.f32 0.33333334, %v5923_v62 }
 0x2ab   : > { %4982 = vmatprep.subr.msk.bf16.mxu0 %vm343_vm2, %v2543_v24  ;;  %4984 = vmatprep.subr.msk.bf16.mxu1 %vm343_vm2, %v2545_v21  ;;  %v2542_v37 = vpack.c.bf16 %v2538_v10, %v2538_v10  ;;  %v6221_v10 = vstv %s5885_s19 }
 0x2ac   : > { %2472 = vmatprep.mubr.bf16.mxu0 %v6976_v20  ;;  %2513 = vmatprep.mubr.bf16.mxu1 %v6976_v20 }
 0x2ad   : > { %v2547_v35 = vsel %vm343_vm2, %v2542_v37, 0 }
 0x2b5   : > { %4979 = vmatmul.mubr.msk.bf16.vlgmr.msra.gmra.mrb[4].mxu0 %vm339_vm3, %v6978_v49  ;;  %4981 = vmatmul.mubr.msk.bf16.vlgmr.msra.gmra.mrb[4].mxu1 %vm339_vm3, %v6978_v49 }
 0x2b6   : > { %2559 = vmatpush1.bf16.msra.mxu0 %v2547_v35  ;;  %2600 = vmatpush1.bf16.msra.mxu1 %v2553_v4 }
 0x2b7   : > { %2590 = vmatprep.mubr.bf16.mxu0 %v6976_v20  ;;  %2631 = vmatprep.mubr.bf16.mxu1 %v6976_v20 }
 0x2c1   : > { %4983 = vmatmul.mubr.msk.bf16.vlgmr.msra.gmra.mrb[4].mxu0 %vm339_vm3, %v6979_v1  ;;  %4985 = vmatmul.mubr.msk.bf16.vlgmr.msra.gmra.mrb[4].mxu1 %vm339_vm3, %v6979_v1 }
 0x2c2   : > { %2737 = vmatprep.mubr.bf16.mxu0 %v6976_v20  ;;  %2778 = vmatprep.mubr.bf16.mxu1 %v6976_v20 }
 0x394   : > { %v2592_v57 = vpop.f32.mrb[4].mxu0  ;;  %v2633_v48 = vpop.f32.mrb[4].mxu1 }
 0x395   : > { %v6214_v24 = vadd.f32 %v2592_v57, %v1594_v56  ;;  %v6216_v21 = vadd.f32 %v2633_v48, %v1596_v0  ;;  %v2594_v58 = vpop.f32.mrb[5].mxu0  ;;  %v2635_v13 = vpop.f32.mrb[5].mxu1  ;;  %v6235_v57 = vld [vmem:[%s5418_s8] sm:$0xff] }
 0x396   : > { %v6223_v2 = vadd.f32 %v2594_v58, %v1595_v50  ;;  %v6225_v37 = vadd.f32 %v2635_v13, %v1597_v22  ;;  %v2596_v49 = vpop.f32.mrb[6].mxu0  ;;  %v2637_v35 = vpop.f32.mrb[6].mxu1  ;;  %v6253_v22 = vld [vmem:[%s5418_s8 + $0x10] sm:$0xff]  ;;  %v6259_v58 = vld [vmem:[%s5418_s8 + $0x18] sm:$0xff] }
 0x397   : > { %6985 = vst [vmem:[#allocation8_spill] sm:$0xff] %v6216_v21  ;;  %v2651_v4 = vsub.f32 %v6214_v24, %v2647_v6  ;;  %v2653_v1 = vsub.f32 %v6216_v21, %v2649_v12  ;;  %v2597_v3 = vpop.f32.mrb[7].mxu0  ;;  %v2638_v46 = vpop.f32.mrb[7].mxu1  ;;  %6986 = vst [vmem:[#allocation9_spill] sm:$0xff] %v6253_v22  ;;  %v6988_v35 = vld [vmem:[#allocation5_spill] sm:$0xff] }
 0x398   : > { %v2652_v17 = vsub.f32 %v6223_v2, %v2648_v31  ;;  %v2654_v56 = vsub.f32 %v6225_v37, %v2650_v34  ;;  %6987 = vst [vmem:[#allocation10_spill] sm:$0xff] %v6259_v58 }
 0x399   : > { %v2656_v15 = vmul.f32 %v6221_v10, %v2651_v4  ;;  %v2658_v6 = vmul.f32 %v6221_v10, %v2653_v1 }
 0x39a   : > { %v2657_v0 = vmul.f32 %v6221_v10, %v2652_v17  ;;  %v2659_v9 = vmul.f32 %v6221_v10, %v2654_v56  ;;  %v6989_v56 = vld [vmem:[#allocation6_spill] sm:$0xff] }
 0x39b   : > { %v6238_v48 = vadd.f32 %v6235_v57, %v2656_v15  ;;  %v6256_v12 = vadd.f32 %v6253_v22, %v2658_v6 }
 0x39c   : > { %v6245_v50 = vadd.f32 %v6242_v61, %v2657_v0  ;;  %v6262_v31 = vadd.f32 %v6259_v58, %v2659_v9 }
 0x39d   : > { %2673 = vrot.lane.b32.xlu0 %v6238_v48, %s5345_s9 }
 0x39e   : > { %2675 = vrot.lane.b32.xlu1 %v6245_v50, %s5345_s9 }
 0x3a1   : > { %2677 = vrot.lane.b32.xlu0 %v6256_v12, %s5345_s9 }
 0x3a2   : > { %2679 = vrot.lane.b32.xlu1 %v6262_v31, %s5345_s9 }
 0x3a5   : > { %2791 = vrot.lane.b32.xlu0 %v6238_v48, %s5346_s10 }
 0x3a6   : > { %2793 = vrot.lane.b32.xlu1 %v6245_v50, %s5346_s10 }
 0x3a9   : > { %2795 = vrot.lane.b32.xlu0 %v6256_v12, %s5346_s10 }
 0x3aa   : > { %2797 = vrot.lane.b32.xlu1 %v6262_v31, %s5346_s10 }
 0x3ad   : > { %2909 = vrot.lane.b32.xlu0 %v6238_v48, %s5347_s11 }
 0x3ae   : > { %2911 = vrot.lane.b32.xlu1 %v6245_v50, %s5347_s11 }
 0x3b1   : > { %2913 = vrot.lane.b32.xlu0 %v6256_v12, %s5347_s11 }
 0x3b2   : > { %2915 = vrot.lane.b32.xlu1 %v6262_v31, %s5347_s11 }
 0x3b5   : > { %3027 = vrot.lane.b32.xlu0 %v6238_v48, %s5348_s12 }
 0x3b6   : > { %3029 = vrot.lane.b32.xlu1 %v6245_v50, %s5348_s12 }
 0x3b9   : > { %3031 = vrot.lane.b32.xlu0 %v6256_v12, %s5348_s12 }
 0x3ba   : > { %3033 = vrot.lane.b32.xlu1 %v6262_v31, %s5348_s12 }
 0x3bd   : > { %3247 = vrot.lane.b32.xlu0 %v6238_v48, %s5349_s13 }
 0x3be   : > { %3249 = vrot.lane.b32.xlu1 %v6245_v50, %s5349_s13 }
 0x3c1   : > { %3251 = vrot.lane.b32.xlu0 %v6256_v12, %s5349_s13 }
 0x3c2   : > { %3253 = vrot.lane.b32.xlu1 %v6262_v31, %s5349_s13 }
 0x3c5   : > { %3365 = vrot.lane.b32.xlu0 %v6238_v48, %s5350_s14 }
 0x3c6   : > { %3367 = vrot.lane.b32.xlu1 %v6245_v50, %s5350_s14 }
 0x3c9   : > { %3369 = vrot.lane.b32.xlu0 %v6256_v12, %s5350_s14 }
 0x3ca   : > { %3371 = vrot.lane.b32.xlu1 %v6262_v31, %s5350_s14 }
 0x3cd   : > { %3483 = vrot.lane.b32.xlu0 %v6238_v48, %s5351_s15 }
 0x3ce   : > { %3485 = vrot.lane.b32.xlu1 %v6245_v50, %s5351_s15 }
 0x3d1   : > { %3487 = vrot.lane.b32.xlu0 %v6256_v12, %s5351_s15 }
 0x3d2   : > { %3489 = vrot.lane.b32.xlu1 %v6262_v31, %s5351_s15 }
 0x3d5   : > { %3601 = vrot.lane.b32.xlu0 %v6238_v48, %s5352_s16 }
 0x3d6   : > { %3603 = vrot.lane.b32.xlu1 %v6245_v50, %s5352_s16 }
 0x3d9   : > { %3605 = vrot.lane.b32.xlu0 %v6256_v12, %s5352_s16 }
 0x3da   : > { %3607 = vrot.lane.b32.xlu1 %v6262_v31, %s5352_s16 }
 0x40f   : > { %v2674_v13 = vpop.permute.xlu0 %2673 }
 0x410   : > { %v2676_v34 = vpop.permute.xlu1 %2675 }
 0x411   : > { %v2683_v49 = vsel %vm303_vm0, %v2674_v13, %v2676_v34 }
 0x412   : > { %v2686_v4 = vmul.f32 %v2683_v49, %v6988_v35 }
 0x413   : > { %v2678_v1 = vpop.permute.xlu0 %2677 }
 0x414   : > { %v2690_v3 = vpack.c.bf16 %v2686_v4, %v2686_v4  ;;  %v2682_v46 = vsel %vm303_vm0, %v2676_v34, %v2678_v1  ;;  %v2680_v17 = vpop.permute.xlu1 %2679 }
 0x415   : > { %v2687_v15 = vmul.f32 %v2682_v46, %v6989_v56  ;;  %v2681_v0 = vsel %vm303_vm0, %v2678_v1, %v2680_v17  ;;  %v2684_v6 = vsel %vm303_vm0, %v2680_v17, %v2674_v13 }
 0x416   : > { %v2685_v9 = vmul.f32 %v2684_v6, %v5526_v19  ;;  %v2688_v58 = vmul.f32 %v2681_v0, %v5523_v18  ;;  %4986 = vmatprep.subr.msk.bf16.mxu0 %vm343_vm2, %v2690_v3 }
 0x417   : > { %v2691_v49 = vpack.c.bf16 %v2687_v15, %v2687_v15  ;;  %v2792_v4 = vpop.permute.xlu0 %2791 }
 0x418   : > { %v2689_v35 = vpack.c.bf16 %v2685_v9, %v2685_v9  ;;  %v2692_v22 = vpack.c.bf16 %v2688_v58, %v2688_v58  ;;  %v2794_v34 = vpop.permute.xlu1 %2793 }
 0x419   : > { %v2801_v46 = vsel %vm450_vm1, %v2792_v4, %v2794_v34  ;;  %v2700_v56 = vsel %vm343_vm2, %v2691_v49, 0 }
 0x41a   : > { %v2804_v1 = vmul.f32 %v2801_v46, %v5533_v23  ;;  %4988 = vmatprep.subr.msk.bf16.mxu1 %vm343_vm2, %v2692_v22  ;;  %v2694_v13 = vsel %vm343_vm2, %v2689_v35, 0 }
 0x41b   : > { %v2796_v17 = vpop.permute.xlu0 %2795  ;;  %2706 = vmatpush1.bf16.msra.mxu0 %v2694_v13  ;;  %2747 = vmatpush1.bf16.msra.mxu1 %v2700_v56  ;;  %v6355_v56 = vld [vmem:[%s6921_s2] sm:$0xf] }
 0x41c   : > { %v2808_v3 = vpack.c.bf16 %v2804_v1, %v2804_v1  ;;  %v2800_v15 = vsel %vm450_vm1, %v2794_v34, %v2796_v17  ;;  %v2798_v58 = vpop.permute.xlu1 %2797 }
 0x41d   : > { %v2805_v0 = vmul.f32 %v2800_v15, %v5561_v44  ;;  %v2799_v6 = vsel %vm450_vm1, %v2796_v17, %v2798_v58  ;;  %v2802_v9 = vsel %vm450_vm1, %v2798_v58, %v2792_v4 }
 0x41e   : > { %v2803_v22 = vmul.f32 %v2802_v9, %v5550_v39  ;;  %v2806_v35 = vmul.f32 %v2799_v6, %v5553_v40  ;;  %4987 = vmatmul.mubr.msk.bf16.vlgmr.msra.gmra.mrb[8].mxu0 %vm339_vm3, %v6355_v56  ;;  %4989 = vmatmul.mubr.msk.bf16.vlgmr.msra.gmra.mrb[8].mxu1 %vm339_vm3, %v6355_v56 }
 0x41f   : > { %v2809_v49 = vpack.c.bf16 %v2805_v0, %v2805_v0  ;;  %4990 = vmatprep.subr.msk.bf16.mxu0 %vm343_vm2, %v2808_v3  ;;  %v2910_v34 = vpop.permute.xlu0 %2909  ;;  %2855 = vmatprep.mubr.bf16.mxu0 %v6976_v20 }
 0x420   : > { %v2807_v4 = vpack.c.bf16 %v2803_v22, %v2803_v22  ;;  %v2810_v46 = vpack.c.bf16 %v2806_v35, %v2806_v35  ;;  %v2912_v1 = vpop.permute.xlu1 %2911  ;;  %2896 = vmatprep.mubr.bf16.mxu1 %v6976_v20 }
 0x421   : > { %v2919_v13 = vsel %vm597_vm4, %v2910_v34, %v2912_v1  ;;  %v2818_v17 = vsel %vm343_vm2, %v2809_v49, 0 }
 0x422   : > { %v2922_v15 = vmul.f32 %v2919_v13, %v5578_v53  ;;  %4992 = vmatprep.subr.msk.bf16.mxu1 %vm343_vm2, %v2810_v46  ;;  %v2812_v58 = vsel %vm343_vm2, %v2807_v4, 0 }
 0x423   : > { %v2914_v3 = vpop.permute.xlu0 %2913  ;;  %2824 = vmatpush1.bf16.msra.mxu0 %v2812_v58  ;;  %2865 = vmatpush1.bf16.msra.mxu1 %v2818_v17 }
 0x424   : > { %v2926_v0 = vpack.c.bf16 %v2922_v15, %v2922_v15  ;;  %v2918_v6 = vsel %vm597_vm4, %v2912_v1, %v2914_v3  ;;  %v2916_v9 = vpop.permute.xlu1 %2915 }
 0x425   : > { %v2923_v22 = vmul.f32 %v2918_v6, %v5597_v5  ;;  %v2917_v35 = vsel %vm597_vm4, %v2914_v3, %v2916_v9  ;;  %v2920_v49 = vsel %vm597_vm4, %v2916_v9, %v2910_v34  ;;  %v6387_v34 = vld [vmem:[%s6921_s2 + $0x4] sm:$0xf] }
 0x426   : > { %v2921_v46 = vmul.f32 %v2920_v49, %v5594_v63  ;;  %v2924_v4 = vmul.f32 %v2917_v35, %v5604_v14  ;;  %4994 = vmatprep.subr.msk.bf16.mxu0 %vm343_vm2, %v2926_v0 }
 0x427   : > { %v2927_v13 = vpack.c.bf16 %v2923_v22, %v2923_v22  ;;  %v3028_v17 = vpop.permute.xlu0 %3027 }
 0x428   : > { %v2925_v15 = vpack.c.bf16 %v2921_v46, %v2921_v46  ;;  %v2928_v58 = vpack.c.bf16 %v2924_v4, %v2924_v4  ;;  %v3030_v1 = vpop.permute.xlu1 %3029 }
 0x429   : > { %v3037_v6 = vsel %vm744_vm5, %v3028_v17, %v3030_v1  ;;  %v2936_v5 = vsel %vm343_vm2, %v2927_v13, 0 }
 0x42a   : > { %v3040_v3 = vmul.f32 %v3037_v6, %v5621_v30  ;;  %4991 = vmatmul.mubr.msk.bf16.vlgmr.msra.gmra.mrb[8].mxu0 %vm339_vm3, %v6387_v34  ;;  %4993 = vmatmul.mubr.msk.bf16.vlgmr.msra.gmra.mrb[8].mxu1 %vm339_vm3, %v6387_v34  ;;  %v2930_v0 = vsel %vm343_vm2, %v2925_v15, 0 }
 0x42b   : > { %4996 = vmatprep.subr.msk.bf16.mxu1 %vm343_vm2, %v2928_v58  ;;  %v3032_v9 = vpop.permute.xlu0 %3031  ;;  %2942 = vmatpush1.bf16.msra.mxu0 %v2930_v0 }
 0x42c   : > { %v3044_v22 = vpack.c.bf16 %v3040_v3, %v3040_v3  ;;  %v3036_v35 = vsel %vm744_vm5, %v3030_v1, %v3032_v9  ;;  %2983 = vmatpush1.bf16.msra.mxu1 %v2936_v5  ;;  %v3034_v49 = vpop.permute.xlu1 %3033  ;;  %2973 = vmatprep.mubr.bf16.mxu0 %v6976_v20 }
 0x42d   : > { %v3035_v46 = vsel %vm744_vm5, %v3032_v9, %v3034_v49  ;;  %v3038_v4 = vsel %vm744_vm5, %v3034_v49, %v3028_v17  ;;  %3014 = vmatprep.mubr.bf16.mxu1 %v6976_v20  ;;  %v3041_v13 = vmul.f32 %v3036_v35, %v5634_v41  ;;  %v6411_v17 = vld [vmem:[%s6921_s2 + $0x8] sm:$0xf]  ;;  %v3146_v35 = vpack.c.bf16 %v6245_v50, %v6245_v50 }
 0x42e   : > { %v3039_v15 = vmul.f32 %v3038_v4, %v5631_v38  ;;  %v3042_v58 = vmul.f32 %v3035_v46, %v5644_v47  ;;  %4998 = vmatprep.subr.msk.bf16.mxu0 %vm343_vm2, %v3044_v22  ;;  %v3148_v49 = vpack.c.bf16 %v6262_v31, %v6262_v31 }
 0x42f   : > { %v3045_v1 = vpack.c.bf16 %v3041_v13, %v3041_v13  ;;  %v3248_v3 = vpop.permute.xlu0 %3247 }
 0x430   : > { %v3046_v5 = vpack.c.bf16 %v3042_v58, %v3042_v58  ;;  %v3043_v6 = vpack.c.bf16 %v3039_v15, %v3039_v15  ;;  %v3250_v0 = vpop.permute.xlu1 %3249 }
 0x431   : > { %v3054_v22 = vsel %vm343_vm2, %v3045_v1, 0  ;;  %v3145_v1 = vpack.c.bf16 %v6238_v48, %v6238_v48 }
 0x432   : > { %5000 = vmatprep.subr.msk.bf16.mxu1 %vm343_vm2, %v3046_v5  ;;  %v3048_v9 = vsel %vm343_vm2, %v3043_v6, 0  ;;  %v3147_v6 = vpack.c.bf16 %v6256_v12, %v6256_v12  ;;  %v3257_v12 = vsel %vm998_vm6, %v3248_v3, %v3250_v0 }
 0x433   : > { %v3252_v46 = vpop.permute.xlu0 %3251 }
 0x434   : > { %v3254_v4 = vpop.permute.xlu1 %3253  ;;  %v3256_v13 = vsel %vm998_vm6, %v3250_v0, %v3252_v46  ;;  %v3156_v48 = vsel %vm343_vm2, %v3147_v6, 0 }
 0x435   : > { %v3258_v50 = vsel %vm998_vm6, %v3254_v4, %v3248_v3  ;;  %v3260_v31 = vmul.f32 %v3256_v13, %v5686_v26  ;;  %v3255_v13 = vsel %vm998_vm6, %v3252_v46, %v3254_v4 }
 0x436   : > { %4995 = vmatmul.mubr.msk.bf16.vlgmr.msra.gmra.mrb[8].mxu0 %vm339_vm3, %v6411_v17  ;;  %4997 = vmatmul.mubr.msk.bf16.vlgmr.msra.gmra.mrb[8].mxu1 %vm339_vm3, %v6411_v17  ;;  %v3262_v15 = vmul.f32 %v3258_v50, %v5683_v25 }
 0x437   : > { %3060 = vmatpush1.bf16.msra.mxu0 %v3048_v9  ;;  %3101 = vmatpush1.bf16.msra.mxu1 %v3054_v22  ;;  %v3366_v58 = vpop.permute.xlu0 %3365  ;;  %v3264_v9 = vpack.c.bf16 %v3260_v31, %v3260_v31 }
 0x438   : > { %5002 = vmatprep.subr.msk.bf16.mxu0 %vm343_vm2, %v3146_v35  ;;  %5004 = vmatprep.subr.msk.bf16.mxu1 %vm343_vm2, %v3148_v49  ;;  %v3368_v5 = vpop.permute.xlu1 %3367  ;;  %v3266_v22 = vpack.c.bf16 %v3262_v15, %v3262_v15  ;;  %v6440_v35 = vld [vmem:[%s6921_s2 + $0xc] sm:$0xf]  ;;  %v3150_v49 = vsel %vm343_vm2, %v3145_v1, 0  ;;  %v3259_v15 = vmul.f32 %v3257_v12, %v5705_v42  ;;  %v3261_v1 = vmul.f32 %v3255_v13, %v5709_v45  ;;  %v6467_v12 = vld [vmem:[%s6921_s2 + $0x10] sm:$0xf] }
 0x439   : > { %3091 = vmatprep.mubr.bf16.mxu0 %v6976_v20  ;;  %3132 = vmatprep.mubr.bf16.mxu1 %v6976_v20  ;;  %6990 = vst [vmem:[#allocation15_spill] sm:$0xff] %v6440_v35  ;;  %6991 = vst [vmem:[#allocation11_spill] sm:$0xff] %v6467_v12 }
 0x43a   : > { %v3263_v46 = vpack.c.bf16 %v3259_v15, %v3259_v15  ;;  %v3265_v4 = vpack.c.bf16 %v3261_v1, %v3261_v1  ;;  %v3375_v1 = vsel %vm1145_vm7, %v3366_v58, %v3368_v5 }
 0x43b   : > { %v3370_v50 = vpop.permute.xlu0 %3369 }
 0x43c   : > { %v3372_v31 = vpop.permute.xlu1 %3371  ;;  %v3374_v3 = vsel %vm1145_vm7, %v3368_v5, %v3370_v50  ;;  %v3268_v13 = vsel %vm343_vm2, %v3263_v46, 0  ;;  %v3274_v15 = vsel %vm343_vm2, %v3265_v4, 0  ;;  %v3377_v46 = vmul.f32 %v3375_v1, %v5749_v28  ;;  %v6494_v1 = vld [vmem:[%s6921_s2 + $0x14] sm:$0xf] }
 0x43d   : > { %v3376_v0 = vsel %vm1145_vm7, %v3372_v31, %v3366_v58  ;;  %v3378_v6 = vmul.f32 %v3374_v3, %v5734_v60  ;;  %v3373_v3 = vsel %vm1145_vm7, %v3370_v50, %v3372_v31 }
 0x43e   : > { %v3379_v4 = vmul.f32 %v3373_v3, %v5753_v32  ;;  %v3381_v50 = vpack.c.bf16 %v3377_v46, %v3377_v46 }
 0x440   : > { %v3383_v31 = vpack.c.bf16 %v3379_v4, %v3379_v4  ;;  %v3386_v3 = vsel %vm343_vm2, %v3381_v50, 0 }
 0x442   : > { %4999 = vmatmul.mubr.msk.bf16.vlgmr.msra.gmra.mrb[8].mxu0 %vm339_vm3, %v6440_v35  ;;  %5001 = vmatmul.mubr.msk.bf16.vlgmr.msra.gmra.mrb[8].mxu1 %vm339_vm3, %v6440_v35  ;;  %v3392_v46 = vsel %vm343_vm2, %v3383_v31, 0 }
 0x443   : > { %3162 = vmatpush1.bf16.msra.mxu0 %v3150_v49  ;;  %3203 = vmatpush1.bf16.msra.mxu1 %v3156_v48  ;;  %v3486_v49 = vpop.permute.xlu1 %3485  ;;  %v3382_v48 = vpack.c.bf16 %v3378_v6, %v3378_v6 }
 0x444   : > { %5006 = vmatprep.subr.msk.bf16.mxu0 %vm343_vm2, %v3264_v9  ;;  %5008 = vmatprep.subr.msk.bf16.mxu1 %vm343_vm2, %v3266_v22  ;;  %v3380_v9 = vmul.f32 %v3376_v0, %v5731_v59  ;;  %v3484_v22 = vpop.permute.xlu0 %3483 }
 0x445   : > { %3193 = vmatprep.mubr.bf16.mxu0 %v6976_v20  ;;  %3234 = vmatprep.mubr.bf16.mxu1 %v6976_v20  ;;  %v3493_v4 = vsel %vm1292_vm8, %v3484_v22, %v3486_v49 }
 0x446   : > { %v3384_v35 = vpack.c.bf16 %v3380_v9, %v3380_v9  ;;  %v3495_v50 = vmul.f32 %v3493_v4, %v5792_v27 }
 0x447   : > { %v3490_v6 = vpop.permute.xlu1 %3489 }
 0x448   : > { %v3488_v0 = vpop.permute.xlu0 %3487  ;;  %v3494_v5 = vsel %vm1292_vm8, %v3490_v6, %v3484_v22 }
 0x449   : > { %v3492_v58 = vsel %vm1292_vm8, %v3486_v49, %v3488_v0 }
 0x44a   : > { %v3496_v9 = vmul.f32 %v3492_v58, %v5777_v54  ;;  %v3491_v58 = vsel %vm1292_vm8, %v3488_v0, %v3490_v6  ;;  %v3499_v0 = vpack.c.bf16 %v3495_v50, %v3495_v50 }
 0x44b   : > { %v3497_v31 = vmul.f32 %v3491_v58, %v5796_v33 }
 0x44c   : > { %v3504_v4 = vsel %vm343_vm2, %v3499_v0, 0 }
 0x44d   : > { %v3501_v6 = vpack.c.bf16 %v3497_v31, %v3497_v31 }
 0x44e   : > { %5003 = vmatmul.mubr.msk.bf16.vlgmr.msra.gmra.mrb[8].mxu0 %vm339_vm3, %v6467_v12  ;;  %5005 = vmatmul.mubr.msk.bf16.vlgmr.msra.gmra.mrb[8].mxu1 %vm339_vm3, %v6467_v12 }
 0x44f   : > { %3280 = vmatpush1.bf16.msra.mxu0 %v3268_v13  ;;  %3321 = vmatpush1.bf16.msra.mxu1 %v3274_v15  ;;  %v3604_v13 = vpop.permute.xlu1 %3603  ;;  %v3500_v15 = vpack.c.bf16 %v3496_v9, %v3496_v9  ;;  %v3510_v58 = vsel %vm343_vm2, %v3501_v6, 0  ;;  %v6555_v6 = vld [vmem:[%s6921_s2 + $0x20] sm:$0xf] }
 0x450   : > { %5010 = vmatprep.subr.msk.bf16.mxu0 %vm343_vm2, %v3382_v48  ;;  %5012 = vmatprep.subr.msk.bf16.mxu1 %vm343_vm2, %v3384_v35  ;;  %v3498_v35 = vmul.f32 %v3494_v5, %v5774_v52  ;;  %v3602_v48 = vpop.permute.xlu0 %3601  ;;  %6993 = vst [vmem:[#allocation13_spill] sm:$0xff] %v6555_v6 }
 0x451   : > { %3311 = vmatprep.mubr.bf16.mxu0 %v6976_v20  ;;  %3352 = vmatprep.mubr.bf16.mxu1 %v6976_v20  ;;  %v3611_v50 = vsel %vm1439_vm9, %v3602_v48, %v3604_v13 }
 0x452   : > { %v3502_v12 = vpack.c.bf16 %v3498_v35, %v3498_v35 }
 0x453   : > { %v3608_v9 = vpop.permute.xlu1 %3607 }
 0x454   : > { %v3606_v5 = vpop.permute.xlu0 %3605  ;;  %v3612_v49 = vsel %vm1439_vm9, %v3608_v9, %v3602_v48 }
 0x455   : > { %v3610_v22 = vsel %vm1439_vm9, %v3604_v13, %v3606_v5  ;;  %v3609_v31 = vsel %vm1439_vm9, %v3606_v5, %v3608_v9  ;;  %v6542_v13 = vld [vmem:[%s6921_s2 + $0x1c] sm:$0xf] }
 0x456   : > { %v3614_v35 = vmul.f32 %v3610_v22, %v5820_v55  ;;  %v3613_v22 = vmul.f32 %v3611_v50, %v5835_v29  ;;  %6992 = vst [vmem:[#allocation12_spill] sm:$0xff] %v6542_v13 }
 0x458   : > { %v3617_v0 = vpack.c.bf16 %v3613_v22, %v3613_v22 }
 0x45a   : > { %5007 = vmatmul.mubr.msk.bf16.vlgmr.msra.gmra.mrb[8].mxu0 %vm339_vm3, %v6494_v1  ;;  %5009 = vmatmul.mubr.msk.bf16.vlgmr.msra.gmra.mrb[8].mxu1 %vm339_vm3, %v6494_v1  ;;  %v3622_v5 = vsel %vm343_vm2, %v3617_v0, 0 }
 0x45b   : > { %3398 = vmatpush1.bf16.msra.mxu0 %v3386_v3  ;;  %3439 = vmatpush1.bf16.msra.mxu1 %v3392_v46  ;;  %v6521_v46 = vld [vmem:[%s6921_s2 + $0x18] sm:$0xf] }
 0x45c   : > { %5014 = vmatprep.subr.msk.bf16.mxu0 %vm343_vm2, %v3500_v15  ;;  %5016 = vmatprep.subr.msk.bf16.mxu1 %vm343_vm2, %v3502_v12  ;;  %v3616_v12 = vmul.f32 %v3612_v49, %v5817_v36  ;;  %v3618_v15 = vpack.c.bf16 %v3614_v35, %v3614_v35  ;;  %v3615_v49 = vmul.f32 %v3609_v31, %v6977_v43  ;;  %v2664_v35 = vstv %s2646_s25  ;;  %v6586_v31 = vld [vmem:[%s6922_s3 + $0x18] sm:$0xff] }
 0x45d   : > { %3429 = vmatprep.mubr.bf16.mxu0 %v6976_v20  ;;  %3470 = vmatprep.mubr.bf16.mxu1 %v6976_v20  ;;  %6997 = vst [vmem:[#allocation22_spill] sm:$0xff] %v6586_v31  ;;  %v2668_v22 = vmul.f32 %v6586_v31, %v2664_v35 }
 0x45e   : > { %v3620_v3 = vpack.c.bf16 %v3616_v12, %v3616_v12  ;;  %v3619_v48 = vpack.c.bf16 %v3615_v49, %v3615_v49  ;;  %v6568_v12 = vld [vmem:[%s6922_s3] sm:$0xff] }
 0x45f   : > { %6994 = vst [vmem:[#allocation14_spill] sm:$0xff] %v6568_v12 }
 0x460   : > { %v3628_v9 = vsel %vm343_vm2, %v3619_v48, 0 }
 0x466   : > { %5011 = vmatmul.mubr.msk.bf16.vlgmr.msra.gmra.mrb[8].mxu0 %vm339_vm3, %v6521_v46  ;;  %5013 = vmatmul.mubr.msk.bf16.vlgmr.msra.gmra.mrb[8].mxu1 %vm339_vm3, %v6521_v46 }
 0x467   : > { %3516 = vmatpush1.bf16.msra.mxu0 %v3504_v4  ;;  %3557 = vmatpush1.bf16.msra.mxu1 %v3510_v58  ;;  %v6580_v58 = vld [vmem:[%s6922_s3 + $0x8] sm:$0xff] }
 0x468   : > { %5018 = vmatprep.subr.msk.bf16.mxu0 %vm343_vm2, %v3618_v15  ;;  %5020 = vmatprep.subr.msk.bf16.mxu1 %vm343_vm2, %v3620_v3  ;;  %v2665_v15 = vmul.f32 %v6568_v12, %v2664_v35  ;;  %v6574_v3 = vld [vmem:[%s6922_s3 + $0x10] sm:$0xff]  ;;  %6996 = vst [vmem:[#allocation21_spill] sm:$0xff] %v6580_v58  ;;  %v2666_v50 = vmul.f32 %v6580_v58, %v2664_v35 }
 0x469   : > { %3547 = vmatprep.mubr.bf16.mxu0 %v6976_v20  ;;  %3588 = vmatprep.mubr.bf16.mxu1 %v6976_v20  ;;  %6995 = vst [vmem:[#allocation20_spill] sm:$0xff] %v6574_v3  ;;  %v2667_v4 = vmul.f32 %v6574_v3, %v2664_v35  ;;  %v2672_v12 = vadd.f32 %v2668_v22, %v5916_v11 }
 0x46a   : > { %v2669_v49 = vadd.f32 %v2665_v15, %v5916_v11  ;;  %v3719_v58 = vsub.f32 %v5921_v16, %v6214_v24  ;;  %v3721_v35 = vsub.f32 %v5923_v62, %v6216_v21  ;;  %v3722_v22 = vsub.f32 %v5937_v7, %v6225_v37 }
 0x46b   : > { %v2671_v0 = vadd.f32 %v2667_v4, %v5916_v11  ;;  %v3720_v4 = vsub.f32 %v5926_v51, %v6223_v2 }
 0x472   : > { %5015 = vmatmul.mubr.msk.bf16.vlgmr.msra.gmra.mrb[8].mxu0 %vm339_vm3, %v6542_v13  ;;  %5017 = vmatmul.mubr.msk.bf16.vlgmr.msra.gmra.mrb[8].mxu1 %vm339_vm3, %v6542_v13 }
 0x473   : > { %3634 = vmatpush1.bf16.msra.mxu0 %v3622_v5  ;;  %3675 = vmatpush1.bf16.msra.mxu1 %v3628_v9  ;;  %v2670_v9 = vadd.f32 %v2666_v50, %v5916_v11 }
 0x474   : > { %3665 = vmatprep.mubr.bf16.mxu0 %v6976_v20  ;;  %3706 = vmatprep.mubr.bf16.mxu1 %v6976_v20 }
 0x47e   : > { %5019 = vmatmul.mubr.msk.bf16.vlgmr.msra.gmra.mrb[8].mxu0 %vm339_vm3, %v6555_v6  ;;  %5021 = vmatmul.mubr.msk.bf16.vlgmr.msra.gmra.mrb[8].mxu1 %vm339_vm3, %v6555_v6 }
 0x47f   : > { %3808 = vmatprep.mubr.bf16.mxu0 %v6976_v20  ;;  %3849 = vmatprep.mubr.bf16.mxu1 %v6976_v20 }
 0x551   : > { %v3667_v48 = vpop.f32.mrb[8].mxu0  ;;  %v3708_v5 = vpop.f32.mrb[8].mxu1 }
 0x552   : > { %v6593_v3 = vadd.f32 %v3667_v48, %v2669_v49  ;;  %v6597_v6 = vadd.f32 %v3708_v5, %v2671_v0  ;;  %v3669_v31 = vpop.f32.mrb[9].mxu0  ;;  %v3710_v15 = vpop.f32.mrb[9].mxu1 }
 0x553   : > { %v6601_v13 = vadd.f32 %v3669_v31, %v2670_v9  ;;  %v6605_v50 = vadd.f32 %v3710_v15, %v2672_v12  ;;  %v3671_v49 = vpop.f32.mrb[10].mxu0  ;;  %v3712_v48 = vpop.f32.mrb[10].mxu1 }
 0x554   : > { %v3723_v0 = vadd.f32 %v6593_v3, %v3719_v58  ;;  %v3725_v5 = vadd.f32 %v6597_v6, %v3721_v35  ;;  %v3672_v16 = vpop.f32.mrb[11].mxu0  ;;  %v3713_v62 = vpop.f32.mrb[11].mxu1 }
 0x555   : > { %v3724_v21 = vadd.f32 %v6601_v13, %v3720_v4  ;;  %v3726_v31 = vadd.f32 %v6605_v50, %v3722_v22  ;;  %v6998_v62 = vld [vmem:[#allocation9_spill] sm:$0xff] }
 0x556   : > { %v3727_v9 = vmul.f32 %v3723_v0, %v6221_v10  ;;  %v3729_v49 = vmul.f32 %v3725_v5, %v6221_v10  ;;  %v7000_v4 = vld [vmem:[#allocation5_spill] sm:$0xff] }
 0x557   : > { %v3728_v12 = vmul.f32 %v3724_v21, %v6221_v10  ;;  %v3730_v58 = vmul.f32 %v3726_v31, %v6221_v10  ;;  %v6999_v21 = vld [vmem:[#allocation10_spill] sm:$0xff] }
 0x558   : > { %v6616_v15 = vadd.f32 %v6235_v57, %v3727_v9  ;;  %v6628_v16 = vadd.f32 %v6998_v62, %v3729_v49 }
 0x559   : > { %v6620_v48 = vadd.f32 %v6242_v61, %v3728_v12  ;;  %v6631_v35 = vadd.f32 %v6999_v21, %v3730_v58  ;;  %v7001_v12 = vld [vmem:[#allocation6_spill] sm:$0xff] }
 0x55a   : > { %3744 = vrot.lane.b32.xlu0 %v6616_v15, %s5345_s9 }
 0x55b   : > { %3746 = vrot.lane.b32.xlu1 %v6620_v48, %s5345_s9 }
 0x55e   : > { %3748 = vrot.lane.b32.xlu0 %v6628_v16, %s5345_s9 }
 0x55f   : > { %3750 = vrot.lane.b32.xlu1 %v6631_v35, %s5345_s9  ;;  %s4806_s9 = smul.f32 0.125, %s5885_s19 }
 0x562   : > { %3862 = vrot.lane.b32.xlu0 %v6616_v15, %s5346_s10 }
 0x563   : > { %3864 = vrot.lane.b32.xlu1 %v6620_v48, %s5346_s10 }
 0x566   : > { %3866 = vrot.lane.b32.xlu0 %v6628_v16, %s5346_s10 }
 0x567   : > { %3868 = vrot.lane.b32.xlu1 %v6631_v35, %s5346_s10 }
 0x56a   : > { %3980 = vrot.lane.b32.xlu0 %v6616_v15, %s5347_s11 }
 0x56b   : > { %3982 = vrot.lane.b32.xlu1 %v6620_v48, %s5347_s11 }
 0x56e   : > { %3984 = vrot.lane.b32.xlu0 %v6628_v16, %s5347_s11 }
 0x56f   : > { %3986 = vrot.lane.b32.xlu1 %v6631_v35, %s5347_s11 }
 0x572   : > { %4098 = vrot.lane.b32.xlu0 %v6616_v15, %s5348_s12 }
 0x573   : > { %4100 = vrot.lane.b32.xlu1 %v6620_v48, %s5348_s12 }
 0x576   : > { %4102 = vrot.lane.b32.xlu0 %v6628_v16, %s5348_s12 }
 0x577   : > { %4104 = vrot.lane.b32.xlu1 %v6631_v35, %s5348_s12  ;;  %s265_s12 = scalar_lea.vmem %s6925_s6, %s5060_s29 }
 0x57a   : > { %4318 = vrot.lane.b32.xlu0 %v6616_v15, %s5349_s13 }
 0x57b   : > { %4320 = vrot.lane.b32.xlu1 %v6620_v48, %s5349_s13 }
 0x57e   : > { %4322 = vrot.lane.b32.xlu0 %v6628_v16, %s5349_s13 }
 0x57f   : > { %4324 = vrot.lane.b32.xlu1 %v6631_v35, %s5349_s13 }
 0x582   : > { %4436 = vrot.lane.b32.xlu0 %v6616_v15, %s5350_s14 }
 0x583   : > { %4438 = vrot.lane.b32.xlu1 %v6620_v48, %s5350_s14 }
 0x586   : > { %4440 = vrot.lane.b32.xlu0 %v6628_v16, %s5350_s14 }
 0x587   : > { %4442 = vrot.lane.b32.xlu1 %v6631_v35, %s5350_s14 }
 0x58a   : > { %4554 = vrot.lane.b32.xlu0 %v6616_v15, %s5351_s15 }
 0x58b   : > { %4556 = vrot.lane.b32.xlu1 %v6620_v48, %s5351_s15 }
 0x58e   : > { %4558 = vrot.lane.b32.xlu0 %v6628_v16, %s5351_s15 }
 0x58f   : > { %4560 = vrot.lane.b32.xlu1 %v6631_v35, %s5351_s15 }
 0x592   : > { %4672 = vrot.lane.b32.xlu0 %v6616_v15, %s5352_s16 }
 0x593   : > { %4674 = vrot.lane.b32.xlu1 %v6620_v48, %s5352_s16 }
 0x596   : > { %4676 = vrot.lane.b32.xlu0 %v6628_v16, %s5352_s16 }
 0x597   : > { %4678 = vrot.lane.b32.xlu1 %v6631_v35, %s5352_s16 }
 0x5cc   : > { %v3745_v10 = vpop.permute.xlu0 %3744 }
 0x5cd   : > { %v3747_v57 = vpop.permute.xlu1 %3746 }
 0x5ce   : > { %v3754_v61 = vsel %vm303_vm0, %v3745_v10, %v3747_v57 }
 0x5cf   : > { %v3757_v22 = vmul.f32 %v3754_v61, %v7000_v4 }
 0x5d0   : > { %v3749_v0 = vpop.permute.xlu0 %3748 }
 0x5d1   : > { %v3761_v5 = vpack.c.bf16 %v3757_v22, %v3757_v22  ;;  %v3753_v31 = vsel %vm303_vm0, %v3747_v57, %v3749_v0  ;;  %v3751_v9 = vpop.permute.xlu1 %3750 }
 0x5d2   : > { %v3758_v49 = vmul.f32 %v3753_v31, %v7001_v12  ;;  %v3752_v58 = vsel %vm303_vm0, %v3749_v0, %v3751_v9  ;;  %v3755_v62 = vsel %vm303_vm0, %v3751_v9, %v3745_v10 }
 0x5d3   : > { %v3756_v21 = vmul.f32 %v3755_v62, %v5526_v19  ;;  %v3759_v7 = vmul.f32 %v3752_v58, %v5523_v18  ;;  %5022 = vmatprep.subr.msk.bf16.mxu0 %vm343_vm2, %v3761_v5 }
 0x5d4   : > { %v3762_v61 = vpack.c.bf16 %v3758_v49, %v3758_v49  ;;  %v3863_v4 = vpop.permute.xlu0 %3862 }
 0x5d5   : > { %v3760_v22 = vpack.c.bf16 %v3756_v21, %v3756_v21  ;;  %v3763_v51 = vpack.c.bf16 %v3759_v7, %v3759_v7  ;;  %v3865_v57 = vpop.permute.xlu1 %3864 }
 0x5d6   : > { %v3872_v31 = vsel %vm450_vm1, %v3863_v4, %v3865_v57  ;;  %v3771_v12 = vsel %vm343_vm2, %v3762_v61, 0 }
 0x5d7   : > { %v3875_v0 = vmul.f32 %v3872_v31, %v5533_v23  ;;  %5024 = vmatprep.subr.msk.bf16.mxu1 %vm343_vm2, %v3763_v51  ;;  %v3765_v19 = vsel %vm343_vm2, %v3760_v22, 0 }
 0x5d8   : > { %v3867_v10 = vpop.permute.xlu0 %3866  ;;  %3777 = vmatpush1.bf16.msra.mxu0 %v3765_v19  ;;  %3818 = vmatpush1.bf16.msra.mxu1 %v3771_v12  ;;  %v7002_v19 = vld [vmem:[#allocation7_spill] sm:$0xff] }
 0x5d9   : > { %v3879_v18 = vpack.c.bf16 %v3875_v0, %v3875_v0  ;;  %v3871_v5 = vsel %vm450_vm1, %v3865_v57, %v3867_v10  ;;  %v3869_v7 = vpop.permute.xlu1 %3868 }
 0x5da   : > { %v3876_v9 = vmul.f32 %v3871_v5, %v5561_v44  ;;  %v3870_v49 = vsel %vm450_vm1, %v3867_v10, %v3869_v7  ;;  %v3873_v23 = vsel %vm450_vm1, %v3869_v7, %v3863_v4 }
 0x5db   : > { %v3874_v51 = vmul.f32 %v3873_v23, %v5550_v39  ;;  %v3877_v58 = vmul.f32 %v3870_v49, %v5553_v40  ;;  %5023 = vmatmul.mubr.msk.bf16.vlgmr.msra.gmra.mrb[12].mxu0 %vm339_vm3, %v6355_v56  ;;  %5025 = vmatmul.mubr.msk.bf16.vlgmr.msra.gmra.mrb[12].mxu1 %vm339_vm3, %v6355_v56 }
 0x5dc   : > { %v3880_v62 = vpack.c.bf16 %v3876_v9, %v3876_v9  ;;  %5026 = vmatprep.subr.msk.bf16.mxu0 %vm343_vm2, %v3879_v18  ;;  %v3981_v44 = vpop.permute.xlu0 %3980  ;;  %3926 = vmatprep.mubr.bf16.mxu0 %v6976_v20 }
 0x5dd   : > { %v3878_v21 = vpack.c.bf16 %v3874_v51, %v3874_v51  ;;  %v3881_v61 = vpack.c.bf16 %v3877_v58, %v3877_v58  ;;  %v3983_v22 = vpop.permute.xlu1 %3982  ;;  %3967 = vmatprep.mubr.bf16.mxu1 %v6976_v20 }
 0x5de   : > { %v3990_v39 = vsel %vm597_vm4, %v3981_v44, %v3983_v22  ;;  %v3889_v40 = vsel %vm343_vm2, %v3880_v62, 0 }
 0x5df   : > { %v3993_v4 = vmul.f32 %v3990_v39, %v5578_v53  ;;  %5028 = vmatprep.subr.msk.bf16.mxu1 %vm343_vm2, %v3881_v61  ;;  %v3883_v56 = vsel %vm343_vm2, %v3878_v21, 0 }
 0x5e0   : > { %v3985_v57 = vpop.permute.xlu0 %3984  ;;  %3895 = vmatpush1.bf16.msra.mxu0 %v3883_v56  ;;  %3936 = vmatpush1.bf16.msra.mxu1 %v3889_v40 }
 0x5e1   : > { %v3997_v31 = vpack.c.bf16 %v3993_v4, %v3993_v4  ;;  %v3989_v12 = vsel %vm597_vm4, %v3983_v22, %v3985_v57  ;;  %v3987_v0 = vpop.permute.xlu1 %3986 }
 0x5e2   : > { %v3994_v10 = vmul.f32 %v3989_v12, %v7002_v19  ;;  %v3988_v18 = vsel %vm597_vm4, %v3985_v57, %v3987_v0  ;;  %v3991_v53 = vsel %vm597_vm4, %v3987_v0, %v3981_v44  ;;  %v4218_v19 = vpack.c.bf16 %v6628_v16, %v6628_v16 }
 0x5e3   : > { %v3992_v5 = vmul.f32 %v3991_v53, %v5594_v63  ;;  %v3995_v7 = vmul.f32 %v3988_v18, %v5604_v14  ;;  %5027 = vmatmul.mubr.msk.bf16.vlgmr.msra.gmra.mrb[16].mxu0 %vm339_vm3, %v6387_v34  ;;  %5029 = vmatmul.mubr.msk.bf16.vlgmr.msra.gmra.mrb[16].mxu1 %vm339_vm3, %v6387_v34  ;;  %v4219_v18 = vpack.c.bf16 %v6631_v35, %v6631_v35 }
 0x5e4   : > { %v3998_v9 = vpack.c.bf16 %v3994_v10, %v3994_v10  ;;  %5030 = vmatprep.subr.msk.bf16.mxu0 %vm343_vm2, %v3997_v31  ;;  %v4099_v49 = vpop.permute.xlu0 %4098  ;;  %4044 = vmatprep.mubr.bf16.mxu0 %v6976_v20  ;;  %v4217_v53 = vpack.c.bf16 %v6620_v48, %v6620_v48 }
 0x5e5   : > { %v3996_v23 = vpack.c.bf16 %v3992_v5, %v3992_v5  ;;  %v3999_v51 = vpack.c.bf16 %v3995_v7, %v3995_v7  ;;  %v4101_v58 = vpop.permute.xlu1 %4100  ;;  %4085 = vmatprep.mubr.bf16.mxu1 %v6976_v20 }
 0x5e6   : > { %v4108_v63 = vsel %vm744_vm5, %v4099_v49, %v4101_v58  ;;  %v4007_v14 = vsel %vm343_vm2, %v3998_v9, 0 }
 0x5e7   : > { %v4111_v62 = vmul.f32 %v4108_v63, %v5621_v30  ;;  %5032 = vmatprep.subr.msk.bf16.mxu1 %vm343_vm2, %v3999_v51  ;;  %v4001_v34 = vsel %vm343_vm2, %v3996_v23, 0  ;;  %v7003_v51 = vld [vmem:[#allocation15_spill] sm:$0xff] }
 0x5e8   : > { %v4103_v44 = vpop.permute.xlu0 %4102  ;;  %4013 = vmatpush1.bf16.msra.mxu0 %v4001_v34  ;;  %4054 = vmatpush1.bf16.msra.mxu1 %v4007_v14 }
 0x5e9   : > { %v4115_v21 = vpack.c.bf16 %v4111_v62, %v4111_v62  ;;  %v4107_v61 = vsel %vm744_vm5, %v4101_v58, %v4103_v44  ;;  %v4105_v22 = vpop.permute.xlu1 %4104 }
 0x5ea   : > { %v4112_v39 = vmul.f32 %v4107_v61, %v5634_v41  ;;  %v4106_v40 = vsel %vm744_vm5, %v4103_v44, %v4105_v22  ;;  %v4109_v30 = vsel %vm744_vm5, %v4105_v22, %v4099_v49 }
 0x5eb   : > { %v4110_v4 = vmul.f32 %v4109_v30, %v5631_v38  ;;  %v4113_v56 = vmul.f32 %v4106_v40, %v5644_v47  ;;  %5031 = vmatmul.mubr.msk.bf16.vlgmr.msra.gmra.mrb[20].mxu0 %vm339_vm3, %v6411_v17  ;;  %5033 = vmatmul.mubr.msk.bf16.vlgmr.msra.gmra.mrb[20].mxu1 %vm339_vm3, %v6411_v17  ;;  %v4216_v47 = vpack.c.bf16 %v6616_v15, %v6616_v15 }
 0x5ec   : > { %v4116_v57 = vpack.c.bf16 %v4112_v39, %v4112_v39  ;;  %5034 = vmatprep.subr.msk.bf16.mxu0 %vm343_vm2, %v4115_v21  ;;  %v4319_v41 = vpop.permute.xlu0 %4318  ;;  %4162 = vmatprep.mubr.bf16.mxu0 %v6976_v20 }
 0x5ed   : > { %v4114_v31 = vpack.c.bf16 %v4110_v4, %v4110_v4  ;;  %v4117_v12 = vpack.c.bf16 %v4113_v56, %v4113_v56  ;;  %v4321_v0 = vpop.permute.xlu1 %4320  ;;  %4203 = vmatprep.mubr.bf16.mxu1 %v6976_v20 }
 0x5ee   : > { %v4125_v38 = vsel %vm343_vm2, %v4116_v57, 0  ;;  %v4328_v17 = vsel %vm998_vm6, %v4319_v41, %v4321_v0 }
 0x5ef   : > { %5036 = vmatprep.subr.msk.bf16.mxu1 %vm343_vm2, %v4117_v12  ;;  %v4119_v10 = vsel %vm343_vm2, %v4114_v31, 0  ;;  %v4330_v7 = vmul.f32 %v4328_v17, %v5705_v42  ;;  %v4221_v42 = vsel %vm343_vm2, %v4216_v47, 0 }
 0x5f0   : > { %v4323_v5 = vpop.permute.xlu0 %4322  ;;  %4131 = vmatpush1.bf16.msra.mxu0 %v4119_v10  ;;  %4172 = vmatpush1.bf16.msra.mxu1 %v4125_v38 }
 0x5f1   : > { %v4327_v15 = vsel %vm998_vm6, %v4321_v0, %v4323_v5  ;;  %5040 = vmatprep.subr.msk.bf16.mxu1 %vm343_vm2, %v4219_v18  ;;  %v4325_v16 = vpop.permute.xlu1 %4324  ;;  %5038 = vmatprep.subr.msk.bf16.mxu0 %vm343_vm2, %v4217_v53 }
 0x5f2   : > { %v4331_v9 = vmul.f32 %v4327_v15, %v5686_v26  ;;  %v4326_v35 = vsel %vm998_vm6, %v4323_v5, %v4325_v16  ;;  %v4329_v48 = vsel %vm998_vm6, %v4325_v16, %v4319_v41  ;;  %v4227_v26 = vsel %vm343_vm2, %v4218_v19, 0  ;;  %v7004_v41 = vld [vmem:[#allocation11_spill] sm:$0xff] }
 0x5f3   : > { %v4332_v49 = vmul.f32 %v4326_v35, %v5709_v45  ;;  %v4333_v23 = vmul.f32 %v4329_v48, %v5683_v25  ;;  %5035 = vmatmul.mubr.msk.bf16.vlgmr.msra.gmra.mrb[24].mxu0 %vm339_vm3, %v7003_v51  ;;  %5037 = vmatmul.mubr.msk.bf16.vlgmr.msra.gmra.mrb[24].mxu1 %vm339_vm3, %v7003_v51  ;;  %v4334_v25 = vpack.c.bf16 %v4330_v7, %v4330_v7 }
 0x5f4   : > { %v4335_v58 = vpack.c.bf16 %v4331_v9, %v4331_v9  ;;  %v4437_v63 = vpop.permute.xlu0 %4436  ;;  %4233 = vmatpush1.bf16.msra.mxu0 %v4221_v42  ;;  %4274 = vmatpush1.bf16.msra.mxu1 %v4227_v26 }
 0x5f5   : > { %v4337_v14 = vpack.c.bf16 %v4333_v23, %v4333_v23  ;;  %v4439_v62 = vpop.permute.xlu1 %4438  ;;  %4264 = vmatprep.mubr.bf16.mxu0 %v6976_v20  ;;  %4305 = vmatprep.mubr.bf16.mxu1 %v6976_v20  ;;  %v4336_v45 = vpack.c.bf16 %v4332_v49, %v4332_v49  ;;  %v4339_v30 = vsel %vm343_vm2, %v4334_v25, 0 }
 0x5f6   : > { %5042 = vmatprep.subr.msk.bf16.mxu0 %vm343_vm2, %v4335_v58  ;;  %v4446_v34 = vsel %vm1145_vm7, %v4437_v63, %v4439_v62 }
 0x5f7   : > { %5044 = vmatprep.subr.msk.bf16.mxu1 %vm343_vm2, %v4337_v14  ;;  %v4448_v4 = vmul.f32 %v4446_v34, %v5749_v28 }
 0x5f8   : > { %v4441_v44 = vpop.permute.xlu0 %4440 }
 0x5f9   : > { %v4445_v21 = vsel %vm1145_vm7, %v4439_v62, %v4441_v44  ;;  %v4443_v61 = vpop.permute.xlu1 %4442 }
 0x5fa   : > { %v4449_v22 = vmul.f32 %v4445_v21, %v5734_v60  ;;  %v4444_v39 = vsel %vm1145_vm7, %v4441_v44, %v4443_v61  ;;  %v4447_v40 = vsel %vm1145_vm7, %v4443_v61, %v4437_v63  ;;  %v4345_v60 = vsel %vm343_vm2, %v4336_v45, 0  ;;  %v7006_v44 = vld [vmem:[#allocation13_spill] sm:$0xff]  ;;  %v7007_v61 = vld [vmem:[#allocation20_spill] sm:$0xff] }
 0x5fb   : > { %v4450_v56 = vmul.f32 %v4444_v39, %v5753_v32  ;;  %v4451_v57 = vmul.f32 %v4447_v40, %v5731_v59  ;;  %5039 = vmatmul.mubr.msk.bf16.vlgmr.msra.gmra.mrb[28].mxu0 %vm339_vm3, %v7004_v41  ;;  %5041 = vmatmul.mubr.msk.bf16.vlgmr.msra.gmra.mrb[28].mxu1 %vm339_vm3, %v7004_v41  ;;  %v4452_v59 = vpack.c.bf16 %v4448_v4, %v4448_v4  ;;  %v3735_v21 = vstv %s5881_s18  ;;  %v7008_v39 = vld [vmem:[#allocation21_spill] sm:$0xff] }
 0x5fc   : > { %v4453_v31 = vpack.c.bf16 %v4449_v22, %v4449_v22  ;;  %4351 = vmatpush1.bf16.msra.mxu0 %v4339_v30  ;;  %4392 = vmatpush1.bf16.msra.mxu1 %v4345_v60  ;;  %v4555_v12 = vpop.permute.xlu0 %4554  ;;  %v3738_v22 = vmul.f32 %v7007_v61, %v3735_v21  ;;  %v3737_v40 = vmul.f32 %v7008_v39, %v3735_v21  ;;  %v7009_v30 = vld [vmem:[#allocation22_spill] sm:$0xff] }
 0x5fd   : > { %v4455_v0 = vpack.c.bf16 %v4451_v57, %v4451_v57  ;;  %v4557_v38 = vpop.permute.xlu1 %4556  ;;  %4382 = vmatprep.mubr.bf16.mxu0 %v6976_v20  ;;  %4423 = vmatprep.mubr.bf16.mxu1 %v6976_v20  ;;  %v4454_v28 = vpack.c.bf16 %v4450_v56, %v4450_v56  ;;  %v3739_v4 = vmul.f32 %v7009_v30, %v3735_v21 }
 0x5fe   : > { %5046 = vmatprep.subr.msk.bf16.mxu0 %vm343_vm2, %v4453_v31  ;;  %v4564_v32 = vsel %vm1292_vm8, %v4555_v12, %v4557_v38  ;;  %v3742_v56 = vadd.f32 %v3738_v22, %v5916_v11  ;;  %v3741_v60 = vadd.f32 %v3737_v40, %v5916_v11  ;;  %v7010_v31 = vld [vmem:[#allocation14_spill] sm:$0xff] }
 0x5ff   : > { %5048 = vmatprep.subr.msk.bf16.mxu1 %vm343_vm2, %v4455_v0  ;;  %v4566_v10 = vmul.f32 %v4564_v32, %v5792_v27  ;;  %v4457_v27 = vsel %vm343_vm2, %v4452_v59, 0 }
 0x600   : > { %v4559_v47 = vpop.permute.xlu0 %4558 }
 0x601   : > { %v4563_v19 = vsel %vm1292_vm8, %v4557_v38, %v4559_v47  ;;  %v4561_v17 = vpop.permute.xlu1 %4560 }
 0x602   : > { %v4567_v18 = vmul.f32 %v4563_v19, %v5777_v54  ;;  %v4562_v53 = vsel %vm1292_vm8, %v4559_v47, %v4561_v17  ;;  %v4565_v5 = vsel %vm1292_vm8, %v4561_v17, %v4555_v12  ;;  %v4463_v54 = vsel %vm343_vm2, %v4454_v28, 0 }
 0x603   : > { %v4568_v15 = vmul.f32 %v4562_v53, %v5796_v33  ;;  %v4569_v16 = vmul.f32 %v4565_v5, %v5774_v52  ;;  %5043 = vmatmul.mubr.msk.bf16.vlgmr.msra.gmra.mrb[32].mxu0 %vm339_vm3, %v6494_v1  ;;  %5045 = vmatmul.mubr.msk.bf16.vlgmr.msra.gmra.mrb[32].mxu1 %vm339_vm3, %v6494_v1  ;;  %v4570_v52 = vpack.c.bf16 %v4566_v10, %v4566_v10 }
 0x604   : > { %v4571_v7 = vpack.c.bf16 %v4567_v18, %v4567_v18  ;;  %4469 = vmatpush1.bf16.msra.mxu0 %v4457_v27  ;;  %4510 = vmatpush1.bf16.msra.mxu1 %v4463_v54  ;;  %v4673_v9 = vpop.permute.xlu0 %4672  ;;  %v3736_v12 = vmul.f32 %v7010_v31, %v3735_v21 }
 0x605   : > { %v4573_v35 = vpack.c.bf16 %v4569_v16, %v4569_v16  ;;  %v4675_v48 = vpop.permute.xlu1 %4674  ;;  %4500 = vmatprep.mubr.bf16.mxu0 %v6976_v20  ;;  %4541 = vmatprep.mubr.bf16.mxu1 %v6976_v20  ;;  %v4572_v33 = vpack.c.bf16 %v4568_v15, %v4568_v15  ;;  %v4575_v63 = vsel %vm343_vm2, %v4570_v52, 0 }
 0x606   : > { %5050 = vmatprep.subr.msk.bf16.mxu0 %vm343_vm2, %v4571_v7  ;;  %v4682_v1 = vsel %vm1439_vm9, %v4673_v9, %v4675_v48  ;;  %v3740_v18 = vadd.f32 %v3736_v12, %v5916_v11 }
 0x607   : > { %5052 = vmatprep.subr.msk.bf16.mxu1 %vm343_vm2, %v4573_v35  ;;  %v4684_v14 = vmul.f32 %v4682_v1, %v5835_v29 }
 0x608   : > { %v4677_v49 = vpop.permute.xlu0 %4676 }
 0x609   : > { %v4681_v23 = vsel %vm1439_vm9, %v4675_v48, %v4677_v49  ;;  %v4679_v51 = vpop.permute.xlu1 %4678 }
 0x60a   : > { %v4685_v42 = vmul.f32 %v4681_v23, %v5820_v55  ;;  %v4680_v26 = vsel %vm1439_vm9, %v4677_v49, %v4679_v51  ;;  %v4683_v58 = vsel %vm1439_vm9, %v4679_v51, %v4673_v9  ;;  %v4581_v55 = vsel %vm343_vm2, %v4572_v33, 0 }
 0x60b   : > { %v4686_v62 = vmul.f32 %v4680_v26, %v6977_v43  ;;  %v4687_v25 = vmul.f32 %v4683_v58, %v5817_v36  ;;  %5047 = vmatmul.mubr.msk.bf16.vlgmr.msra.gmra.mrb[36].mxu0 %vm339_vm3, %v6521_v46  ;;  %5049 = vmatmul.mubr.msk.bf16.vlgmr.msra.gmra.mrb[36].mxu1 %vm339_vm3, %v6521_v46  ;;  %v4688_v36 = vpack.c.bf16 %v4684_v14, %v4684_v14  ;;  %v7005_v43 = vld [vmem:[#allocation12_spill] sm:$0xff] }
 0x60c   : > { %v4689_v45 = vpack.c.bf16 %v4685_v42, %v4685_v42  ;;  %4587 = vmatpush1.bf16.msra.mxu0 %v4575_v63  ;;  %4628 = vmatpush1.bf16.msra.mxu1 %v4581_v55 }
 0x60d   : > { %v4691_v8 = vpack.c.bf16 %v4687_v25, %v4687_v25  ;;  %4618 = vmatprep.mubr.bf16.mxu0 %v6976_v20  ;;  %4659 = vmatprep.mubr.bf16.mxu1 %v6976_v20  ;;  %v4690_v29 = vpack.c.bf16 %v4686_v62, %v4686_v62  ;;  %v4693_v46 = vsel %vm343_vm2, %v4688_v36, 0 }
 0x60e   : > { %5054 = vmatprep.subr.msk.bf16.mxu0 %vm343_vm2, %v4689_v45 }
 0x60f   : > { %5056 = vmatprep.subr.msk.bf16.mxu1 %vm343_vm2, %v4691_v8  ;;  %v4699_v34 = vsel %vm343_vm2, %v4690_v29, 0 }
 0x613   : > { %5051 = vmatmul.mubr.msk.bf16.vlgmr.msra.gmra.mrb[40].mxu0 %vm339_vm3, %v7005_v43  ;;  %5053 = vmatmul.mubr.msk.bf16.vlgmr.msra.gmra.mrb[40].mxu1 %vm339_vm3, %v7005_v43 }
 0x614   : > { %4705 = vmatpush1.bf16.msra.mxu0 %v4693_v46  ;;  %4746 = vmatpush1.bf16.msra.mxu1 %v4699_v34 }
 0x615   : > { %4736 = vmatprep.mubr.bf16.mxu0 %v6976_v20  ;;  %4777 = vmatprep.mubr.bf16.mxu1 %v6976_v20  ;;  %v3743_v20 = vadd.f32 %v3739_v4, %v5916_v11 }
 0x61b   : > { %5055 = vmatmul.mubr.msk.bf16.vlgmr.msra.gmra.mrb[44].mxu0 %vm339_vm3, %v7006_v44  ;;  %5057 = vmatmul.mubr.msk.bf16.vlgmr.msra.gmra.mrb[44].mxu1 %vm339_vm3, %v7006_v44 }
 0x6ae   : > { %v3810_v57 = vpop.f32.mrb[12].mxu0  ;;  %v3851_v41 = vpop.f32.mrb[12].mxu1 }
 0x6af   : > { %v3860_v0 = vadd.f32 %v3851_v41, %v3742_v56  ;;  %v3812_v38 = vpop.f32.mrb[13].mxu0  ;;  %v3853_v59 = vpop.f32.mrb[13].mxu1  ;;  %v3858_v53 = vadd.f32 %v3810_v57, %v3740_v18 }
 0x6b0   : > { %v3859_v28 = vadd.f32 %v3812_v38, %v3741_v60  ;;  %v3861_v32 = vadd.f32 %v3853_v59, %v3743_v20  ;;  %v3814_v47 = vpop.f32.mrb[14].mxu0  ;;  %v3855_v19 = vpop.f32.mrb[14].mxu1 }
 0x6b1   : > { %v3815_v17 = vpop.f32.mrb[15].mxu0  ;;  %v3856_v10 = vpop.f32.mrb[15].mxu1 }
 0x6b6   : > { %v3928_v5 = vpop.f32.mrb[16].mxu0  ;;  %v3969_v15 = vpop.f32.mrb[16].mxu1 }
 0x6b7   : > { %v3976_v16 = vadd.f32 %v3928_v5, %v3858_v53  ;;  %v3978_v27 = vadd.f32 %v3969_v15, %v3860_v0  ;;  %v3930_v54 = vpop.f32.mrb[17].mxu0  ;;  %v3971_v7 = vpop.f32.mrb[17].mxu1 }
 0x6b8   : > { %v3977_v9 = vadd.f32 %v3930_v54, %v3859_v28  ;;  %v3979_v35 = vadd.f32 %v3971_v7, %v3861_v32  ;;  %v3932_v48 = vpop.f32.mrb[18].mxu0  ;;  %v3973_v52 = vpop.f32.mrb[18].mxu1 }
 0x6b9   : > { %v3933_v33 = vpop.f32.mrb[19].mxu0  ;;  %v3974_v1 = vpop.f32.mrb[19].mxu1 }
 0x6be   : > { %v4046_v49 = vpop.f32.mrb[20].mxu0  ;;  %v4087_v23 = vpop.f32.mrb[20].mxu1 }
 0x6bf   : > { %v4094_v51 = vadd.f32 %v4046_v49, %v3976_v16  ;;  %v4096_v42 = vadd.f32 %v4087_v23, %v3978_v27  ;;  %v4048_v26 = vpop.f32.mrb[21].mxu0  ;;  %v4089_v58 = vpop.f32.mrb[21].mxu1 }
 0x6c0   : > { %v4095_v11 = vadd.f32 %v4048_v26, %v3977_v9  ;;  %v4097_v63 = vadd.f32 %v4089_v58, %v3979_v35  ;;  %v4050_v14 = vpop.f32.mrb[22].mxu0  ;;  %v4091_v62 = vpop.f32.mrb[22].mxu1 }
 0x6c1   : > { %v4051_v25 = vpop.f32.mrb[23].mxu0  ;;  %v4092_v55 = vpop.f32.mrb[23].mxu1  ;;  %v4791_v14 = vadd.f32 %v6601_v13, %v6223_v2  ;;  %v7012_v13 = vld [vmem:[#allocation16_spill] sm:$0xff] }
 0x6c6   : > { %v4164_v45 = vpop.f32.mrb[24].mxu0  ;;  %v4205_v8 = vpop.f32.mrb[24].mxu1 }
 0x6c7   : > { %v4212_v36 = vadd.f32 %v4164_v45, %v4094_v51  ;;  %v4214_v29 = vadd.f32 %v4205_v8, %v4096_v42  ;;  %v4166_v43 = vpop.f32.mrb[25].mxu0  ;;  %v4207_v46 = vpop.f32.mrb[25].mxu1  ;;  %v4790_v42 = vadd.f32 %v6593_v3, %v6214_v24  ;;  %v4793_v8 = vadd.f32 %v6605_v50, %v6225_v37  ;;  %v7014_v50 = vld [vmem:[#allocation18_spill] sm:$0xff] }
 0x6c8   : > { %v4213_v34 = vadd.f32 %v4166_v43, %v4095_v11  ;;  %v4215_v44 = vadd.f32 %v4207_v46, %v4097_v63  ;;  %v4168_v21 = vpop.f32.mrb[26].mxu0  ;;  %v4209_v61 = vpop.f32.mrb[26].mxu1  ;;  %v7011_v11 = vld [vmem:[#allocation8_spill] sm:$0xff] }
 0x6c9   : > { %v4169_v22 = vpop.f32.mrb[27].mxu0  ;;  %v4210_v39 = vpop.f32.mrb[27].mxu1  ;;  %v4792_v63 = vadd.f32 %v6597_v6, %v7011_v11  ;;  %v4795_v6 = vmul.f32 3.0, %v4791_v14  ;;  %v4797_v21 = vmul.f32 3.0, %v4793_v8 }
 0x6ce   : > { %v4266_v40 = vpop.f32.mrb[28].mxu0  ;;  %v4307_v30 = vpop.f32.mrb[28].mxu1 }
 0x6cf   : > { %v4314_v4 = vadd.f32 %v4266_v40, %v4212_v36  ;;  %v4316_v56 = vadd.f32 %v4307_v30, %v4214_v29  ;;  %v4268_v57 = vpop.f32.mrb[29].mxu0  ;;  %v4309_v41 = vpop.f32.mrb[29].mxu1  ;;  %v7013_v30 = vld [vmem:[#allocation17_spill] sm:$0xff] }
 0x6d0   : > { %v4315_v60 = vadd.f32 %v4268_v57, %v4213_v34  ;;  %v4317_v20 = vadd.f32 %v4309_v41, %v4215_v44  ;;  %v4270_v31 = vpop.f32.mrb[30].mxu0  ;;  %v4311_v12 = vpop.f32.mrb[30].mxu1  ;;  %v4794_v34 = vmul.f32 3.0, %v4790_v42  ;;  %v4796_v44 = vmul.f32 3.0, %v4792_v63 }
 0x6d1   : > { %v4271_v0 = vpop.f32.mrb[31].mxu0  ;;  %v4312_v38 = vpop.f32.mrb[31].mxu1  ;;  %v4807_v41 = vstv %s4806_s9  ;;  %v7015_v31 = vld [vmem:[#allocation19_spill] sm:$0xff] }
 0x6d2   : > { %v4798_v61 = vadd.f32 %v7012_v13, %v4794_v34  ;;  %v4801_v12 = vadd.f32 %v7015_v31, %v4797_v21 }
 0x6d6   : > { %v4384_v59 = vpop.f32.mrb[32].mxu0  ;;  %v4425_v28 = vpop.f32.mrb[32].mxu1 }
 0x6d7   : > { %v4432_v32 = vadd.f32 %v4384_v59, %v4314_v4  ;;  %v4434_v47 = vadd.f32 %v4425_v28, %v4316_v56  ;;  %v4386_v19 = vpop.f32.mrb[33].mxu0  ;;  %v4427_v17 = vpop.f32.mrb[33].mxu1  ;;  %v4800_v4 = vadd.f32 %v7013_v30, %v4796_v44  ;;  %v4799_v56 = vadd.f32 %v7014_v50, %v4795_v6 }
 0x6d8   : > { %v4433_v10 = vadd.f32 %v4386_v19, %v4315_v60  ;;  %v4435_v18 = vadd.f32 %v4427_v17, %v4317_v20  ;;  %v4388_v53 = vpop.f32.mrb[34].mxu0  ;;  %v4429_v5 = vpop.f32.mrb[34].mxu1 }
 0x6d9   : > { %v4389_v15 = vpop.f32.mrb[35].mxu0  ;;  %v4430_v16 = vpop.f32.mrb[35].mxu1 }
 0x6da   : > { %v5312_v15 = vld [vmem:[%s5418_s8] sm:$0xff] }
 0x6de   : > { %v4502_v27 = vpop.f32.mrb[36].mxu0  ;;  %v4543_v54 = vpop.f32.mrb[36].mxu1 }
 0x6df   : > { %v4550_v7 = vadd.f32 %v4502_v27, %v4432_v32  ;;  %v4552_v9 = vadd.f32 %v4543_v54, %v4434_v47  ;;  %v4504_v35 = vpop.f32.mrb[37].mxu0  ;;  %v4545_v48 = vpop.f32.mrb[37].mxu1  ;;  %v5313_v27 = vld [vmem:[%s5418_s8 + $0x10] sm:$0xff] }
 0x6e0   : > { %v4551_v52 = vadd.f32 %v4504_v35, %v4433_v10  ;;  %v4553_v33 = vadd.f32 %v4545_v48, %v4435_v18  ;;  %v4506_v1 = vpop.f32.mrb[38].mxu0  ;;  %v4547_v49 = vpop.f32.mrb[38].mxu1  ;;  %v5315_v35 = vld [vmem:[%s5418_s8 + $0x18] sm:$0xff] }
 0x6e1   : > { %v4507_v23 = vpop.f32.mrb[39].mxu0  ;;  %v4548_v51 = vpop.f32.mrb[39].mxu1 }
 0x6e6   : > { %v4620_v26 = vpop.f32.mrb[40].mxu0  ;;  %v4661_v58 = vpop.f32.mrb[40].mxu1 }
 0x6e7   : > { %v4668_v62 = vadd.f32 %v4620_v26, %v4550_v7  ;;  %v4670_v25 = vadd.f32 %v4661_v58, %v4552_v9  ;;  %v4622_v55 = vpop.f32.mrb[41].mxu0  ;;  %v4663_v45 = vpop.f32.mrb[41].mxu1  ;;  %v5314_v7 = vld [vmem:[%s5418_s8 + $0x8] sm:$0xff] }
 0x6e8   : > { %v4669_v36 = vadd.f32 %v4622_v55, %v4551_v52  ;;  %v4671_v29 = vadd.f32 %v4663_v45, %v4553_v33  ;;  %v4624_v43 = vpop.f32.mrb[42].mxu0  ;;  %v4665_v24 = vpop.f32.mrb[42].mxu1 }
 0x6e9   : > { %v4625_v3 = vpop.f32.mrb[43].mxu0  ;;  %v4666_v46 = vpop.f32.mrb[43].mxu1 }
 0x6ee   : > { %v4738_v2 = vpop.f32.mrb[44].mxu0  ;;  %v4779_v22 = vpop.f32.mrb[44].mxu1 }
 0x6ef   : > { %v4786_v39 = vadd.f32 %v4738_v2, %v4668_v62  ;;  %v4788_v40 = vadd.f32 %v4779_v22, %v4670_v25  ;;  %v4740_v37 = vpop.f32.mrb[45].mxu0  ;;  %v4781_v57 = vpop.f32.mrb[45].mxu1 }
 0x6f0   : > { %v4787_v60 = vadd.f32 %v4740_v37, %v4669_v36  ;;  %v4789_v20 = vadd.f32 %v4781_v57, %v4671_v29  ;;  %v4742_v0 = vpop.f32.mrb[46].mxu0  ;;  %v4783_v38 = vpop.f32.mrb[46].mxu1 }
 0x6f1   : > { %v4802_v59 = vadd.f32 %v4798_v61, %v4786_v39  ;;  %v4804_v28 = vadd.f32 %v4800_v4, %v4788_v40  ;;  %v4743_v32 = vpop.f32.mrb[47].mxu0  ;;  %v4784_v47 = vpop.f32.mrb[47].mxu1 }
 0x6f2   : > { %v4803_v19 = vadd.f32 %v4799_v56, %v4787_v60  ;;  %v4805_v17 = vadd.f32 %v4801_v12, %v4789_v20 }
 0x6f3   : > { %v4808_v10 = vmul.f32 %v4807_v41, %v4802_v59  ;;  %v4810_v18 = vmul.f32 %v4807_v41, %v4804_v28 }
 0x6f4   : > { %v4809_v53 = vmul.f32 %v4807_v41, %v4803_v19  ;;  %v4811_v5 = vmul.f32 %v4807_v41, %v4805_v17 }
 0x6f5   : > { %v4812_v16 = vadd.f32 %v5312_v15, %v4808_v10  ;;  %v4814_v54 = vadd.f32 %v5313_v27, %v4810_v18 }
 0x6f6   : > { %v4813_v9 = vadd.f32 %v5314_v7, %v4809_v53  ;;  %v4815_v48 = vadd.f32 %v5315_v35, %v4811_v5 }
 0x6f7   : > { %4816 = vst [vmem:[%s265_s12] sm:$0xff] %v4812_v16  ;;  %4818 = vst [vmem:[%s265_s12 + $0x10] sm:$0xff] %v4814_v54 }
 0x6f8   : > { %4817 = vst [vmem:[%s265_s12 + $0x8] sm:$0xff] %v4813_v9  ;;  %4819 = vst [vmem:[%s265_s12 + $0x18] sm:$0xff] %v4815_v48 }
 0x6f9 PF: > { %s17_s21 = sadd.s32 1, %s5341_s21  }
 0x6fa   : > { %p14_p1 = scmp.ge.s32.totalorder %s17_s21, 4  }
 0x6fc   :  { %16 = sbr.rel (!%p14_p1) target bundleno = 1 (0x1), region = 94 }
 0x703   :  { %4841 = vsyncpa [#allocation3], 1 }
 0x704   :  { %4843 = vsyncpa [#allocation3 + $0x1], 1 }

</bundles_post_ra>
